<compile_context>
chip_gen: v7x
topology: tpu7x:2x2x1
jax: 0.10.0
libtpu: 0.0.40
codegen_flags: <defaults>
</compile_context>

<pallas_src>
import functools

import jax
import jax.numpy as jnp
from jax.experimental import pallas as pl
from jax.experimental.pallas import tpu as pltpu


# --------------------------------------------------------------------------
# Helpers
# --------------------------------------------------------------------------
def _round_up(n, m):
    return ((n + m - 1) // m) * m


# --------------------------------------------------------------------------
# Fused kernels (single grid step, everything resident in VMEM)
# --------------------------------------------------------------------------
def _fused_train_kernel(x_ref, fcw_ref, fcb_ref,
                        w1mu_ref, w1sig_ref, e1in_ref, e1out_ref,
                        b1mu_ref, b1sig_ref, b1eps_ref,
                        w2mu_ref, w2sig_ref, e2in_ref, e2out_ref,
                        b2mu_ref, b2sig_ref, b2eps_ref,
                        o_ref):
    # Layer 1: Linear + ReLU
    h = jnp.maximum(
        jnp.dot(x_ref[...], fcw_ref[...], preferred_element_type=jnp.float32)
        + fcb_ref[...], 0.0)

    # Layer 2: NoisyLinear (training) + ReLU, rank-1 epsilon factorization.
    b1 = b1mu_ref[...] + b1sig_ref[...] * b1eps_ref[...]
    y = (jnp.dot(h, w1mu_ref[...], preferred_element_type=jnp.float32)
         + jnp.dot(h * e1in_ref[...], w1sig_ref[...],
                   preferred_element_type=jnp.float32) * e1out_ref[...]
         + b1)
    h = jnp.maximum(y, 0.0)

    # Layer 3: NoisyLinear (training), no ReLU.
    b2 = b2mu_ref[...] + b2sig_ref[...] * b2eps_ref[...]
    y = (jnp.dot(h, w2mu_ref[...], preferred_element_type=jnp.float32)
         + jnp.dot(h * e2in_ref[...], w2sig_ref[...],
                   preferred_element_type=jnp.float32) * e2out_ref[...]
         + b2)
    o_ref[...] = y.astype(o_ref.dtype)


def _fused_eval_kernel(x_ref, fcw_ref, fcb_ref,
                       w1mu_ref, b1mu_ref,
                       w2mu_ref, b2mu_ref,
                       o_ref):
    h = jnp.maximum(
        jnp.dot(x_ref[...], fcw_ref[...], preferred_element_type=jnp.float32)
        + fcb_ref[...], 0.0)
    h = jnp.maximum(
        jnp.dot(h, w1mu_ref[...], preferred_element_type=jnp.float32)
        + b1mu_ref[...], 0.0)
    y = (jnp.dot(h, w2mu_ref[...], preferred_element_type=jnp.float32)
         + b2mu_ref[...])
    o_ref[...] = y.astype(o_ref.dtype)


# --------------------------------------------------------------------------
# Forward wrapper
# --------------------------------------------------------------------------
def dqn_noisy_forward(state, params, *, num_actions, training=True):
    """Full DQNNoisy forward as a single fused pallas_call."""
    B = state.shape[0]
    x = state.reshape(B, -1)
    K = x.shape[1]

    fc = params["fc"]
    n1 = params["noisy1"]
    n2 = params["noisy2"]

    Kp = fc["weight_t"].shape[0]          # padded flattened-state dim
    Op = n2["weight_mu_t"].shape[1]       # padded num_actions
    Bp = _round_up(B, 8)                  # sublane-aligned batch

    # Pad only the activation per-call (tiny); weights were padded at init.
    x = jnp.pad(x, ((0, Bp - B), (0, Kp - K)))

    if training:
        kernel = _fused_train_kernel
        args = (x, fc["weight_t"], fc["bias"],
                n1["weight_mu_t"], n1["weight_sigma_t"],
                n1["eps_in"], n1["eps_out"],
                n1["bias_mu"], n1["bias_sigma"], n1["bias_epsilon"],
                n2["weight_mu_t"], n2["weight_sigma_t"],
                n2["eps_in"], n2["eps_out"],
                n2["bias_mu"], n2["bias_sigma"], n2["bias_epsilon"])
    else:
        # Eval mode never touches sigma / epsilon -> no DMA for them.
        kernel = _fused_eval_kernel
        args = (x, fc["weight_t"], fc["bias"],
                n1["weight_mu_t"], n1["bias_mu"],
                n2["weight_mu_t"], n2["bias_mu"])

    in_specs = [pl.BlockSpec(a.shape, lambda i: (0, 0)) for a in args]

    out = pl.pallas_call(
        kernel,
        out_shape=jax.ShapeDtypeStruct((Bp, Op), x.dtype),
        grid_spec=pltpu.PrefetchScalarGridSpec(
            num_scalar_prefetch=0,
            grid=(1,),
            in_specs=in_specs,
            out_specs=pl.BlockSpec((Bp, Op), lambda i: (0, 0)),
        ),
        compiler_params=pltpu.CompilerParams(
            dimension_semantics=("arbitrary",)),
    )(*args)
    return out[:B, :num_actions]


# --------------------------------------------------------------------------
# Parameter initialisation (mirrors reset_parameter() / reset_noise()).
# Weights are stored pre-transposed as (input_dim, output_dim) and padded to
# (8,128)-aligned shapes ONCE here.  weight_epsilon is kept in factored
# rank-1 form (eps_in, eps_out): outer(eps_in, eps_out) == ger(eps_out, eps_in)^T.
# --------------------------------------------------------------------------
def _scale_noise(key, size):
    n = jax.random.normal(key, (size,), dtype=jnp.float32)
    return jnp.sign(n) * jnp.sqrt(jnp.abs(n))


def _pad2d(a, rows, cols):
    pr, pc = rows - a.shape[0], cols - a.shape[1]
    if pr == 0 and pc == 0:
        return a
    return jnp.pad(a, ((0, pr), (0, pc)))


def init_noisy_linear(key, input_dim, output_dim, std_init=0.5):
    k_wmu, k_bmu, k_ein, k_eout, k_beps = jax.random.split(key, 5)
    Kp, Op = _round_up(input_dim, 128), _round_up(output_dim, 128)
    mu_range = 1.0 / float(input_dim) ** 0.5
    weight_mu_t = jax.random.uniform(k_wmu, (input_dim, output_dim),
                                     minval=-mu_range, maxval=mu_range,
                                     dtype=jnp.float32)
    bias_mu = jax.random.uniform(k_bmu, (output_dim,),
                                 minval=-mu_range, maxval=mu_range,
                                 dtype=jnp.float32)
    sigma = std_init / float(input_dim) ** 0.5
    weight_sigma_t = jnp.full((input_dim, output_dim), sigma, jnp.float32)
    bias_sigma = jnp.full((output_dim,), sigma, jnp.float32)
    eps_in = _scale_noise(k_ein, input_dim)
    eps_out = _scale_noise(k_eout, output_dim)
    bias_epsilon = _scale_noise(k_beps, output_dim)
    return {
        "weight_mu_t": _pad2d(weight_mu_t, Kp, Op),
        "weight_sigma_t": _pad2d(weight_sigma_t, Kp, Op),
        "eps_in": _pad2d(eps_in.reshape(1, input_dim), 1, Kp),
        "eps_out": _pad2d(eps_out.reshape(1, output_dim), 1, Op),
        "bias_mu": _pad2d(bias_mu.reshape(1, output_dim), 1, Op),
        "bias_sigma": _pad2d(bias_sigma.reshape(1, output_dim), 1, Op),
        "bias_epsilon": _pad2d(bias_epsilon.reshape(1, output_dim), 1, Op),
    }


def init_linear(key, input_dim, output_dim):
    # nn.Linear default init: U(-1/sqrt(in), 1/sqrt(in)) for weight and bias.
    k_w, k_b = jax.random.split(key)
    Kp, Op = _round_up(input_dim, 128), _round_up(output_dim, 128)
    bound = 1.0 / float(input_dim) ** 0.5
    weight_t = jax.random.uniform(k_w, (input_dim, output_dim),
                                  minval=-bound, maxval=bound, dtype=jnp.float32)
    bias = jax.random.uniform(k_b, (output_dim,),
                              minval=-bound, maxval=bound, dtype=jnp.float32)
    return {
        "weight_t": _pad2d(weight_t, Kp, Op),
        "bias": _pad2d(bias.reshape(1, output_dim), 1, Op),
    }


def init_dqn_noisy(key, state_shape, num_actions):
    flattened = 1
    for d in state_shape:
        flattened *= d
    k_fc, k_n1, k_n2 = jax.random.split(key, 3)
    return {
        "fc": init_linear(k_fc, flattened, 512),
        "noisy1": init_noisy_linear(k_n1, 512, 512),
        "noisy2": init_noisy_linear(k_n2, 512, num_actions),
    }


# --------------------------------------------------------------------------
# Pure-JAX reference (matches PyTorch forward semantics).
# Uses the padded params; zero-padding makes the padded math identical to the
# logical computation.  Builds the dense weight_epsilon = outer(eps_in, eps_out)
# so the kernel's rank-1 factorization is validated against the dense form.
# --------------------------------------------------------------------------
def ref_dqn_noisy(state, params, num_actions, training):
    B = state.shape[0]
    x = state.reshape(B, -1)
    Kp = params["fc"]["weight_t"].shape[0]
    x = jnp.pad(x, ((0, 0), (0, Kp - x.shape[1])))
    x = jnp.maximum(x @ params["fc"]["weight_t"] + params["fc"]["bias"], 0.0)
    for name, last in (("noisy1", False), ("noisy2", True)):
        p = params[name]
        if training:
            w_eps = p["eps_in"].T @ p["eps_out"]          # dense rank-1 epsilon
            w = p["weight_mu_t"] + p["weight_sigma_t"] * w_eps
            b = p["bias_mu"] + p["bias_sigma"] * p["bias_epsilon"]
        else:
            w, b = p["weight_mu_t"], p["bias_mu"]
        x = x @ w + b
        if not last:
            x = jnp.maximum(x, 0.0)
    return x[:, :num_actions]


if __name__ == "__main__":
    key = jax.random.PRNGKey(0)
    k_params, k_state = jax.random.split(key)

    state_shape = (6, 5, 15)          # flattened = 450 (padded to 512 at init)
    num_actions = 309                 # padded to 384 at init, sliced back
    batch = 4                         # padded to 8 (sublane-aligned), sliced back

    params = init_dqn_noisy(k_params, state_shape, num_actions)
    state = jax.random.normal(k_state, (batch,) + state_shape, dtype=jnp.float32)

    fwd_train = jax.jit(functools.partial(
        dqn_noisy_forward, num_actions=num_actions, training=True))
    fwd_eval = jax.jit(functools.partial(
        dqn_noisy_forward, num_actions=num_actions, training=False))

    y_train = jax.block_until_ready(fwd_train(state, params))
    y_eval = jax.block_until_ready(fwd_eval(state, params))

    ref_train = ref_dqn_noisy(state, params, num_actions, True)
    ref_eval = ref_dqn_noisy(state, params, num_actions, False)

    assert y_train.shape == (batch, num_actions)
    assert y_eval.shape == (batch, num_actions)
    assert jnp.allclose(y_train, ref_train, atol=1e-3, rtol=1e-3), (
        float(jnp.max(jnp.abs(y_train - ref_train))))
    assert jnp.allclose(y_eval, ref_eval, atol=1e-3, rtol=1e-3), (
        float(jnp.max(jnp.abs(y_eval - ref_eval))))

    print("KERNEL_OK")
</pallas_src>

<mosaic_0001>
module attributes {stable_mosaic.version = 11 : i64} {
  func.func @_fused_train_kernel(%arg0: i32, %arg1: memref<8x512xf32, #tpu.memory_space<vmem>>, %arg2: memref<512x512xf32, #tpu.memory_space<vmem>>, %arg3: memref<1x512xf32, #tpu.memory_space<vmem>>, %arg4: memref<512x512xf32, #tpu.memory_space<vmem>>, %arg5: memref<512x512xf32, #tpu.memory_space<vmem>>, %arg6: memref<1x512xf32, #tpu.memory_space<vmem>>, %arg7: memref<1x512xf32, #tpu.memory_space<vmem>>, %arg8: memref<1x512xf32, #tpu.memory_space<vmem>>, %arg9: memref<1x512xf32, #tpu.memory_space<vmem>>, %arg10: memref<1x512xf32, #tpu.memory_space<vmem>>, %arg11: memref<512x384xf32, #tpu.memory_space<vmem>>, %arg12: memref<512x384xf32, #tpu.memory_space<vmem>>, %arg13: memref<1x512xf32, #tpu.memory_space<vmem>>, %arg14: memref<1x384xf32, #tpu.memory_space<vmem>>, %arg15: memref<1x384xf32, #tpu.memory_space<vmem>>, %arg16: memref<1x384xf32, #tpu.memory_space<vmem>>, %arg17: memref<1x384xf32, #tpu.memory_space<vmem>>, %arg18: memref<8x384xf32, #tpu.memory_space<vmem>>) attributes {dimension_semantics = [#tpu.dimension_semantics<arbitrary>], iteration_bounds = array<i64: 1>, scalar_prefetch = 0 : i64, scratch_operands = 0 : i64, tpu.core_type = #tpu.core_type<tc>, window_params = [{pipeline_mode = #tpu.pipeline_mode<synchronous>, transform_indices = @transform_0, window_bounds = array<i64: 8, 512>}, {pipeline_mode = #tpu.pipeline_mode<synchronous>, transform_indices = @transform_1, window_bounds = array<i64: 512, 512>}, {pipeline_mode = #tpu.pipeline_mode<synchronous>, transform_indices = @transform_2, window_bounds = array<i64: 1, 512>}, {pipeline_mode = #tpu.pipeline_mode<synchronous>, transform_indices = @transform_3, window_bounds = array<i64: 512, 512>}, {pipeline_mode = #tpu.pipeline_mode<synchronous>, transform_indices = @transform_4, window_bounds = array<i64: 512, 512>}, {pipeline_mode = #tpu.pipeline_mode<synchronous>, transform_indices = @transform_5, window_bounds = array<i64: 1, 512>}, {pipeline_mode = #tpu.pipeline_mode<synchronous>, transform_indices = @transform_6, window_bounds = array<i64: 1, 512>}, {pipeline_mode = #tpu.pipeline_mode<synchronous>, transform_indices = @transform_7, window_bounds = array<i64: 1, 512>}, {pipeline_mode = #tpu.pipeline_mode<synchronous>, transform_indices = @transform_8, window_bounds = array<i64: 1, 512>}, {pipeline_mode = #tpu.pipeline_mode<synchronous>, transform_indices = @transform_9, window_bounds = array<i64: 1, 512>}, {pipeline_mode = #tpu.pipeline_mode<synchronous>, transform_indices = @transform_10, window_bounds = array<i64: 512, 384>}, {pipeline_mode = #tpu.pipeline_mode<synchronous>, transform_indices = @transform_11, window_bounds = array<i64: 512, 384>}, {pipeline_mode = #tpu.pipeline_mode<synchronous>, transform_indices = @transform_12, window_bounds = array<i64: 1, 512>}, {pipeline_mode = #tpu.pipeline_mode<synchronous>, transform_indices = @transform_13, window_bounds = array<i64: 1, 384>}, {pipeline_mode = #tpu.pipeline_mode<synchronous>, transform_indices = @transform_14, window_bounds = array<i64: 1, 384>}, {pipeline_mode = #tpu.pipeline_mode<synchronous>, transform_indices = @transform_15, window_bounds = array<i64: 1, 384>}, {pipeline_mode = #tpu.pipeline_mode<synchronous>, transform_indices = @transform_16, window_bounds = array<i64: 1, 384>}, {pipeline_mode = #tpu.pipeline_mode<synchronous>, transform_indices = @transform_17, window_bounds = array<i64: 8, 384>}]} {
    %c0 = arith.constant 0 : index
    %c0_0 = arith.constant 0 : index
    %0 = vector.load %arg1[%c0, %c0_0] : memref<8x512xf32, #tpu.memory_space<vmem>>, vector<8x512xf32>
    %c0_1 = arith.constant 0 : index
    %c0_2 = arith.constant 0 : index
    %1 = vector.load %arg2[%c0_1, %c0_2] : memref<512x512xf32, #tpu.memory_space<vmem>>, vector<512x512xf32>
    %cst = arith.constant dense<0.000000e+00> : vector<8x512xf32>
    %2 = tpu.matmul %0, %1, %cst {dimension_numbers = #tpu.dot_dimension_numbers<[1], [0], [0], [1], [0, 0, 1, 1], [], []>} : vector<8x512xf32>, vector<512x512xf32>, vector<8x512xf32> -> vector<8x512xf32>
    %c0_3 = arith.constant 0 : index
    %c0_4 = arith.constant 0 : index
    %3 = vector.load %arg3[%c0_3, %c0_4] : memref<1x512xf32, #tpu.memory_space<vmem>>, vector<1x512xf32>
    %4 = vector.broadcast %3 : vector<1x512xf32> to vector<8x512xf32>
    %5 = arith.addf %2, %4 : vector<8x512xf32>
    %cst_5 = arith.constant 0.000000e+00 : f32
    %6 = vector.broadcast %cst_5 : f32 to vector<8x512xf32>
    %7 = arith.maximumf %5, %6 : vector<8x512xf32>
    %c0_6 = arith.constant 0 : index
    %c0_7 = arith.constant 0 : index
    %8 = vector.load %arg8[%c0_6, %c0_7] : memref<1x512xf32, #tpu.memory_space<vmem>>, vector<1x512xf32>
    %c0_8 = arith.constant 0 : index
    %c0_9 = arith.constant 0 : index
    %9 = vector.load %arg9[%c0_8, %c0_9] : memref<1x512xf32, #tpu.memory_space<vmem>>, vector<1x512xf32>
    %c0_10 = arith.constant 0 : index
    %c0_11 = arith.constant 0 : index
    %10 = vector.load %arg10[%c0_10, %c0_11] : memref<1x512xf32, #tpu.memory_space<vmem>>, vector<1x512xf32>
    %11 = arith.mulf %9, %10 : vector<1x512xf32>
    %12 = arith.addf %8, %11 : vector<1x512xf32>
    %c0_12 = arith.constant 0 : index
    %c0_13 = arith.constant 0 : index
    %13 = vector.load %arg4[%c0_12, %c0_13] : memref<512x512xf32, #tpu.memory_space<vmem>>, vector<512x512xf32>
    %cst_14 = arith.constant dense<0.000000e+00> : vector<8x512xf32>
    %14 = tpu.matmul %7, %13, %cst_14 {dimension_numbers = #tpu.dot_dimension_numbers<[1], [0], [0], [1], [0, 0, 1, 1], [], []>} : vector<8x512xf32>, vector<512x512xf32>, vector<8x512xf32> -> vector<8x512xf32>
    %c0_15 = arith.constant 0 : index
    %c0_16 = arith.constant 0 : index
    %15 = vector.load %arg6[%c0_15, %c0_16] : memref<1x512xf32, #tpu.memory_space<vmem>>, vector<1x512xf32>
    %16 = vector.broadcast %15 : vector<1x512xf32> to vector<8x512xf32>
    %17 = arith.mulf %7, %16 : vector<8x512xf32>
    %c0_17 = arith.constant 0 : index
    %c0_18 = arith.constant 0 : index
    %18 = vector.load %arg5[%c0_17, %c0_18] : memref<512x512xf32, #tpu.memory_space<vmem>>, vector<512x512xf32>
    %cst_19 = arith.constant dense<0.000000e+00> : vector<8x512xf32>
    %19 = tpu.matmul %17, %18, %cst_19 {dimension_numbers = #tpu.dot_dimension_numbers<[1], [0], [0], [1], [0, 0, 1, 1], [], []>} : vector<8x512xf32>, vector<512x512xf32>, vector<8x512xf32> -> vector<8x512xf32>
    %c0_20 = arith.constant 0 : index
    %c0_21 = arith.constant 0 : index
    %20 = vector.load %arg7[%c0_20, %c0_21] : memref<1x512xf32, #tpu.memory_space<vmem>>, vector<1x512xf32>
    %21 = vector.broadcast %20 : vector<1x512xf32> to vector<8x512xf32>
    %22 = arith.mulf %19, %21 : vector<8x512xf32>
    %23 = arith.addf %14, %22 : vector<8x512xf32>
    %24 = vector.broadcast %12 : vector<1x512xf32> to vector<8x512xf32>
    %25 = arith.addf %23, %24 : vector<8x512xf32>
    %cst_22 = arith.constant 0.000000e+00 : f32
    %26 = vector.broadcast %cst_22 : f32 to vector<8x512xf32>
    %27 = arith.maximumf %25, %26 : vector<8x512xf32>
    %c0_23 = arith.constant 0 : index
    %c0_24 = arith.constant 0 : index
    %28 = vector.load %arg15[%c0_23, %c0_24] : memref<1x384xf32, #tpu.memory_space<vmem>>, vector<1x384xf32>
    %c0_25 = arith.constant 0 : index
    %c0_26 = arith.constant 0 : index
    %29 = vector.load %arg16[%c0_25, %c0_26] : memref<1x384xf32, #tpu.memory_space<vmem>>, vector<1x384xf32>
    %c0_27 = arith.constant 0 : index
    %c0_28 = arith.constant 0 : index
    %30 = vector.load %arg17[%c0_27, %c0_28] : memref<1x384xf32, #tpu.memory_space<vmem>>, vector<1x384xf32>
    %31 = arith.mulf %29, %30 : vector<1x384xf32>
    %32 = arith.addf %28, %31 : vector<1x384xf32>
    %c0_29 = arith.constant 0 : index
    %c0_30 = arith.constant 0 : index
    %33 = vector.load %arg11[%c0_29, %c0_30] : memref<512x384xf32, #tpu.memory_space<vmem>>, vector<512x384xf32>
    %cst_31 = arith.constant dense<0.000000e+00> : vector<8x384xf32>
    %34 = tpu.matmul %27, %33, %cst_31 {dimension_numbers = #tpu.dot_dimension_numbers<[1], [0], [0], [1], [0, 0, 1, 1], [], []>} : vector<8x512xf32>, vector<512x384xf32>, vector<8x384xf32> -> vector<8x384xf32>
    %c0_32 = arith.constant 0 : index
    %c0_33 = arith.constant 0 : index
    %35 = vector.load %arg13[%c0_32, %c0_33] : memref<1x512xf32, #tpu.memory_space<vmem>>, vector<1x512xf32>
    %36 = vector.broadcast %35 : vector<1x512xf32> to vector<8x512xf32>
    %37 = arith.mulf %27, %36 : vector<8x512xf32>
    %c0_34 = arith.constant 0 : index
    %c0_35 = arith.constant 0 : index
    %38 = vector.load %arg12[%c0_34, %c0_35] : memref<512x384xf32, #tpu.memory_space<vmem>>, vector<512x384xf32>
    %cst_36 = arith.constant dense<0.000000e+00> : vector<8x384xf32>
    %39 = tpu.matmul %37, %38, %cst_36 {dimension_numbers = #tpu.dot_dimension_numbers<[1], [0], [0], [1], [0, 0, 1, 1], [], []>} : vector<8x512xf32>, vector<512x384xf32>, vector<8x384xf32> -> vector<8x384xf32>
    %c0_37 = arith.constant 0 : index
    %c0_38 = arith.constant 0 : index
    %40 = vector.load %arg14[%c0_37, %c0_38] : memref<1x384xf32, #tpu.memory_space<vmem>>, vector<1x384xf32>
    %41 = vector.broadcast %40 : vector<1x384xf32> to vector<8x384xf32>
    %42 = arith.mulf %39, %41 : vector<8x384xf32>
    %43 = arith.addf %34, %42 : vector<8x384xf32>
    %44 = vector.broadcast %32 : vector<1x384xf32> to vector<8x384xf32>
    %45 = arith.addf %43, %44 : vector<8x384xf32>
    %c0_39 = arith.constant 0 : index
    %c0_40 = arith.constant 0 : index
    %46 = vector.load %arg18[%c0_39, %c0_40] : memref<8x384xf32, #tpu.memory_space<vmem>>, vector<8x384xf32>
    tpu.vector_store %arg18[%c0_39, %c0_40], %45 {strides = array<i32>} : memref<8x384xf32, #tpu.memory_space<vmem>>, vector<8x384xf32>,
    return
  }
  func.func @transform_0(%arg0: i32) -> (i32, i32) {
    %c0_i32 = arith.constant 0 : i32
    %c0_i32_0 = arith.constant 0 : i32
    %c0_i32_1 = arith.constant 0 : i32
    return %c0_i32, %c0_i32_0 : i32, i32
  }
  func.func @transform_1(%arg0: i32) -> (i32, i32) {
    %c0_i32 = arith.constant 0 : i32
    %c0_i32_0 = arith.constant 0 : i32
    %c0_i32_1 = arith.constant 0 : i32
    return %c0_i32, %c0_i32_0 : i32, i32
  }
  func.func @transform_2(%arg0: i32) -> (i32, i32) {
    %c0_i32 = arith.constant 0 : i32
    %c0_i32_0 = arith.constant 0 : i32
    %c0_i32_1 = arith.constant 0 : i32
    return %c0_i32, %c0_i32_0 : i32, i32
  }
  func.func @transform_3(%arg0: i32) -> (i32, i32) {
    %c0_i32 = arith.constant 0 : i32
    %c0_i32_0 = arith.constant 0 : i32
    %c0_i32_1 = arith.constant 0 : i32
    return %c0_i32, %c0_i32_0 : i32, i32
  }
  func.func @transform_4(%arg0: i32) -> (i32, i32) {
    %c0_i32 = arith.constant 0 : i32
    %c0_i32_0 = arith.constant 0 : i32
    %c0_i32_1 = arith.constant 0 : i32
    return %c0_i32, %c0_i32_0 : i32, i32
  }
  func.func @transform_5(%arg0: i32) -> (i32, i32) {
    %c0_i32 = arith.constant 0 : i32
    %c0_i32_0 = arith.constant 0 : i32
    %c0_i32_1 = arith.constant 0 : i32
    return %c0_i32, %c0_i32_0 : i32, i32
  }
  func.func @transform_6(%arg0: i32) -> (i32, i32) {
    %c0_i32 = arith.constant 0 : i32
    %c0_i32_0 = arith.constant 0 : i32
    %c0_i32_1 = arith.constant 0 : i32
    return %c0_i32, %c0_i32_0 : i32, i32
  }
  func.func @transform_7(%arg0: i32) -> (i32, i32) {
    %c0_i32 = arith.constant 0 : i32
    %c0_i32_0 = arith.constant 0 : i32
    %c0_i32_1 = arith.constant 0 : i32
    return %c0_i32, %c0_i32_0 : i32, i32
  }
  func.func @transform_8(%arg0: i32) -> (i32, i32) {
    %c0_i32 = arith.constant 0 : i32
    %c0_i32_0 = arith.constant 0 : i32
    %c0_i32_1 = arith.constant 0 : i32
    return %c0_i32, %c0_i32_0 : i32, i32
  }
  func.func @transform_9(%arg0: i32) -> (i32, i32) {
    %c0_i32 = arith.constant 0 : i32
    %c0_i32_0 = arith.constant 0 : i32
    %c0_i32_1 = arith.constant 0 : i32
    return %c0_i32, %c0_i32_0 : i32, i32
  }
  func.func @transform_10(%arg0: i32) -> (i32, i32) {
    %c0_i32 = arith.constant 0 : i32
    %c0_i32_0 = arith.constant 0 : i32
    %c0_i32_1 = arith.constant 0 : i32
    return %c0_i32, %c0_i32_0 : i32, i32
  }
  func.func @transform_11(%arg0: i32) -> (i32, i32) {
    %c0_i32 = arith.constant 0 : i32
    %c0_i32_0 = arith.constant 0 : i32
    %c0_i32_1 = arith.constant 0 : i32
    return %c0_i32, %c0_i32_0 : i32, i32
  }
  func.func @transform_12(%arg0: i32) -> (i32, i32) {
    %c0_i32 = arith.constant 0 : i32
    %c0_i32_0 = arith.constant 0 : i32
    %c0_i32_1 = arith.constant 0 : i32
    return %c0_i32, %c0_i32_0 : i32, i32
  }
  func.func @transform_13(%arg0: i32) -> (i32, i32) {
    %c0_i32 = arith.constant 0 : i32
    %c0_i32_0 = arith.constant 0 : i32
    %c0_i32_1 = arith.constant 0 : i32
    return %c0_i32, %c0_i32_0 : i32, i32
  }
  func.func @transform_14(%arg0: i32) -> (i32, i32) {
    %c0_i32 = arith.constant 0 : i32
    %c0_i32_0 = arith.constant 0 : i32
    %c0_i32_1 = arith.constant 0 : i32
    return %c0_i32, %c0_i32_0 : i32, i32
  }
  func.func @transform_15(%arg0: i32) -> (i32, i32) {
    %c0_i32 = arith.constant 0 : i32
    %c0_i32_0 = arith.constant 0 : i32
    %c0_i32_1 = arith.constant 0 : i32
    return %c0_i32, %c0_i32_0 : i32, i32
  }
  func.func @transform_16(%arg0: i32) -> (i32, i32) {
    %c0_i32 = arith.constant 0 : i32
    %c0_i32_0 = arith.constant 0 : i32
    %c0_i32_1 = arith.constant 0 : i32
    return %c0_i32, %c0_i32_0 : i32, i32
  }
  func.func @transform_17(%arg0: i32) -> (i32, i32) {
    %c0_i32 = arith.constant 0 : i32
    %c0_i32_0 = arith.constant 0 : i32
    %c0_i32_1 = arith.constant 0 : i32
    return %c0_i32, %c0_i32_0 : i32, i32
  }
}

</mosaic_0001>

<bundles_post_ra>
// kernel: dqn_noisy_forward.1
= control target key start
LH: loop header
LB: loop body
LE: loop exit
PB: predicated region body
PF: predicated region fallthrough
CT: control target
= control target key end

     0   :  { %s4687_s0 = inlined_call_operand.vmem [shape: f32[8,512], index: 0, kind: input, shape index: {}]   ;;  %s4688_s1 = inlined_call_operand.hbm [shape: f32[512,512], index: 1, kind: input, shape index: {}]   ;;  %s4689_s2 = inlined_call_operand.vmem [shape: f32[1,512], index: 2, kind: input, shape index: {}]   ;;  %s4690_s3 = inlined_call_operand.hbm [shape: f32[512,512], index: 3, kind: input, shape index: {}]   ;;  %s4691_s4 = inlined_call_operand.hbm [shape: f32[512,512], index: 4, kind: input, shape index: {}]   ;;  %s4692_s5 = inlined_call_operand.vmem [shape: f32[1,512], index: 5, kind: input, shape index: {}]   ;;  %s4693_s6 = inlined_call_operand.vmem [shape: f32[1,512], index: 6, kind: input, shape index: {}]   ;;  %s4694_s7 = inlined_call_operand.vmem [shape: f32[1,512], index: 7, kind: input, shape index: {}]   ;;  %s4695_s8 = inlined_call_operand.vmem [shape: f32[1,512], index: 8, kind: input, shape index: {}]   ;;  %s4696_s9 = inlined_call_operand.vmem [shape: f32[1,512], index: 9, kind: input, shape index: {}]   ;;  %s4697_s10 = inlined_call_operand.hbm [shape: f32[512,384], index: 10, kind: input, shape index: {}]   ;;  %s4698_s11 = inlined_call_operand.hbm [shape: f32[512,384], index: 11, kind: input, shape index: {}]   ;;  %s4699_s12 = inlined_call_operand.vmem [shape: f32[1,512], index: 12, kind: input, shape index: {}]   ;;  %s4700_s13 = inlined_call_operand.vmem [shape: f32[1,384], index: 13, kind: input, shape index: {}]   ;;  %s4701_s14 = inlined_call_operand.vmem [shape: f32[1,384], index: 14, kind: input, shape index: {}]   ;;  %s4702_s15 = inlined_call_operand.vmem [shape: f32[1,384], index: 15, kind: input, shape index: {}]   ;;  %s4703_s16 = inlined_call_operand.vmem [shape: f32[1,384], index: 16, kind: input, shape index: {}]   ;;  %s4704_s17 = inlined_call_operand.vmem [shape: f32[8,384], index: 17, kind: output, shape index: {}]  }
   0x1   :  { %4712 = sst [smem:[#allocation13_spill]] %s4687_s0 }
   0x2   :  { %4713 = sst [smem:[#allocation14_spill]] %s4688_s1 }
   0x3   :  { %4714 = sst [smem:[#allocation15_spill]] %s4704_s17 }
   0x4   :  { %22 = vsyncpa [#allocation3], 0 }
   0x5   :  { %23 = vsyncpa [#allocation5], 0 }
   0x6   :  { %24 = vsyncpa [#allocation8], 0  ;;  %s4331_s24 = smov [#allocation4]   ;;  %s4332_s26 = smov [#allocation7]  }
   0x7   :  { %s46_s25 = sshll.u32 %s4331_s24, 4  ;;  %s80_s27 = sshll.u32 %s4332_s26, 4  ;;  %s47_s25 = int_to_ptr.vmem [resolvable:$true] %s46_s25  ;;  %s4430_s27 = int_to_ptr.vmem [resolvable:$true] %s80_s27 }
   0x8   :  { %s4215_s0 = scalar_lea.hbm %s4690_s3, 32768 }
   0x9   :  { %p4216_p0 = scmp.ne.s32.totalorder %s4690_s3, %s4215_s0  ;;  %p4219_p1 = scmp.lt.u32.totalorder %s4215_s0, %s4690_s3 }
   0xb   :  { %p4221_p2 = pnand %p4219_p1, %p4216_p0 }
   0xd   :  { %4224 = shalt.err (!%p4221_p2)
}
   0xe   :  { %s4225_s20 = scalar_lea.vmem %s47_s25, 32768  ;;  %p4230_p4 = scmp.lt.s32.totalorder %s47_s25, %s47_s25 }
   0xf   :  { %p4226_p3 = scmp.ne.s32.totalorder %s47_s25, %s4225_s20  ;;  %p4231_p5 = scmp.lt.s32.totalorder %s4225_s20, %s4225_s20 }
  0x11   :  { %p4232_p6 = por %p4231_p5, %p4230_p4 }
  0x13   :  { %p4233_p7 = pnand %p4232_p6, %p4226_p3 }
  0x15   :  { %4236 = shalt.err (!%p4233_p7)
}
  0x16   :  { %s4707_s21 = smov 512   ;;  %s4709_s22 = smov 32  }
  0x17   :  { %52 = dma.hbm_to_vmem [thread:$0]  %s4690_s3, 32768, %s47_s25, [#allocation5], %s4707_s21, %s4707_s21, %s4709_s22  }
  0x18   :  { %s4237_s29 = scalar_lea.hbm %s4697_s10, 24576 }
  0x19   :  { %p4238_p8 = scmp.ne.s32.totalorder %s4697_s10, %s4237_s29  ;;  %p4241_p9 = scmp.lt.u32.totalorder %s4237_s29, %s4697_s10 }
  0x1b   :  { %p4243_p10 = pnand %p4241_p9, %p4238_p8 }
  0x1d   :  { %4246 = shalt.err (!%p4243_p10)
}
  0x1e   :  { %s4247_s1 = scalar_lea.vmem %s4430_s27, 24576  ;;  %p4252_p12 = scmp.lt.s32.totalorder %s4430_s27, %s4430_s27 }
  0x1f   :  { %p4248_p11 = scmp.ne.s32.totalorder %s4430_s27, %s4247_s1  ;;  %p4253_p13 = scmp.lt.s32.totalorder %s4247_s1, %s4247_s1 }
  0x21   :  { %p4254_p0 = por %p4253_p13, %p4252_p12 }
  0x23   :  { %p4255_p1 = pnand %p4254_p0, %p4248_p11 }
  0x25   :  { %4258 = shalt.err (!%p4255_p1)
}
  0x26   :  { %s4335_s3 = smov 384   ;;  %s4336_s25 = smov 24  }
  0x27   :  { %86 = dma.hbm_to_vmem [thread:$0]  %s4697_s10, 24576, %s4430_s27, [#allocation8], %s4335_s3, %s4335_s3, %s4336_s25  }
  0x28   :  { %s4337_s24 = smov [#allocation2]   ;;  %s4338_s28 = smov [#allocation6]  }
  0x29   :  { %s32_s26 = sshll.u32 %s4337_s24, 4  ;;  %s58_s29 = sshll.u32 %s4338_s28, 4  ;;  %s33_s26 = int_to_ptr.vmem [resolvable:$true] %s32_s26  ;;  %s4467_s29 = int_to_ptr.vmem [resolvable:$true] %s58_s29 }
  0x2a   :  { %s4715_s18 = sld [smem:[#allocation14_spill]] }
  0x30   :  { %s4259_s19 = scalar_lea.hbm %s4715_s18, 32768 }
  0x31   :  { %p4260_p2 = scmp.ne.s32.totalorder %s4715_s18, %s4259_s19  ;;  %p4263_p3 = scmp.lt.u32.totalorder %s4259_s19, %s4715_s18 }
  0x33   :  { %p4265_p4 = pnand %p4263_p3, %p4260_p2 }
  0x35   :  { %4268 = shalt.err (!%p4265_p4)
}
  0x36   :  { %s4269_s10 = scalar_lea.vmem %s33_s26, 32768  ;;  %p4274_p6 = scmp.lt.s32.totalorder %s33_s26, %s33_s26 }
  0x37   :  { %p4270_p5 = scmp.ne.s32.totalorder %s33_s26, %s4269_s10  ;;  %p4275_p7 = scmp.lt.s32.totalorder %s4269_s10, %s4269_s10 }
  0x39   :  { %p4276_p8 = por %p4275_p7, %p4274_p6 }
  0x3b   :  { %p4277_p9 = pnand %p4276_p8, %p4270_p5 }
  0x3d   :  { %4280 = shalt.err (!%p4277_p9)
}
  0x3e   :  { %s4716_s27 = smov 32   ;;  %s4717_s20 = smov 512  }
  0x3f   :  { %38 = dma.hbm_to_vmem [thread:$0]  %s4715_s18, 32768, %s33_s26, [#allocation3], %s4717_s20, %s4717_s20, %s4716_s27  }
  0x40   :  { %s4281_s17 = scalar_lea.hbm %s4691_s4, 32768 }
  0x41   :  { %p4282_p10 = scmp.ne.s32.totalorder %s4691_s4, %s4281_s17  ;;  %p4285_p11 = scmp.lt.u32.totalorder %s4281_s17, %s4691_s4 }
  0x43   :  { %p4287_p12 = pnand %p4285_p11, %p4282_p10 }
  0x45   :  { %4290 = shalt.err (!%p4287_p12)
}
  0x46   :  { %s4291_s1 = scalar_lea.vmem %s4467_s29, 32768  ;;  %p4296_p0 = scmp.lt.s32.totalorder %s4467_s29, %s4467_s29 }
  0x47   :  { %p4292_p13 = scmp.ne.s32.totalorder %s4467_s29, %s4291_s1  ;;  %p4297_p1 = scmp.lt.s32.totalorder %s4291_s1, %s4291_s1 }
  0x49   :  { %p4298_p2 = por %p4297_p1, %p4296_p0 }
  0x4b   :  { %p4299_p3 = pnand %p4298_p2, %p4292_p13 }
  0x4d   :  { %4302 = shalt.err (!%p4299_p3)
}
  0x4e   :  { %64 = dma.hbm_to_vmem [thread:$0]  %s4691_s4, 32768, %s4467_s29, [#allocation5], %s4717_s20, %s4717_s20, %s4716_s27  }
  0x4f   :  { %s4339_s10 = smov [#allocation9]   ;;  %s4303_s28 = scalar_lea.hbm %s4698_s11, 24576 }
  0x50   :  { %s92_s23 = sshll.u32 %s4339_s10, 4  ;;  %p4304_p4 = scmp.ne.s32.totalorder %s4698_s11, %s4303_s28  ;;  %s93_s23 = int_to_ptr.vmem [resolvable:$true] %s92_s23 }
  0x51   :  { %p4307_p5 = scmp.lt.u32.totalorder %s4303_s28, %s4698_s11 }
  0x53   :  { %p4309_p6 = pnand %p4307_p5, %p4304_p4 }
  0x55   :  { %4312 = shalt.err (!%p4309_p6)
}
  0x56   :  { %s4313_s19 = scalar_lea.vmem %s93_s23, 24576  ;;  %p4318_p8 = scmp.lt.s32.totalorder %s93_s23, %s93_s23 }
  0x57   :  { %p4314_p7 = scmp.ne.s32.totalorder %s93_s23, %s4313_s19  ;;  %p4319_p9 = scmp.lt.s32.totalorder %s4313_s19, %s4313_s19 }
  0x59   :  { %p4320_p10 = por %p4319_p9, %p4318_p8 }
  0x5b   :  { %p4321_p11 = pnand %p4320_p10, %p4314_p7 }
  0x5d   :  { %4324 = shalt.err (!%p4321_p11)
}
  0x5e   :  { %98 = dma.hbm_to_vmem [thread:$0]  %s4698_s11, 24576, %s93_s23, [#allocation8], %s4335_s3, %s4335_s3, %s4336_s25  }
  0x5f   :  { %4325 = dma.done.wait [#allocation3], 32768  }
  0x60   :  { %4326 = vsyncadd [#allocation3], 4294934528 }
  0x61   :  { %4327 = dma.done.wait [#allocation5], 65536  }
  0x62   :  { %4328 = vsyncadd [#allocation5], 4294901760 }
  0x63   :  { %4329 = dma.done.wait [#allocation8], 49152  }
  0x64   :  { %4330 = vsyncadd [#allocation8], 4294918144  ;;  %v129_v0 = vld [vmem:[#allocation2 + $0x8] sm:$0xff]  ;;  %v131_v2 = vld [vmem:[#allocation2 + $0x18] sm:$0xff]  ;;  %s4718_s25 = sld [smem:[#allocation13_spill]] }
  0x65   :  { %v133_v1 = vld [vmem:[#allocation2 + $0x28] sm:$0xff]  ;;  %v135_v4 = vld [vmem:[#allocation2 + $0x38] sm:$0xff]  ;;  %v128_v5 = vld [vmem:[#allocation2] sm:$0xff] }
  0x66   :  { %v3028_v3 = vpack.c.bf16 %v133_v1, %v129_v0  ;;  %v132_v6 = vld [vmem:[#allocation2 + $0x20] sm:$0xff]  ;;  %v3156_v7 = vpack.c.bf16 %v135_v4, %v131_v2  ;;  %v130_v9 = vld [vmem:[#allocation2 + $0x10] sm:$0xff]  ;;  %v137_v11 = vld [vmem:[#allocation2 + $0x48] sm:$0xff] }
  0x67   :  { %v3030_v8 = vpack.c.bf16 %v132_v6, %v128_v5  ;;  %v134_v10 = vld [vmem:[#allocation2 + $0x30] sm:$0xff]  ;;  %v141_v13 = vld [vmem:[#allocation2 + $0x68] sm:$0xff]  ;;  %v139_v14 = vld [vmem:[#allocation2 + $0x58] sm:$0xff] }
  0x68   :  { %3029 = vmatprep.subr.bf16.mxu0 %v3028_v3  ;;  %v3158_v12 = vpack.c.bf16 %v134_v10, %v130_v9  ;;  %v143_v15 = vld [vmem:[#allocation2 + $0x78] sm:$0xff]  ;;  %3157 = vmatprep.subr.bf16.mxu1 %v3156_v7  ;;  %v3032_v16 = vpack.c.bf16 %v141_v13, %v137_v11  ;;  %v136_v18 = vld [vmem:[#allocation2 + $0x40] sm:$0xff]  ;;  %v138_v20 = vld [vmem:[#allocation2 + $0x50] sm:$0xff] }
  0x69   :  { %3031 = vmatpush1.bf16.msra.mxu0 %v3030_v8  ;;  %v3160_v17 = vpack.c.bf16 %v143_v15, %v139_v14  ;;  %v140_v19 = vld [vmem:[#allocation2 + $0x60] sm:$0xff]  ;;  %v142_v22 = vld [vmem:[#allocation2 + $0x70] sm:$0xff]  ;;  %v145_v23 = vld [vmem:[#allocation2 + $0x88] sm:$0xff] }
  0x6a   :  { %3159 = vmatpush1.bf16.msra.mxu1 %v3158_v12  ;;  %v3034_v21 = vpack.c.bf16 %v140_v19, %v136_v18  ;;  %v149_v24 = vld [vmem:[#allocation2 + $0xa8] sm:$0xff]  ;;  %3033 = vmatprep.subr.bf16.mxu0 %v3032_v16  ;;  %v3162_v25 = vpack.c.bf16 %v142_v22, %v138_v20  ;;  %v147_v27 = vld [vmem:[#allocation2 + $0x98] sm:$0xff]  ;;  %v144_v29 = vld [vmem:[#allocation2 + $0x80] sm:$0xff] }
  0x6b   :  { %3161 = vmatprep.subr.bf16.mxu1 %v3160_v17  ;;  %v3036_v26 = vpack.c.bf16 %v149_v24, %v145_v23  ;;  %v151_v28 = vld [vmem:[#allocation2 + $0xb8] sm:$0xff]  ;;  %v148_v31 = vld [vmem:[#allocation2 + $0xa0] sm:$0xff]  ;;  %v146_v32 = vld [vmem:[#allocation2 + $0x90] sm:$0xff] }
  0x6c   :  { %v3164_v30 = vpack.c.bf16 %v151_v28, %v147_v27  ;;  %v150_v33 = vld [vmem:[#allocation2 + $0xb0] sm:$0xff]  ;;  %v3038_v34 = vpack.c.bf16 %v148_v31, %v144_v29  ;;  %v153_v35 = vld [vmem:[#allocation2 + $0xc8] sm:$0xff]  ;;  %v155_v37 = vld [vmem:[#allocation2 + $0xd8] sm:$0xff] }
  0x6d   :  { %3035 = vmatpush1.bf16.msra.mxu0 %v3034_v21  ;;  %v157_v36 = vld [vmem:[#allocation2 + $0xe8] sm:$0xff]  ;;  %v3166_v38 = vpack.c.bf16 %v150_v33, %v146_v32  ;;  %v159_v40 = vld [vmem:[#allocation2 + $0xf8] sm:$0xff]  ;;  %v152_v41 = vld [vmem:[#allocation2 + $0xc0] sm:$0xff] }
  0x6e   :  { %3163 = vmatpush1.bf16.msra.mxu1 %v3162_v25  ;;  %3037 = vmatprep.subr.bf16.mxu0 %v3036_v26  ;;  %v3040_v39 = vpack.c.bf16 %v157_v36, %v153_v35  ;;  %v156_v42 = vld [vmem:[#allocation2 + $0xe0] sm:$0xff]  ;;  %v3168_v43 = vpack.c.bf16 %v159_v40, %v155_v37  ;;  %v154_v44 = vld [vmem:[#allocation2 + $0xd0] sm:$0xff]  ;;  %v161_v46 = vld [vmem:[#allocation2 + $0x108] sm:$0xff] }
  0x6f   :  { %3165 = vmatprep.subr.bf16.mxu1 %v3164_v30  ;;  %v158_v45 = vld [vmem:[#allocation2 + $0xf0] sm:$0xff]  ;;  %v165_v47 = vld [vmem:[#allocation2 + $0x128] sm:$0xff]  ;;  %v163_v48 = vld [vmem:[#allocation2 + $0x118] sm:$0xff]  ;;  %v3042_v50 = vpack.c.bf16 %v156_v42, %v152_v41 }
  0x70   :  { %v167_v49 = vld [vmem:[#allocation2 + $0x138] sm:$0xff]  ;;  %v3170_v51 = vpack.c.bf16 %v158_v45, %v154_v44  ;;  %v3044_v52 = vpack.c.bf16 %v165_v47, %v161_v46  ;;  %v160_v53 = vld [vmem:[#allocation2 + $0x100] sm:$0xff]  ;;  %v162_v55 = vld [vmem:[#allocation2 + $0x110] sm:$0xff] }
  0x71   :  { %3039 = vmatpush1.bf16.msra.mxu0 %v3038_v34  ;;  %v164_v54 = vld [vmem:[#allocation2 + $0x120] sm:$0xff]  ;;  %v3172_v56 = vpack.c.bf16 %v167_v49, %v163_v48  ;;  %v166_v57 = vld [vmem:[#allocation2 + $0x130] sm:$0xff]  ;;  %v169_v58 = vld [vmem:[#allocation2 + $0x148] sm:$0xff] }
  0x72   :  { %3167 = vmatpush1.bf16.msra.mxu1 %v3166_v38  ;;  %3041 = vmatprep.subr.bf16.mxu0 %v3040_v39  ;;  %v173_v59 = vld [vmem:[#allocation2 + $0x168] sm:$0xff]  ;;  %v171_v60 = vld [vmem:[#allocation2 + $0x158] sm:$0xff]  ;;  %v3046_v62 = vpack.c.bf16 %v164_v54, %v160_v53  ;;  %v3174_v63 = vpack.c.bf16 %v166_v57, %v162_v55  ;;  %v168_v1 = vld [vmem:[#allocation2 + $0x140] sm:$0xff] }
  0x73   :  { %3169 = vmatprep.subr.bf16.mxu1 %v3168_v43  ;;  %v175_v61 = vld [vmem:[#allocation2 + $0x178] sm:$0xff]  ;;  %v3048_v0 = vpack.c.bf16 %v173_v59, %v169_v58  ;;  %v172_v2 = vld [vmem:[#allocation2 + $0x160] sm:$0xff]  ;;  %v170_v3 = vld [vmem:[#allocation2 + $0x150] sm:$0xff] }
  0x74   :  { %v3176_v4 = vpack.c.bf16 %v175_v61, %v171_v60  ;;  %v174_v5 = vld [vmem:[#allocation2 + $0x170] sm:$0xff]  ;;  %v177_v6 = vld [vmem:[#allocation2 + $0x188] sm:$0xff]  ;;  %v179_v8 = vld [vmem:[#allocation2 + $0x198] sm:$0xff]  ;;  %v3050_v10 = vpack.c.bf16 %v172_v2, %v168_v1 }
  0x75   :  { %3043 = vmatpush1.bf16.msra.mxu0 %v3042_v50  ;;  %v181_v7 = vld [vmem:[#allocation2 + $0x1a8] sm:$0xff]  ;;  %v183_v9 = vld [vmem:[#allocation2 + $0x1b8] sm:$0xff]  ;;  %v3178_v11 = vpack.c.bf16 %v174_v5, %v170_v3  ;;  %v176_v13 = vld [vmem:[#allocation2 + $0x180] sm:$0xff] }
  0x76   :  { %3171 = vmatpush1.bf16.msra.mxu1 %v3170_v51  ;;  %3045 = vmatprep.subr.bf16.mxu0 %v3044_v52  ;;  %v3052_v12 = vpack.c.bf16 %v181_v7, %v177_v6  ;;  %v180_v14 = vld [vmem:[#allocation2 + $0x1a0] sm:$0xff]  ;;  %v178_v15 = vld [vmem:[#allocation2 + $0x190] sm:$0xff]  ;;  %v3180_v16 = vpack.c.bf16 %v183_v9, %v179_v8  ;;  %v185_v18 = vld [vmem:[#allocation2 + $0x1c8] sm:$0xff] }
  0x77   :  { %3173 = vmatprep.subr.bf16.mxu1 %v3172_v56  ;;  %v182_v17 = vld [vmem:[#allocation2 + $0x1b0] sm:$0xff]  ;;  %v189_v19 = vld [vmem:[#allocation2 + $0x1e8] sm:$0xff]  ;;  %v187_v20 = vld [vmem:[#allocation2 + $0x1d8] sm:$0xff]  ;;  %v3054_v22 = vpack.c.bf16 %v180_v14, %v176_v13 }
  0x78   :  { %v191_v21 = vld [vmem:[#allocation2 + $0x1f8] sm:$0xff]  ;;  %v3182_v23 = vpack.c.bf16 %v182_v17, %v178_v15  ;;  %v3056_v24 = vpack.c.bf16 %v189_v19, %v185_v18  ;;  %v184_v25 = vld [vmem:[#allocation2 + $0x1c0] sm:$0xff]  ;;  %v186_v27 = vld [vmem:[#allocation2 + $0x1d0] sm:$0xff] }
  0x79   :  { %3047 = vmatpush1.bf16.msra.mxu0 %v3046_v62  ;;  %v188_v26 = vld [vmem:[#allocation2 + $0x1e0] sm:$0xff]  ;;  %v3184_v28 = vpack.c.bf16 %v191_v21, %v187_v20  ;;  %v190_v29 = vld [vmem:[#allocation2 + $0x1f0] sm:$0xff]  ;;  %v193_v30 = vld [vmem:[#allocation2 + $0x208] sm:$0xff] }
  0x7a   :  { %3175 = vmatpush1.bf16.msra.mxu1 %v3174_v63  ;;  %3049 = vmatprep.subr.bf16.mxu0 %v3048_v0  ;;  %v197_v31 = vld [vmem:[#allocation2 + $0x228] sm:$0xff]  ;;  %v195_v32 = vld [vmem:[#allocation2 + $0x218] sm:$0xff]  ;;  %v3058_v34 = vpack.c.bf16 %v188_v26, %v184_v25  ;;  %v3186_v35 = vpack.c.bf16 %v190_v29, %v186_v27  ;;  %v192_v37 = vld [vmem:[#allocation2 + $0x200] sm:$0xff] }
  0x7b   :  { %3177 = vmatprep.subr.bf16.mxu1 %v3176_v4  ;;  %v199_v33 = vld [vmem:[#allocation2 + $0x238] sm:$0xff]  ;;  %v3060_v36 = vpack.c.bf16 %v197_v31, %v193_v30  ;;  %v196_v38 = vld [vmem:[#allocation2 + $0x220] sm:$0xff]  ;;  %v194_v39 = vld [vmem:[#allocation2 + $0x210] sm:$0xff] }
  0x7c   :  { %v3188_v40 = vpack.c.bf16 %v199_v33, %v195_v32  ;;  %v198_v41 = vld [vmem:[#allocation2 + $0x230] sm:$0xff]  ;;  %v201_v42 = vld [vmem:[#allocation2 + $0x248] sm:$0xff]  ;;  %v203_v44 = vld [vmem:[#allocation2 + $0x258] sm:$0xff]  ;;  %v3062_v46 = vpack.c.bf16 %v196_v38, %v192_v37 }
  0x7d   :  { %3051 = vmatpush1.bf16.msra.mxu0 %v3050_v10  ;;  %v205_v43 = vld [vmem:[#allocation2 + $0x268] sm:$0xff]  ;;  %v207_v45 = vld [vmem:[#allocation2 + $0x278] sm:$0xff]  ;;  %v3190_v47 = vpack.c.bf16 %v198_v41, %v194_v39  ;;  %v200_v49 = vld [vmem:[#allocation2 + $0x240] sm:$0xff] }
  0x7e   :  { %3179 = vmatpush1.bf16.msra.mxu1 %v3178_v11  ;;  %3053 = vmatprep.subr.bf16.mxu0 %v3052_v12  ;;  %v3064_v48 = vpack.c.bf16 %v205_v43, %v201_v42  ;;  %v204_v50 = vld [vmem:[#allocation2 + $0x260] sm:$0xff]  ;;  %v202_v51 = vld [vmem:[#allocation2 + $0x250] sm:$0xff]  ;;  %v3192_v52 = vpack.c.bf16 %v207_v45, %v203_v44  ;;  %v209_v54 = vld [vmem:[#allocation2 + $0x288] sm:$0xff] }
  0x7f   :  { %3181 = vmatprep.subr.bf16.mxu1 %v3180_v16  ;;  %v206_v53 = vld [vmem:[#allocation2 + $0x270] sm:$0xff]  ;;  %v213_v55 = vld [vmem:[#allocation2 + $0x2a8] sm:$0xff]  ;;  %v211_v56 = vld [vmem:[#allocation2 + $0x298] sm:$0xff]  ;;  %v3066_v58 = vpack.c.bf16 %v204_v50, %v200_v49 }
  0x80   :  { %v215_v57 = vld [vmem:[#allocation2 + $0x2b8] sm:$0xff]  ;;  %v3194_v59 = vpack.c.bf16 %v206_v53, %v202_v51  ;;  %v3068_v60 = vpack.c.bf16 %v213_v55, %v209_v54  ;;  %v208_v61 = vld [vmem:[#allocation2 + $0x280] sm:$0xff]  ;;  %v210_v63 = vld [vmem:[#allocation2 + $0x290] sm:$0xff] }
  0x81   :  { %3055 = vmatpush1.bf16.msra.mxu0 %v3054_v22  ;;  %v212_v62 = vld [vmem:[#allocation2 + $0x2a0] sm:$0xff]  ;;  %v3196_v0 = vpack.c.bf16 %v215_v57, %v211_v56  ;;  %v214_v1 = vld [vmem:[#allocation2 + $0x2b0] sm:$0xff]  ;;  %v217_v2 = vld [vmem:[#allocation2 + $0x2c8] sm:$0xff] }
  0x82   :  { %3183 = vmatpush1.bf16.msra.mxu1 %v3182_v23  ;;  %3057 = vmatprep.subr.bf16.mxu0 %v3056_v24  ;;  %v221_v3 = vld [vmem:[#allocation2 + $0x2e8] sm:$0xff]  ;;  %v219_v4 = vld [vmem:[#allocation2 + $0x2d8] sm:$0xff]  ;;  %v3070_v6 = vpack.c.bf16 %v212_v62, %v208_v61  ;;  %v216_v7 = vld [vmem:[#allocation2 + $0x2c0] sm:$0xff]  ;;  %v3198_v8 = vpack.c.bf16 %v214_v1, %v210_v63 }
  0x83   :  { %3185 = vmatprep.subr.bf16.mxu1 %v3184_v28  ;;  %v223_v5 = vld [vmem:[#allocation2 + $0x2f8] sm:$0xff]  ;;  %v3072_v9 = vpack.c.bf16 %v221_v3, %v217_v2  ;;  %v220_v10 = vld [vmem:[#allocation2 + $0x2e0] sm:$0xff]  ;;  %v218_v11 = vld [vmem:[#allocation2 + $0x2d0] sm:$0xff] }
  0x84   :  { %v222_v12 = vld [vmem:[#allocation2 + $0x2f0] sm:$0xff]  ;;  %v3200_v13 = vpack.c.bf16 %v223_v5, %v219_v4  ;;  %v225_v14 = vld [vmem:[#allocation2 + $0x308] sm:$0xff]  ;;  %v227_v17 = vld [vmem:[#allocation2 + $0x318] sm:$0xff]  ;;  %v3074_v19 = vpack.c.bf16 %v220_v10, %v216_v7 }
  0x85   :  { %3059 = vmatpush1.bf16.msra.mxu0 %v3058_v34  ;;  %v229_v15 = vld [vmem:[#allocation2 + $0x328] sm:$0xff]  ;;  %v231_v18 = vld [vmem:[#allocation2 + $0x338] sm:$0xff]  ;;  %v3202_v20 = vpack.c.bf16 %v222_v12, %v218_v11  ;;  %v224_v22 = vld [vmem:[#allocation2 + $0x300] sm:$0xff] }
  0x86   :  { %3187 = vmatpush1.bf16.msra.mxu1 %v3186_v35  ;;  %3061 = vmatprep.subr.bf16.mxu0 %v3060_v36  ;;  %v125_v16 = vld [vmem:[%s4718_s25 + $0x8] sm:$0xff]  ;;  %v3076_v21 = vpack.c.bf16 %v229_v15, %v225_v14  ;;  %v228_v23 = vld [vmem:[#allocation2 + $0x320] sm:$0xff]  ;;  %v226_v24 = vld [vmem:[#allocation2 + $0x310] sm:$0xff]  ;;  %v3204_v25 = vpack.c.bf16 %v231_v18, %v227_v17 }
  0x87   :  { %3189 = vmatprep.subr.bf16.mxu1 %v3188_v40  ;;  %470 = vmatprep.mubr.f32.mxu0 %v125_v16  ;;  %v230_v26 = vld [vmem:[#allocation2 + $0x330] sm:$0xff]  ;;  %v233_v27 = vld [vmem:[#allocation2 + $0x348] sm:$0xff]  ;;  %v235_v29 = vld [vmem:[#allocation2 + $0x358] sm:$0xff]  ;;  %v3078_v31 = vpack.c.bf16 %v228_v23, %v224_v22 }
  0x88   :  { %612 = vmatprep.mubr.f32.mxu1 %v125_v16  ;;  %v237_v28 = vld [vmem:[#allocation2 + $0x368] sm:$0xff]  ;;  %v239_v30 = vld [vmem:[#allocation2 + $0x378] sm:$0xff]  ;;  %v3206_v32 = vpack.c.bf16 %v230_v26, %v226_v24  ;;  %v232_v34 = vld [vmem:[#allocation2 + $0x340] sm:$0xff] }
  0x89   :  { %3063 = vmatpush1.bf16.msra.mxu0 %v3062_v46  ;;  %v3080_v33 = vpack.c.bf16 %v237_v28, %v233_v27  ;;  %v236_v35 = vld [vmem:[#allocation2 + $0x360] sm:$0xff]  ;;  %v234_v36 = vld [vmem:[#allocation2 + $0x350] sm:$0xff]  ;;  %v3208_v37 = vpack.c.bf16 %v239_v30, %v235_v29  ;;  %v241_v39 = vld [vmem:[#allocation2 + $0x388] sm:$0xff] }
  0x8a   :  { %3191 = vmatpush1.bf16.msra.mxu1 %v3190_v47  ;;  %3065 = vmatprep.subr.bf16.mxu0 %v3064_v48  ;;  %v238_v38 = vld [vmem:[#allocation2 + $0x370] sm:$0xff]  ;;  %v245_v40 = vld [vmem:[#allocation2 + $0x3a8] sm:$0xff]  ;;  %v243_v41 = vld [vmem:[#allocation2 + $0x398] sm:$0xff]  ;;  %v3082_v43 = vpack.c.bf16 %v236_v35, %v232_v34 }
  0x8b   :  { %3193 = vmatprep.subr.bf16.mxu1 %v3192_v52  ;;  %v247_v42 = vld [vmem:[#allocation2 + $0x3b8] sm:$0xff]  ;;  %v3210_v44 = vpack.c.bf16 %v238_v38, %v234_v36  ;;  %v3084_v45 = vpack.c.bf16 %v245_v40, %v241_v39  ;;  %v240_v46 = vld [vmem:[#allocation2 + $0x380] sm:$0xff]  ;;  %v242_v48 = vld [vmem:[#allocation2 + $0x390] sm:$0xff] }
  0x8c   :  { %v244_v47 = vld [vmem:[#allocation2 + $0x3a0] sm:$0xff]  ;;  %v3212_v49 = vpack.c.bf16 %v247_v42, %v243_v41  ;;  %v246_v50 = vld [vmem:[#allocation2 + $0x3b0] sm:$0xff]  ;;  %v249_v51 = vld [vmem:[#allocation2 + $0x3c8] sm:$0xff] }
  0x8d   :  { %3067 = vmatpush1.bf16.msra.mxu0 %v3066_v58  ;;  %v253_v52 = vld [vmem:[#allocation2 + $0x3e8] sm:$0xff]  ;;  %v251_v53 = vld [vmem:[#allocation2 + $0x3d8] sm:$0xff]  ;;  %v3086_v55 = vpack.c.bf16 %v244_v47, %v240_v46  ;;  %v3214_v56 = vpack.c.bf16 %v246_v50, %v242_v48  ;;  %v248_v58 = vld [vmem:[#allocation2 + $0x3c0] sm:$0xff] }
  0x8e   :  { %3195 = vmatpush1.bf16.msra.mxu1 %v3194_v59  ;;  %3069 = vmatprep.subr.bf16.mxu0 %v3068_v60  ;;  %v255_v54 = vld [vmem:[#allocation2 + $0x3f8] sm:$0xff]  ;;  %v3088_v57 = vpack.c.bf16 %v253_v52, %v249_v51  ;;  %v252_v59 = vld [vmem:[#allocation2 + $0x3e0] sm:$0xff]  ;;  %v250_v60 = vld [vmem:[#allocation2 + $0x3d0] sm:$0xff] }
  0x8f   :  { %3197 = vmatprep.subr.bf16.mxu1 %v3196_v0  ;;  %v3216_v61 = vpack.c.bf16 %v255_v54, %v251_v53  ;;  %v254_v62 = vld [vmem:[#allocation2 + $0x3f0] sm:$0xff]  ;;  %v257_v63 = vld [vmem:[#allocation2 + $0x408] sm:$0xff]  ;;  %v259_v1 = vld [vmem:[#allocation2 + $0x418] sm:$0xff]  ;;  %v3090_v3 = vpack.c.bf16 %v252_v59, %v248_v58 }
  0x90   :  { %v261_v0 = vld [vmem:[#allocation2 + $0x428] sm:$0xff]  ;;  %v263_v2 = vld [vmem:[#allocation2 + $0x438] sm:$0xff]  ;;  %v3218_v4 = vpack.c.bf16 %v254_v62, %v250_v60  ;;  %v260_v7 = vld [vmem:[#allocation2 + $0x420] sm:$0xff] }
  0x91   :  { %3071 = vmatpush1.bf16.msra.mxu0 %v3070_v6  ;;  %v3092_v5 = vpack.c.bf16 %v261_v0, %v257_v63  ;;  %v256_v6 = vld [vmem:[#allocation2 + $0x400] sm:$0xff]  ;;  %v262_v10 = vld [vmem:[#allocation2 + $0x430] sm:$0xff]  ;;  %v265_v11 = vld [vmem:[#allocation2 + $0x448] sm:$0xff] }
  0x92   :  { %3199 = vmatpush1.bf16.msra.mxu1 %v3198_v8  ;;  %3073 = vmatprep.subr.bf16.mxu0 %v3072_v9  ;;  %v258_v8 = vld [vmem:[#allocation2 + $0x410] sm:$0xff]  ;;  %v3220_v9 = vpack.c.bf16 %v263_v2, %v259_v1  ;;  %v269_v12 = vld [vmem:[#allocation2 + $0x468] sm:$0xff]  ;;  %v271_v14 = vld [vmem:[#allocation2 + $0x478] sm:$0xff]  ;;  %v3094_v16 = vpack.c.bf16 %v260_v7, %v256_v6 }
  0x93   :  { %3201 = vmatprep.subr.bf16.mxu1 %v3200_v13  ;;  %v267_v13 = vld [vmem:[#allocation2 + $0x458] sm:$0xff]  ;;  %v124_v15 = vld [vmem:[%s4718_s25] sm:$0xff]  ;;  %v3222_v17 = vpack.c.bf16 %v262_v10, %v258_v8  ;;  %v3096_v18 = vpack.c.bf16 %v269_v12, %v265_v11  ;;  %v270_v23 = vld [vmem:[#allocation2 + $0x470] sm:$0xff] }
  0x94   :  { %v3224_v22 = vpack.c.bf16 %v271_v14, %v267_v13  ;;  %v273_v24 = vld [vmem:[#allocation2 + $0x488] sm:$0xff]  ;;  %v275_v26 = vld [vmem:[#allocation2 + $0x498] sm:$0xff]  ;;  %v278_v35 = vld [vmem:[#allocation2 + $0x4b0] sm:$0xff] }
  0x95   :  { %3075 = vmatpush1.bf16.msra.mxu0 %v3074_v19  ;;  %v264_v19 = vld [vmem:[#allocation2 + $0x440] sm:$0xff]  ;;  %v279_v27 = vld [vmem:[#allocation2 + $0x4b8] sm:$0xff]  ;;  %v281_v36 = vld [vmem:[#allocation2 + $0x4c8] sm:$0xff] }
  0x96   :  { %3203 = vmatpush1.bf16.msra.mxu1 %v3202_v20  ;;  %3077 = vmatprep.subr.bf16.mxu0 %v3076_v21  ;;  %v268_v20 = vld [vmem:[#allocation2 + $0x460] sm:$0xff]  ;;  %v266_v21 = vld [vmem:[#allocation2 + $0x450] sm:$0xff]  ;;  %v3228_v34 = vpack.c.bf16 %v279_v27, %v275_v26  ;;  %v283_v38 = vld [vmem:[#allocation2 + $0x4d8] sm:$0xff] }
  0x97   :  { %3205 = vmatprep.subr.bf16.mxu1 %v3204_v25  ;;  %v277_v25 = vld [vmem:[#allocation2 + $0x4a8] sm:$0xff]  ;;  %v3098_v28 = vpack.c.bf16 %v268_v20, %v264_v19  ;;  %v3226_v29 = vpack.c.bf16 %v270_v23, %v266_v21  ;;  %v287_v39 = vld [vmem:[#allocation2 + $0x4f8] sm:$0xff]  ;;  %v286_v47 = vld [vmem:[#allocation2 + $0x4f0] sm:$0xff] }
  0x98   :  { %v3100_v30 = vpack.c.bf16 %v277_v25, %v273_v24  ;;  %v3232_v46 = vpack.c.bf16 %v287_v39, %v283_v38  ;;  %v289_v48 = vld [vmem:[#allocation2 + $0x508] sm:$0xff]  ;;  %v291_v50 = vld [vmem:[#allocation2 + $0x518] sm:$0xff]  ;;  %v294_v59 = vld [vmem:[#allocation2 + $0x530] sm:$0xff] }
  0x99   :  { %3079 = vmatpush1.bf16.msra.mxu0 %v3078_v31  ;;  %v272_v31 = vld [vmem:[#allocation2 + $0x480] sm:$0xff]  ;;  %v295_v51 = vld [vmem:[#allocation2 + $0x538] sm:$0xff]  ;;  %v297_v60 = vld [vmem:[#allocation2 + $0x548] sm:$0xff] }
  0x9a   :  { %3207 = vmatpush1.bf16.msra.mxu1 %v3206_v32  ;;  %3081 = vmatprep.subr.bf16.mxu0 %v3080_v33  ;;  %v276_v32 = vld [vmem:[#allocation2 + $0x4a0] sm:$0xff]  ;;  %v274_v33 = vld [vmem:[#allocation2 + $0x490] sm:$0xff]  ;;  %v3236_v58 = vpack.c.bf16 %v295_v51, %v291_v50  ;;  %v299_v62 = vld [vmem:[#allocation2 + $0x558] sm:$0xff] }
  0x9b   :  { %3209 = vmatprep.subr.bf16.mxu1 %v3208_v37  ;;  %v285_v37 = vld [vmem:[#allocation2 + $0x4e8] sm:$0xff]  ;;  %v3102_v40 = vpack.c.bf16 %v276_v32, %v272_v31  ;;  %v3230_v41 = vpack.c.bf16 %v278_v35, %v274_v33  ;;  %v303_v63 = vld [vmem:[#allocation2 + $0x578] sm:$0xff]  ;;  %v302_v7 = vld [vmem:[#allocation2 + $0x570] sm:$0xff] }
  0x9c   :  { %v3104_v42 = vpack.c.bf16 %v285_v37, %v281_v36  ;;  %v3240_v6 = vpack.c.bf16 %v303_v63, %v299_v62  ;;  %v305_v8 = vld [vmem:[#allocation2 + $0x588] sm:$0xff]  ;;  %v307_v10 = vld [vmem:[#allocation2 + $0x598] sm:$0xff]  ;;  %v304_v13 = vld [vmem:[#allocation2 + $0x580] sm:$0xff] }
  0x9d   :  { %3083 = vmatpush1.bf16.msra.mxu0 %v3082_v43  ;;  %v280_v43 = vld [vmem:[#allocation2 + $0x4c0] sm:$0xff]  ;;  %v311_v11 = vld [vmem:[#allocation2 + $0x5b8] sm:$0xff]  ;;  %v313_v20 = vld [vmem:[#allocation2 + $0x5c8] sm:$0xff] }
  0x9e   :  { %3211 = vmatpush1.bf16.msra.mxu1 %v3210_v44  ;;  %3085 = vmatprep.subr.bf16.mxu0 %v3084_v45  ;;  %v284_v44 = vld [vmem:[#allocation2 + $0x4e0] sm:$0xff]  ;;  %v282_v45 = vld [vmem:[#allocation2 + $0x4d0] sm:$0xff]  ;;  %v3244_v19 = vpack.c.bf16 %v311_v11, %v307_v10  ;;  %v317_v21 = vld [vmem:[#allocation2 + $0x5e8] sm:$0xff] }
  0x9f   :  { %3213 = vmatprep.subr.bf16.mxu1 %v3212_v49  ;;  %v293_v49 = vld [vmem:[#allocation2 + $0x528] sm:$0xff]  ;;  %v3106_v52 = vpack.c.bf16 %v284_v44, %v280_v43  ;;  %v3234_v53 = vpack.c.bf16 %v286_v47, %v282_v45  ;;  %v315_v23 = vld [vmem:[#allocation2 + $0x5d8] sm:$0xff]  ;;  %v3120_v27 = vpack.c.bf16 %v317_v21, %v313_v20  ;;  %v318_v32 = vld [vmem:[#allocation2 + $0x5f0] sm:$0xff] }
  0xa0   :  { %v3108_v54 = vpack.c.bf16 %v293_v49, %v289_v48  ;;  %v319_v24 = vld [vmem:[#allocation2 + $0x5f8] sm:$0xff]  ;;  %v321_v33 = vld [vmem:[#allocation2 + $0x608] sm:$0xff]  ;;  %v326_v44 = vld [vmem:[#allocation2 + $0x630] sm:$0xff] }
  0xa1   :  { %3087 = vmatpush1.bf16.msra.mxu0 %v3086_v55  ;;  %v288_v55 = vld [vmem:[#allocation2 + $0x500] sm:$0xff]  ;;  %v3248_v31 = vpack.c.bf16 %v319_v24, %v315_v23  ;;  %v323_v35 = vld [vmem:[#allocation2 + $0x618] sm:$0xff]  ;;  %v329_v45 = vld [vmem:[#allocation2 + $0x648] sm:$0xff] }
  0xa2   :  { %3215 = vmatpush1.bf16.msra.mxu1 %v3214_v56  ;;  %3089 = vmatprep.subr.bf16.mxu0 %v3088_v57  ;;  %v292_v56 = vld [vmem:[#allocation2 + $0x520] sm:$0xff]  ;;  %v290_v57 = vld [vmem:[#allocation2 + $0x510] sm:$0xff]  ;;  %v327_v36 = vld [vmem:[#allocation2 + $0x638] sm:$0xff] }
  0xa3   :  { %3217 = vmatprep.subr.bf16.mxu1 %v3216_v61  ;;  %v301_v61 = vld [vmem:[#allocation2 + $0x568] sm:$0xff]  ;;  %v3110_v0 = vpack.c.bf16 %v292_v56, %v288_v55  ;;  %v3238_v1 = vpack.c.bf16 %v294_v59, %v290_v57  ;;  %v3252_v43 = vpack.c.bf16 %v327_v36, %v323_v35  ;;  %v331_v47 = vld [vmem:[#allocation2 + $0x658] sm:$0xff]  ;;  %v334_v56 = vld [vmem:[#allocation2 + $0x670] sm:$0xff] }
  0xa4   :  { %v3112_v2 = vpack.c.bf16 %v301_v61, %v297_v60  ;;  %v335_v48 = vld [vmem:[#allocation2 + $0x678] sm:$0xff]  ;;  %v337_v57 = vld [vmem:[#allocation2 + $0x688] sm:$0xff]  ;;  %v352_v24 = vld [vmem:[#allocation2 + $0x700] sm:$0xff] }
  0xa5   :  { %3091 = vmatpush1.bf16.msra.mxu0 %v3090_v3  ;;  %v296_v3 = vld [vmem:[#allocation2 + $0x540] sm:$0xff]  ;;  %v3256_v55 = vpack.c.bf16 %v335_v48, %v331_v47  ;;  %v339_v59 = vld [vmem:[#allocation2 + $0x698] sm:$0xff] }
  0xa6   :  { %3219 = vmatpush1.bf16.msra.mxu1 %v3218_v4  ;;  %3093 = vmatprep.subr.bf16.mxu0 %v3092_v5  ;;  %v300_v4 = vld [vmem:[#allocation2 + $0x560] sm:$0xff]  ;;  %v298_v5 = vld [vmem:[#allocation2 + $0x550] sm:$0xff]  ;;  %v343_v60 = vld [vmem:[#allocation2 + $0x6b8] sm:$0xff] }
  0xa7   :  { %3221 = vmatprep.subr.bf16.mxu1 %v3220_v9  ;;  %v309_v9 = vld [vmem:[#allocation2 + $0x5a8] sm:$0xff]  ;;  %v3114_v12 = vpack.c.bf16 %v300_v4, %v296_v3  ;;  %v3242_v14 = vpack.c.bf16 %v302_v7, %v298_v5  ;;  %v3260_v3 = vpack.c.bf16 %v343_v60, %v339_v59  ;;  %v342_v4 = vld [vmem:[#allocation2 + $0x6b0] sm:$0xff]  ;;  %v347_v7 = vld [vmem:[#allocation2 + $0x6d8] sm:$0xff] }
  0xa8   :  { %471 = vmatmul.mubr.f32.vlgmr.msra.gmra.mrb[0].mxu0 %v124_v15  ;;  %v345_v5 = vld [vmem:[#allocation2 + $0x6c8] sm:$0xff]  ;;  %v359_v20 = vld [vmem:[#allocation2 + $0x738] sm:$0xff]  ;;  %v360_v36 = vld [vmem:[#allocation2 + $0x740] sm:$0xff] }
  0xa9   :  { %3095 = vmatpush1.bf16.msra.mxu0 %v3094_v16  ;;  %613 = vmatmul.mubr.f32.vlgmr.msra.gmra.mrb[0].mxu1 %v124_v15  ;;  %v3116_v15 = vpack.c.bf16 %v309_v9, %v305_v8  ;;  %v308_v16 = vld [vmem:[#allocation2 + $0x5a0] sm:$0xff]  ;;  %v351_v8 = vld [vmem:[#allocation2 + $0x6f8] sm:$0xff] }
  0xaa   :  { %3223 = vmatpush1.bf16.msra.mxu1 %v3222_v17  ;;  %3097 = vmatprep.subr.bf16.mxu0 %v3096_v18  ;;  %v306_v17 = vld [vmem:[#allocation2 + $0x590] sm:$0xff]  ;;  %v3118_v25 = vpack.c.bf16 %v308_v16, %v304_v13  ;;  %v348_v13 = vld [vmem:[#allocation2 + $0x6e0] sm:$0xff] }
  0xab   :  { %3225 = vmatprep.subr.bf16.mxu1 %v3224_v22  ;;  %v310_v18 = vld [vmem:[#allocation2 + $0x5b0] sm:$0xff]  ;;  %v127_v22 = vld [vmem:[%s4718_s25 + $0x18] sm:$0xff]  ;;  %v368_v48 = vld [vmem:[#allocation2 + $0x780] sm:$0xff] }
  0xac   :  { %541 = vmatprep.mubr.f32.mxu0 %v127_v22  ;;  %683 = vmatprep.mubr.f32.mxu1 %v127_v22  ;;  %v3246_v26 = vpack.c.bf16 %v310_v18, %v306_v17  ;;  %v350_v16 = vld [vmem:[#allocation2 + $0x6f0] sm:$0xff]  ;;  %v353_v17 = vld [vmem:[#allocation2 + $0x708] sm:$0xff]  ;;  %v376_v60 = vld [vmem:[#allocation2 + $0x7c0] sm:$0xff] }
  0xad   :  { %3099 = vmatpush1.bf16.msra.mxu0 %v3098_v28  ;;  %v312_v28 = vld [vmem:[#allocation2 + $0x5c0] sm:$0xff]  ;;  %v357_v18 = vld [vmem:[#allocation2 + $0x728] sm:$0xff] }
  0xae   :  { %3227 = vmatpush1.bf16.msra.mxu1 %v3226_v29  ;;  %3101 = vmatprep.subr.bf16.mxu0 %v3100_v30  ;;  %v316_v29 = vld [vmem:[#allocation2 + $0x5e0] sm:$0xff]  ;;  %v314_v30 = vld [vmem:[#allocation2 + $0x5d0] sm:$0xff]  ;;  %v3140_v23 = vpack.c.bf16 %v357_v18, %v353_v17 }
  0xaf   :  { %3229 = vmatprep.subr.bf16.mxu1 %v3228_v34  ;;  %v325_v34 = vld [vmem:[#allocation2 + $0x628] sm:$0xff]  ;;  %v3122_v37 = vpack.c.bf16 %v316_v29, %v312_v28  ;;  %v3250_v38 = vpack.c.bf16 %v318_v32, %v314_v30  ;;  %v358_v28 = vld [vmem:[#allocation2 + $0x730] sm:$0xff]  ;;  %v367_v32 = vld [vmem:[#allocation2 + $0x778] sm:$0xff] }
  0xb0   :  { %v3124_v39 = vpack.c.bf16 %v325_v34, %v321_v33  ;;  %v361_v29 = vld [vmem:[#allocation2 + $0x748] sm:$0xff]  ;;  %v126_v17 = vld [vmem:[%s4718_s25 + $0x10] sm:$0xff] }
  0xb1   :  { %3103 = vmatpush1.bf16.msra.mxu0 %v3102_v40  ;;  %v320_v40 = vld [vmem:[#allocation2 + $0x600] sm:$0xff]  ;;  %v365_v30 = vld [vmem:[#allocation2 + $0x768] sm:$0xff] }
  0xb2   :  { %3231 = vmatpush1.bf16.msra.mxu1 %v3230_v41  ;;  %3105 = vmatprep.subr.bf16.mxu0 %v3104_v42  ;;  %v324_v41 = vld [vmem:[#allocation2 + $0x620] sm:$0xff]  ;;  %v322_v42 = vld [vmem:[#allocation2 + $0x610] sm:$0xff]  ;;  %v3144_v35 = vpack.c.bf16 %v365_v30, %v361_v29  ;;  %v1004_v29 = vld [vmem:[#allocation6 + $0xb8] sm:$0xff] }
  0xb3   :  { %3233 = vmatprep.subr.bf16.mxu1 %v3232_v46  ;;  %v333_v46 = vld [vmem:[#allocation2 + $0x668] sm:$0xff]  ;;  %v3126_v49 = vpack.c.bf16 %v324_v41, %v320_v40  ;;  %v3254_v50 = vpack.c.bf16 %v326_v44, %v322_v42  ;;  %v366_v40 = vld [vmem:[#allocation2 + $0x770] sm:$0xff]  ;;  %v375_v44 = vld [vmem:[#allocation2 + $0x7b8] sm:$0xff] }
  0xb4   :  { %v3128_v51 = vpack.c.bf16 %v333_v46, %v329_v45  ;;  %v369_v41 = vld [vmem:[#allocation2 + $0x788] sm:$0xff] }
  0xb5   :  { %3107 = vmatpush1.bf16.msra.mxu0 %v3106_v52  ;;  %v328_v52 = vld [vmem:[#allocation2 + $0x640] sm:$0xff]  ;;  %v373_v42 = vld [vmem:[#allocation2 + $0x7a8] sm:$0xff] }
  0xb6   :  { %3235 = vmatpush1.bf16.msra.mxu1 %v3234_v53  ;;  %3109 = vmatprep.subr.bf16.mxu0 %v3108_v54  ;;  %v332_v53 = vld [vmem:[#allocation2 + $0x660] sm:$0xff]  ;;  %v330_v54 = vld [vmem:[#allocation2 + $0x650] sm:$0xff]  ;;  %v3148_v47 = vpack.c.bf16 %v373_v42, %v369_v41  ;;  %v1012_v41 = vld [vmem:[#allocation6 + $0xf8] sm:$0xff] }
  0xb7   :  { %3237 = vmatprep.subr.bf16.mxu1 %v3236_v58  ;;  %v341_v58 = vld [vmem:[#allocation2 + $0x6a8] sm:$0xff]  ;;  %v3130_v61 = vpack.c.bf16 %v332_v53, %v328_v52  ;;  %v3258_v62 = vpack.c.bf16 %v334_v56, %v330_v54  ;;  %v374_v52 = vld [vmem:[#allocation2 + $0x7b0] sm:$0xff]  ;;  %v383_v56 = vld [vmem:[#allocation2 + $0x7f8] sm:$0xff] }
  0xb8   :  { %v3132_v63 = vpack.c.bf16 %v341_v58, %v337_v57  ;;  %v377_v53 = vld [vmem:[#allocation2 + $0x7c8] sm:$0xff] }
  0xb9   :  { %3111 = vmatpush1.bf16.msra.mxu0 %v3110_v0  ;;  %v336_v0 = vld [vmem:[#allocation2 + $0x680] sm:$0xff]  ;;  %v381_v54 = vld [vmem:[#allocation2 + $0x7e8] sm:$0xff] }
  0xba   :  { %3239 = vmatpush1.bf16.msra.mxu1 %v3238_v1  ;;  %3113 = vmatprep.subr.bf16.mxu0 %v3112_v2  ;;  %v340_v1 = vld [vmem:[#allocation2 + $0x6a0] sm:$0xff]  ;;  %v338_v2 = vld [vmem:[#allocation2 + $0x690] sm:$0xff]  ;;  %v3152_v59 = vpack.c.bf16 %v381_v54, %v377_v53  ;;  %v1020_v53 = vld [vmem:[#allocation6 + $0x138] sm:$0xff] }
  0xbb   :  { %3241 = vmatprep.subr.bf16.mxu1 %v3240_v6  ;;  %v349_v6 = vld [vmem:[#allocation2 + $0x6e8] sm:$0xff]  ;;  %v3134_v9 = vpack.c.bf16 %v340_v1, %v336_v0  ;;  %v3262_v10 = vpack.c.bf16 %v342_v4, %v338_v2  ;;  %v382_v0 = vld [vmem:[#allocation2 + $0x7f0] sm:$0xff]  ;;  %v988_v4 = vld [vmem:[#allocation6 + $0x38] sm:$0xff] }
  0xbc   :  { %v3136_v11 = vpack.c.bf16 %v349_v6, %v345_v5  ;;  %v982_v1 = vld [vmem:[#allocation6 + $0x8] sm:$0xff] }
  0xbd   :  { %3115 = vmatpush1.bf16.msra.mxu0 %v3114_v12  ;;  %v344_v12 = vld [vmem:[#allocation2 + $0x6c0] sm:$0xff]  ;;  %v986_v2 = vld [vmem:[#allocation6 + $0x28] sm:$0xff] }
  0xbe   :  { %3243 = vmatpush1.bf16.msra.mxu1 %v3242_v14  ;;  %3117 = vmatprep.subr.bf16.mxu0 %v3116_v15  ;;  %v346_v14 = vld [vmem:[#allocation2 + $0x6d0] sm:$0xff]  ;;  %v3264_v15 = vpack.c.bf16 %v351_v8, %v347_v7  ;;  %v3138_v21 = vpack.c.bf16 %v348_v13, %v344_v12  ;;  %v3284_v7 = vpack.c.bf16 %v986_v2, %v982_v1  ;;  %v981_v8 = vld [vmem:[#allocation6] sm:$0xff]  ;;  %v990_v13 = vld [vmem:[#allocation6 + $0x48] sm:$0xff] }
  0xbf   :  { %3245 = vmatprep.subr.bf16.mxu1 %v3244_v19  ;;  %v355_v19 = vld [vmem:[#allocation2 + $0x718] sm:$0xff]  ;;  %v3266_v22 = vpack.c.bf16 %v350_v16, %v346_v14  ;;  %v987_v12 = vld [vmem:[#allocation6 + $0x30] sm:$0xff]  ;;  %v994_v14 = vld [vmem:[#allocation6 + $0x68] sm:$0xff] }
  0xc0   :  { %v996_v16 = vld [vmem:[#allocation6 + $0x78] sm:$0xff] }
  0xc1   :  { %3119 = vmatpush1.bf16.msra.mxu0 %v3118_v25  ;;  %v356_v25 = vld [vmem:[#allocation2 + $0x720] sm:$0xff]  ;;  %v1028_v1 = vld [vmem:[#allocation6 + $0x178] sm:$0xff] }
  0xc2   :  { %3247 = vmatpush1.bf16.msra.mxu1 %v3246_v26  ;;  %3121 = vmatprep.subr.bf16.mxu0 %v3120_v27  ;;  %v354_v26 = vld [vmem:[#allocation2 + $0x710] sm:$0xff]  ;;  %v3268_v27 = vpack.c.bf16 %v359_v20, %v355_v19  ;;  %v3142_v33 = vpack.c.bf16 %v356_v25, %v352_v24  ;;  %v3288_v20 = vpack.c.bf16 %v994_v14, %v990_v13  ;;  %v1036_v13 = vld [vmem:[#allocation6 + $0x1b8] sm:$0xff] }
  0xc3   :  { %3249 = vmatprep.subr.bf16.mxu1 %v3248_v31  ;;  %v363_v31 = vld [vmem:[#allocation2 + $0x758] sm:$0xff]  ;;  %v3270_v34 = vpack.c.bf16 %v358_v28, %v354_v26  ;;  %v995_v25 = vld [vmem:[#allocation6 + $0x70] sm:$0xff]  ;;  %v998_v26 = vld [vmem:[#allocation6 + $0x88] sm:$0xff] }
  0xc4   :  { %v1000_v28 = vld [vmem:[#allocation6 + $0x98] sm:$0xff] }
  0xc5   :  { %3123 = vmatpush1.bf16.msra.mxu0 %v3122_v37  ;;  %v364_v37 = vld [vmem:[#allocation2 + $0x760] sm:$0xff] }
  0xc6   :  { %3251 = vmatpush1.bf16.msra.mxu1 %v3250_v38  ;;  %3125 = vmatprep.subr.bf16.mxu0 %v3124_v39  ;;  %v362_v38 = vld [vmem:[#allocation2 + $0x750] sm:$0xff]  ;;  %v3272_v39 = vpack.c.bf16 %v367_v32, %v363_v31  ;;  %v3146_v45 = vpack.c.bf16 %v364_v37, %v360_v36  ;;  %v3420_v36 = vpack.c.bf16 %v1004_v29, %v1000_v28  ;;  %v1037_v29 = vld [vmem:[#allocation6 + $0x1c0] sm:$0xff] }
  0xc7   :  { %3253 = vmatprep.subr.bf16.mxu1 %v3252_v43  ;;  %v371_v43 = vld [vmem:[#allocation2 + $0x798] sm:$0xff]  ;;  %v3274_v46 = vpack.c.bf16 %v366_v40, %v362_v38  ;;  %v1003_v37 = vld [vmem:[#allocation6 + $0xb0] sm:$0xff]  ;;  %v1006_v38 = vld [vmem:[#allocation6 + $0xc8] sm:$0xff] }
  0xc8   :  { %v1008_v40 = vld [vmem:[#allocation6 + $0xd8] sm:$0xff] }
  0xc9   :  { %3127 = vmatpush1.bf16.msra.mxu0 %v3126_v49  ;;  %v372_v49 = vld [vmem:[#allocation2 + $0x7a0] sm:$0xff] }
  0xca   :  { %3255 = vmatpush1.bf16.msra.mxu1 %v3254_v50  ;;  %3129 = vmatprep.subr.bf16.mxu0 %v3128_v51  ;;  %v370_v50 = vld [vmem:[#allocation2 + $0x790] sm:$0xff]  ;;  %v3276_v51 = vpack.c.bf16 %v375_v44, %v371_v43  ;;  %v3150_v57 = vpack.c.bf16 %v372_v49, %v368_v48  ;;  %v3424_v48 = vpack.c.bf16 %v1012_v41, %v1008_v40  ;;  %v1045_v41 = vld [vmem:[#allocation6 + $0x200] sm:$0xff] }
  0xcb   :  { %3257 = vmatprep.subr.bf16.mxu1 %v3256_v55  ;;  %v379_v55 = vld [vmem:[#allocation2 + $0x7d8] sm:$0xff]  ;;  %v3278_v58 = vpack.c.bf16 %v374_v52, %v370_v50  ;;  %v1011_v49 = vld [vmem:[#allocation6 + $0xf0] sm:$0xff]  ;;  %v1014_v50 = vld [vmem:[#allocation6 + $0x108] sm:$0xff] }
  0xcc   :  { %v1016_v52 = vld [vmem:[#allocation6 + $0x118] sm:$0xff] }
  0xcd   :  { %3131 = vmatpush1.bf16.msra.mxu0 %v3130_v61  ;;  %v380_v61 = vld [vmem:[#allocation2 + $0x7e0] sm:$0xff] }
  0xce   :  { %3259 = vmatpush1.bf16.msra.mxu1 %v3258_v62  ;;  %3133 = vmatprep.subr.bf16.mxu0 %v3132_v63  ;;  %v378_v62 = vld [vmem:[#allocation2 + $0x7d0] sm:$0xff]  ;;  %v3280_v63 = vpack.c.bf16 %v383_v56, %v379_v55  ;;  %v3154_v5 = vpack.c.bf16 %v380_v61, %v376_v60  ;;  %v3428_v60 = vpack.c.bf16 %v1020_v53, %v1016_v52  ;;  %v1053_v53 = vld [vmem:[#allocation6 + $0x240] sm:$0xff] }
  0xcf   :  { %3261 = vmatprep.subr.bf16.mxu1 %v3260_v3  ;;  %v984_v3 = vld [vmem:[#allocation6 + $0x18] sm:$0xff]  ;;  %v3282_v6 = vpack.c.bf16 %v382_v0, %v378_v62  ;;  %v1019_v61 = vld [vmem:[#allocation6 + $0x130] sm:$0xff]  ;;  %v1022_v62 = vld [vmem:[#allocation6 + $0x148] sm:$0xff] }
  0xd0   :  { %v1024_v0 = vld [vmem:[#allocation6 + $0x158] sm:$0xff] }
  0xd1   :  { %3135 = vmatpush1.bf16.msra.mxu0 %v3134_v9  ;;  %v985_v9 = vld [vmem:[#allocation6 + $0x20] sm:$0xff] }
  0xd2   :  { %3263 = vmatpush1.bf16.msra.mxu1 %v3262_v10  ;;  %3137 = vmatprep.subr.bf16.mxu0 %v3136_v11  ;;  %v983_v10 = vld [vmem:[#allocation6 + $0x10] sm:$0xff]  ;;  %v3412_v11 = vpack.c.bf16 %v988_v4, %v984_v3  ;;  %v3286_v18 = vpack.c.bf16 %v985_v9, %v981_v8  ;;  %v3432_v8 = vpack.c.bf16 %v1028_v1, %v1024_v0  ;;  %v1061_v1 = vld [vmem:[#allocation6 + $0x280] sm:$0xff] }
  0xd3   :  { %3265 = vmatprep.subr.bf16.mxu1 %v3264_v15  ;;  %v992_v15 = vld [vmem:[#allocation6 + $0x58] sm:$0xff]  ;;  %v3414_v19 = vpack.c.bf16 %v987_v12, %v983_v10  ;;  %v1027_v9 = vld [vmem:[#allocation6 + $0x170] sm:$0xff]  ;;  %v1030_v10 = vld [vmem:[#allocation6 + $0x188] sm:$0xff] }
  0xd4   :  { %v3416_v24 = vpack.c.bf16 %v996_v16, %v992_v15  ;;  %v1032_v12 = vld [vmem:[#allocation6 + $0x198] sm:$0xff] }
  0xd5   :  { %3139 = vmatpush1.bf16.msra.mxu0 %v3138_v21  ;;  %v989_v21 = vld [vmem:[#allocation6 + $0x40] sm:$0xff] }
  0xd6   :  { %3267 = vmatpush1.bf16.msra.mxu1 %v3266_v22  ;;  %3141 = vmatprep.subr.bf16.mxu0 %v3140_v23  ;;  %v993_v22 = vld [vmem:[#allocation6 + $0x60] sm:$0xff]  ;;  %v991_v23 = vld [vmem:[#allocation6 + $0x50] sm:$0xff] }
  0xd7   :  { %3269 = vmatprep.subr.bf16.mxu1 %v3268_v27  ;;  %v1002_v27 = vld [vmem:[#allocation6 + $0xa8] sm:$0xff]  ;;  %v3290_v30 = vpack.c.bf16 %v993_v22, %v989_v21  ;;  %v3418_v31 = vpack.c.bf16 %v995_v25, %v991_v23  ;;  %v1035_v21 = vld [vmem:[#allocation6 + $0x1b0] sm:$0xff]  ;;  %v1044_v25 = vld [vmem:[#allocation6 + $0x1f8] sm:$0xff] }
  0xd8   :  { %v3292_v32 = vpack.c.bf16 %v1002_v27, %v998_v26  ;;  %v1038_v22 = vld [vmem:[#allocation6 + $0x1c8] sm:$0xff] }
  0xd9   :  { %3143 = vmatpush1.bf16.msra.mxu0 %v3142_v33  ;;  %v997_v33 = vld [vmem:[#allocation6 + $0x80] sm:$0xff]  ;;  %v1042_v23 = vld [vmem:[#allocation6 + $0x1e8] sm:$0xff] }
  0xda   :  { %3271 = vmatpush1.bf16.msra.mxu1 %v3270_v34  ;;  %3145 = vmatprep.subr.bf16.mxu0 %v3144_v35  ;;  %v1001_v34 = vld [vmem:[#allocation6 + $0xa0] sm:$0xff]  ;;  %v999_v35 = vld [vmem:[#allocation6 + $0x90] sm:$0xff]  ;;  %v3312_v28 = vpack.c.bf16 %v1042_v23, %v1038_v22 }
  0xdb   :  { %3273 = vmatprep.subr.bf16.mxu1 %v3272_v39  ;;  %v1010_v39 = vld [vmem:[#allocation6 + $0xe8] sm:$0xff]  ;;  %v3294_v42 = vpack.c.bf16 %v1001_v34, %v997_v33  ;;  %v3422_v43 = vpack.c.bf16 %v1003_v37, %v999_v35  ;;  %v1043_v33 = vld [vmem:[#allocation6 + $0x1f0] sm:$0xff]  ;;  %v1052_v37 = vld [vmem:[#allocation6 + $0x238] sm:$0xff] }
  0xdc   :  { %v3296_v44 = vpack.c.bf16 %v1010_v39, %v1006_v38  ;;  %v1046_v34 = vld [vmem:[#allocation6 + $0x208] sm:$0xff] }
  0xdd   :  { %3147 = vmatpush1.bf16.msra.mxu0 %v3146_v45  ;;  %v1005_v45 = vld [vmem:[#allocation6 + $0xc0] sm:$0xff]  ;;  %v1050_v35 = vld [vmem:[#allocation6 + $0x228] sm:$0xff] }
  0xde   :  { %3275 = vmatpush1.bf16.msra.mxu1 %v3274_v46  ;;  %3149 = vmatprep.subr.bf16.mxu0 %v3148_v47  ;;  %v1009_v46 = vld [vmem:[#allocation6 + $0xe0] sm:$0xff]  ;;  %v1007_v47 = vld [vmem:[#allocation6 + $0xd0] sm:$0xff]  ;;  %v3316_v40 = vpack.c.bf16 %v1050_v35, %v1046_v34 }
  0xdf   :  { %3277 = vmatprep.subr.bf16.mxu1 %v3276_v51  ;;  %v1018_v51 = vld [vmem:[#allocation6 + $0x128] sm:$0xff]  ;;  %v3298_v54 = vpack.c.bf16 %v1009_v46, %v1005_v45  ;;  %v3426_v55 = vpack.c.bf16 %v1011_v49, %v1007_v47  ;;  %v1051_v45 = vld [vmem:[#allocation6 + $0x230] sm:$0xff]  ;;  %v1060_v49 = vld [vmem:[#allocation6 + $0x278] sm:$0xff] }
  0xe0   :  { %v3300_v56 = vpack.c.bf16 %v1018_v51, %v1014_v50  ;;  %v1054_v46 = vld [vmem:[#allocation6 + $0x248] sm:$0xff] }
  0xe1   :  { %3151 = vmatpush1.bf16.msra.mxu0 %v3150_v57  ;;  %v1013_v57 = vld [vmem:[#allocation6 + $0x100] sm:$0xff]  ;;  %v1058_v47 = vld [vmem:[#allocation6 + $0x268] sm:$0xff] }
  0xe2   :  { %3279 = vmatpush1.bf16.msra.mxu1 %v3278_v58  ;;  %3153 = vmatprep.subr.bf16.mxu0 %v3152_v59  ;;  %v1017_v58 = vld [vmem:[#allocation6 + $0x120] sm:$0xff]  ;;  %v1015_v59 = vld [vmem:[#allocation6 + $0x110] sm:$0xff]  ;;  %v3320_v52 = vpack.c.bf16 %v1058_v47, %v1054_v46  ;;  %v1096_v46 = vld [vmem:[#allocation6 + $0x398] sm:$0xff] }
  0xe3   :  { %3281 = vmatprep.subr.bf16.mxu1 %v3280_v63  ;;  %v1026_v63 = vld [vmem:[#allocation6 + $0x168] sm:$0xff]  ;;  %v3302_v2 = vpack.c.bf16 %v1017_v58, %v1013_v57  ;;  %v3430_v3 = vpack.c.bf16 %v1019_v61, %v1015_v59  ;;  %v1059_v57 = vld [vmem:[#allocation6 + $0x270] sm:$0xff]  ;;  %v1068_v61 = vld [vmem:[#allocation6 + $0x2b8] sm:$0xff] }
  0xe4   :  { %v3304_v4 = vpack.c.bf16 %v1026_v63, %v1022_v62  ;;  %v1062_v58 = vld [vmem:[#allocation6 + $0x288] sm:$0xff] }
  0xe5   :  { %3155 = vmatpush1.bf16.msra.mxu0 %v3154_v5  ;;  %v1021_v5 = vld [vmem:[#allocation6 + $0x140] sm:$0xff]  ;;  %v1066_v59 = vld [vmem:[#allocation6 + $0x2a8] sm:$0xff] }
  0xe6   :  { %3283 = vmatpush1.bf16.msra.mxu1 %v3282_v6  ;;  %3285 = vmatprep.subr.bf16.mxu0 %v3284_v7  ;;  %v1025_v6 = vld [vmem:[#allocation6 + $0x160] sm:$0xff]  ;;  %v1023_v7 = vld [vmem:[#allocation6 + $0x150] sm:$0xff]  ;;  %v3324_v0 = vpack.c.bf16 %v1066_v59, %v1062_v58  ;;  %v1104_v58 = vld [vmem:[#allocation6 + $0x3d8] sm:$0xff] }
  0xe7   :  { %3413 = vmatprep.subr.bf16.mxu1 %v3412_v11  ;;  %v1034_v11 = vld [vmem:[#allocation6 + $0x1a8] sm:$0xff]  ;;  %v3306_v14 = vpack.c.bf16 %v1025_v6, %v1021_v5  ;;  %v3434_v15 = vpack.c.bf16 %v1027_v9, %v1023_v7  ;;  %v1067_v5 = vld [vmem:[#allocation6 + $0x2b0] sm:$0xff]  ;;  %v1076_v9 = vld [vmem:[#allocation6 + $0x2f8] sm:$0xff] }
  0xe8   :  { %542 = vmatmul.mubr.f32.vlgmr.msra.gmra.mrb[0].mxu0 %v126_v17  ;;  %v3308_v16 = vpack.c.bf16 %v1034_v11, %v1030_v10  ;;  %v1070_v6 = vld [vmem:[#allocation6 + $0x2c8] sm:$0xff] }
  0xe9   :  { %684 = vmatmul.mubr.f32.vlgmr.msra.gmra.mrb[0].mxu1 %v126_v17  ;;  %3287 = vmatpush1.bf16.msra.mxu0 %v3286_v18  ;;  %v1029_v17 = vld [vmem:[#allocation6 + $0x180] sm:$0xff]  ;;  %v1074_v7 = vld [vmem:[#allocation6 + $0x2e8] sm:$0xff] }
  0xea   :  { %3415 = vmatpush1.bf16.msra.mxu1 %v3414_v19  ;;  %3289 = vmatprep.subr.bf16.mxu0 %v3288_v20  ;;  %v1033_v18 = vld [vmem:[#allocation6 + $0x1a0] sm:$0xff]  ;;  %v1031_v19 = vld [vmem:[#allocation6 + $0x190] sm:$0xff]  ;;  %v3436_v20 = vpack.c.bf16 %v1036_v13, %v1032_v12  ;;  %v3328_v12 = vpack.c.bf16 %v1074_v7, %v1070_v6  ;;  %v1112_v6 = vld [vmem:[#allocation6 + $0x418] sm:$0xff] }
  0xeb   :  { %3417 = vmatprep.subr.bf16.mxu1 %v3416_v24  ;;  %v1040_v24 = vld [vmem:[#allocation6 + $0x1d8] sm:$0xff]  ;;  %v3310_v26 = vpack.c.bf16 %v1033_v18, %v1029_v17  ;;  %v3438_v27 = vpack.c.bf16 %v1035_v21, %v1031_v19  ;;  %v1069_v13 = vld [vmem:[#allocation6 + $0x2c0] sm:$0xff]  ;;  %v1075_v17 = vld [vmem:[#allocation6 + $0x2f0] sm:$0xff] }
  0xec   :  { %v1078_v18 = vld [vmem:[#allocation6 + $0x308] sm:$0xff]  ;;  %v1084_v21 = vld [vmem:[#allocation6 + $0x338] sm:$0xff] }
  0xed   :  { %3291 = vmatpush1.bf16.msra.mxu0 %v3290_v30  ;;  %v1041_v30 = vld [vmem:[#allocation6 + $0x1e0] sm:$0xff]  ;;  %v1082_v19 = vld [vmem:[#allocation6 + $0x328] sm:$0xff] }
  0xee   :  { %3419 = vmatpush1.bf16.msra.mxu1 %v3418_v31  ;;  %3293 = vmatprep.subr.bf16.mxu0 %v3292_v32  ;;  %v1039_v31 = vld [vmem:[#allocation6 + $0x1d0] sm:$0xff]  ;;  %v3440_v32 = vpack.c.bf16 %v1044_v25, %v1040_v24  ;;  %v3314_v38 = vpack.c.bf16 %v1041_v30, %v1037_v29  ;;  %v3332_v24 = vpack.c.bf16 %v1082_v19, %v1078_v18  ;;  %v1077_v25 = vld [vmem:[#allocation6 + $0x300] sm:$0xff]  ;;  %v1086_v30 = vld [vmem:[#allocation6 + $0x348] sm:$0xff] }
  0xef   :  { %3421 = vmatprep.subr.bf16.mxu1 %v3420_v36  ;;  %v1048_v36 = vld [vmem:[#allocation6 + $0x218] sm:$0xff]  ;;  %v3442_v39 = vpack.c.bf16 %v1043_v33, %v1039_v31  ;;  %v1083_v29 = vld [vmem:[#allocation6 + $0x330] sm:$0xff]  ;;  %v1090_v31 = vld [vmem:[#allocation6 + $0x368] sm:$0xff] }
  0xf0   :  { %v1092_v33 = vld [vmem:[#allocation6 + $0x378] sm:$0xff]  ;;  %v4554_v18 = vld [vmem:[%s4692_s5] sm:$0xf] }
  0xf1   :  { %3295 = vmatpush1.bf16.msra.mxu0 %v3294_v42  ;;  %v1049_v42 = vld [vmem:[#allocation6 + $0x220] sm:$0xff] }
  0xf2   :  { %3423 = vmatpush1.bf16.msra.mxu1 %v3422_v43  ;;  %3297 = vmatprep.subr.bf16.mxu0 %v3296_v44  ;;  %v1047_v43 = vld [vmem:[#allocation6 + $0x210] sm:$0xff]  ;;  %v3444_v44 = vpack.c.bf16 %v1052_v37, %v1048_v36  ;;  %v3318_v50 = vpack.c.bf16 %v1049_v42, %v1045_v41  ;;  %v3336_v36 = vpack.c.bf16 %v1090_v31, %v1086_v30  ;;  %v1085_v37 = vld [vmem:[#allocation6 + $0x340] sm:$0xff] }
  0xf3   :  { %3425 = vmatprep.subr.bf16.mxu1 %v3424_v48  ;;  %v1056_v48 = vld [vmem:[#allocation6 + $0x258] sm:$0xff]  ;;  %v3446_v51 = vpack.c.bf16 %v1051_v45, %v1047_v43  ;;  %v1091_v41 = vld [vmem:[#allocation6 + $0x370] sm:$0xff]  ;;  %v1098_v45 = vld [vmem:[#allocation6 + $0x3a8] sm:$0xff] }
  0xf4   :  { %v1113_v31 = vld [vmem:[#allocation6 + $0x420] sm:$0xff] }
  0xf5   :  { %3299 = vmatpush1.bf16.msra.mxu0 %v3298_v54  ;;  %v1057_v54 = vld [vmem:[#allocation6 + $0x260] sm:$0xff] }
  0xf6   :  { %3427 = vmatpush1.bf16.msra.mxu1 %v3426_v55  ;;  %3301 = vmatprep.subr.bf16.mxu0 %v3300_v56  ;;  %v1055_v55 = vld [vmem:[#allocation6 + $0x250] sm:$0xff]  ;;  %v3448_v56 = vpack.c.bf16 %v1060_v49, %v1056_v48  ;;  %v3322_v62 = vpack.c.bf16 %v1057_v54, %v1053_v53  ;;  %v1100_v48 = vld [vmem:[#allocation6 + $0x3b8] sm:$0xff]  ;;  %v1093_v49 = vld [vmem:[#allocation6 + $0x380] sm:$0xff] }
  0xf7   :  { %3429 = vmatprep.subr.bf16.mxu1 %v3428_v60  ;;  %v1064_v60 = vld [vmem:[#allocation6 + $0x298] sm:$0xff]  ;;  %v3450_v63 = vpack.c.bf16 %v1059_v57, %v1055_v55  ;;  %v1095_v53 = vld [vmem:[#allocation6 + $0x390] sm:$0xff]  ;;  %v1106_v57 = vld [vmem:[#allocation6 + $0x3e8] sm:$0xff] }
  0xf8   :  { %v1099_v54 = vld [vmem:[#allocation6 + $0x3b0] sm:$0xff] }
  0xf9   :  { %3303 = vmatpush1.bf16.msra.mxu0 %v3302_v2  ;;  %v1065_v2 = vld [vmem:[#allocation6 + $0x2a0] sm:$0xff]  ;;  %v3470_v55 = vpack.c.bf16 %v1099_v54, %v1095_v53  ;;  %v1128_v53 = vld [vmem:[#allocation6 + $0x498] sm:$0xff] }
  0xfa   :  { %3431 = vmatpush1.bf16.msra.mxu1 %v3430_v3  ;;  %3305 = vmatprep.subr.bf16.mxu0 %v3304_v4  ;;  %v1063_v3 = vld [vmem:[#allocation6 + $0x290] sm:$0xff]  ;;  %v3452_v4 = vpack.c.bf16 %v1068_v61, %v1064_v60  ;;  %v3326_v10 = vpack.c.bf16 %v1065_v2, %v1061_v1  ;;  %v1108_v60 = vld [vmem:[#allocation6 + $0x3f8] sm:$0xff]  ;;  %v1101_v61 = vld [vmem:[#allocation6 + $0x3c0] sm:$0xff] }
  0xfb   :  { %3433 = vmatprep.subr.bf16.mxu1 %v3432_v8  ;;  %v1072_v8 = vld [vmem:[#allocation6 + $0x2d8] sm:$0xff]  ;;  %v3454_v11 = vpack.c.bf16 %v1067_v5, %v1063_v3  ;;  %v1107_v1 = vld [vmem:[#allocation6 + $0x3f0] sm:$0xff]  ;;  %v1114_v5 = vld [vmem:[#allocation6 + $0x428] sm:$0xff] }
  0xfc   :  { %v1132_v54 = vld [vmem:[#allocation6 + $0x4b8] sm:$0xff] }
  0xfd   :  { %3307 = vmatpush1.bf16.msra.mxu0 %v3306_v14  ;;  %v1073_v14 = vld [vmem:[#allocation6 + $0x2e0] sm:$0xff] }
  0xfe   :  { %3435 = vmatpush1.bf16.msra.mxu1 %v3434_v15  ;;  %3309 = vmatprep.subr.bf16.mxu0 %v3308_v16  ;;  %v1071_v15 = vld [vmem:[#allocation6 + $0x2d0] sm:$0xff]  ;;  %v3456_v16 = vpack.c.bf16 %v1076_v9, %v1072_v8  ;;  %v3330_v22 = vpack.c.bf16 %v1073_v14, %v1069_v13  ;;  %v1116_v8 = vld [vmem:[#allocation6 + $0x438] sm:$0xff]  ;;  %v4539_v13 = vld [vmem:[%s4689_s2] sm:$0xf] }
  0xff   :  { %3437 = vmatprep.subr.bf16.mxu1 %v3436_v20  ;;  %v1080_v20 = vld [vmem:[#allocation6 + $0x318] sm:$0xff]  ;;  %v3458_v23 = vpack.c.bf16 %v1075_v17, %v1071_v15  ;;  %v3476_v9 = vpack.c.bf16 %v1116_v8, %v1112_v6  ;;  %v1133_v6 = vld [vmem:[#allocation6 + $0x4c0] sm:$0xff] }
 0x101   :  { %3311 = vmatpush1.bf16.msra.mxu0 %v3310_v26  ;;  %v1081_v26 = vld [vmem:[#allocation6 + $0x320] sm:$0xff] }
 0x102   :  { %3439 = vmatpush1.bf16.msra.mxu1 %v3438_v27  ;;  %3313 = vmatprep.subr.bf16.mxu0 %v3312_v28  ;;  %v1079_v27 = vld [vmem:[#allocation6 + $0x310] sm:$0xff]  ;;  %v3460_v28 = vpack.c.bf16 %v1084_v21, %v1080_v20  ;;  %v3334_v34 = vpack.c.bf16 %v1081_v26, %v1077_v25 }
 0x103   :  { %3441 = vmatprep.subr.bf16.mxu1 %v3440_v32  ;;  %v1088_v32 = vld [vmem:[#allocation6 + $0x358] sm:$0xff]  ;;  %v3462_v35 = vpack.c.bf16 %v1083_v29, %v1079_v27  ;;  %v1109_v27 = vld [vmem:[#allocation6 + $0x400] sm:$0xff] }
 0x105   :  { %3315 = vmatpush1.bf16.msra.mxu0 %v3314_v38  ;;  %v1089_v38 = vld [vmem:[#allocation6 + $0x360] sm:$0xff] }
 0x106   :  { %3443 = vmatpush1.bf16.msra.mxu1 %v3442_v39  ;;  %3317 = vmatprep.subr.bf16.mxu0 %v3316_v40  ;;  %v3464_v39 = vpack.c.bf16 %v1092_v33, %v1088_v32  ;;  %v1087_v40 = vld [vmem:[#allocation6 + $0x350] sm:$0xff]  ;;  %v3338_v42 = vpack.c.bf16 %v1089_v38, %v1085_v37  ;;  %v1122_v38 = vld [vmem:[#allocation6 + $0x468] sm:$0xff] }
 0x107   :  { %3445 = vmatprep.subr.bf16.mxu1 %v3444_v44  ;;  %v3466_v43 = vpack.c.bf16 %v1091_v41, %v1087_v40  ;;  %v1094_v44 = vld [vmem:[#allocation6 + $0x388] sm:$0xff]  ;;  %v1111_v32 = vld [vmem:[#allocation6 + $0x410] sm:$0xff]  ;;  %v1124_v40 = vld [vmem:[#allocation6 + $0x478] sm:$0xff] }
 0x108   :  { %v3340_v47 = vpack.c.bf16 %v1098_v45, %v1094_v44  ;;  %v1115_v33 = vld [vmem:[#allocation6 + $0x430] sm:$0xff]  ;;  %v1117_v44 = vld [vmem:[#allocation6 + $0x440] sm:$0xff] }
 0x109   :  { %3319 = vmatpush1.bf16.msra.mxu0 %v3318_v50  ;;  %v1097_v50 = vld [vmem:[#allocation6 + $0x3a0] sm:$0xff] }
 0x10a   :  { %3447 = vmatpush1.bf16.msra.mxu1 %v3446_v51  ;;  %3321 = vmatprep.subr.bf16.mxu0 %v3320_v52  ;;  %v3468_v51 = vpack.c.bf16 %v1100_v48, %v1096_v46  ;;  %v3342_v52 = vpack.c.bf16 %v1097_v50, %v1093_v49  ;;  %v1121_v45 = vld [vmem:[#allocation6 + $0x460] sm:$0xff]  ;;  %v1123_v48 = vld [vmem:[#allocation6 + $0x470] sm:$0xff]  ;;  %v1126_v49 = vld [vmem:[#allocation6 + $0x488] sm:$0xff] }
 0x10b   :  { %3449 = vmatprep.subr.bf16.mxu1 %v3448_v56  ;;  %v1102_v56 = vld [vmem:[#allocation6 + $0x3c8] sm:$0xff] }
 0x10c   :  { %v3344_v59 = vpack.c.bf16 %v1106_v57, %v1102_v56  ;;  %v3354_v56 = vpack.c.bf16 %v1121_v45, %v1117_v44  ;;  %v1151_v44 = vld [vmem:[#allocation6 + $0x550] sm:$0xff] }
 0x10d   :  { %3323 = vmatpush1.bf16.msra.mxu0 %v3322_v62  ;;  %v3472_v62 = vpack.c.bf16 %v1108_v60, %v1104_v58  ;;  %v1125_v58 = vld [vmem:[#allocation6 + $0x480] sm:$0xff]  ;;  %v1155_v45 = vld [vmem:[#allocation6 + $0x570] sm:$0xff] }
 0x10e   :  { %3451 = vmatpush1.bf16.msra.mxu1 %v3450_v63  ;;  %3325 = vmatprep.subr.bf16.mxu0 %v3324_v0  ;;  %v1105_v63 = vld [vmem:[#allocation6 + $0x3e0] sm:$0xff]  ;;  %v1103_v0 = vld [vmem:[#allocation6 + $0x3d0] sm:$0xff] }
 0x10f   :  { %3453 = vmatprep.subr.bf16.mxu1 %v3452_v4  ;;  %v3346_v2 = vpack.c.bf16 %v1105_v63, %v1101_v61  ;;  %v3474_v3 = vpack.c.bf16 %v1107_v1, %v1103_v0  ;;  %v1110_v4 = vld [vmem:[#allocation6 + $0x408] sm:$0xff]  ;;  %v3484_v61 = vpack.c.bf16 %v1132_v54, %v1128_v53  ;;  %v1131_v63 = vld [vmem:[#allocation6 + $0x4b0] sm:$0xff]  ;;  %v1161_v53 = vld [vmem:[#allocation6 + $0x5a0] sm:$0xff] }
 0x110   :  { %v3348_v7 = vpack.c.bf16 %v1114_v5, %v1110_v4  ;;  %v1134_v0 = vld [vmem:[#allocation6 + $0x4c8] sm:$0xff] }
 0x111   :  { %3327 = vmatpush1.bf16.msra.mxu0 %v3326_v10  ;;  %v386_v10 = vlaneseq  ;;  %v1138_v1 = vld [vmem:[#allocation6 + $0x4e8] sm:$0xff] }
 0x112   :  { %3455 = vmatpush1.bf16.msra.mxu1 %v3454_v11  ;;  %3329 = vmatprep.subr.bf16.mxu0 %v3328_v12  ;;  %v3360_v8 = vpack.c.bf16 %v1138_v1, %v1134_v0  ;;  %v1165_v0 = vld [vmem:[#allocation6 + $0x5c0] sm:$0xff] }
 0x113   :  { %3457 = vmatprep.subr.bf16.mxu1 %v3456_v16  ;;  %v4531_v11 = vshrl.u32 %v386_v10, 7  ;;  %v1135_v10 = vld [vmem:[#allocation6 + $0x4d0] sm:$0xff]  ;;  %v1169_v1 = vld [vmem:[#allocation6 + $0x5e0] sm:$0xff] }
 0x115   :  { %3331 = vmatpush1.bf16.msra.mxu0 %v3330_v22  ;;  %v4534_v12 = vsub.s32 0, %v4531_v11  ;;  %v4542_v14 = vsub.s32 1, %v4531_v11  ;;  %v4545_v15 = vsub.s32 3, %v4531_v11 }
 0x116   :  { %3459 = vmatpush1.bf16.msra.mxu1 %v3458_v23  ;;  %3333 = vmatprep.subr.bf16.mxu0 %v3332_v24 }
 0x117   :  { %3461 = vmatprep.subr.bf16.mxu1 %v3460_v28  ;;  %v389_v16 = vrot.slane %v4539_v13, %v4534_v12  ;;  %v393_v17 = vrot.slane %v4539_v13, %v4542_v14  ;;  %v401_v19 = vrot.slane %v4539_v13, %v4545_v15  ;;  %v964_v26 = vrot.slane %v4554_v18, %v4542_v14 }
 0x118   :  { %v960_v29 = vrot.slane %v4554_v18, %v4534_v12  ;;  %v972_v37 = vrot.slane %v4554_v18, %v4545_v15 }
 0x119   :  { %3335 = vmatpush1.bf16.msra.mxu0 %v3334_v34 }
 0x11a   :  { %3463 = vmatpush1.bf16.msra.mxu1 %v3462_v35  ;;  %3337 = vmatprep.subr.bf16.mxu0 %v3336_v36  ;;  %v1118_v35 = vld [vmem:[#allocation6 + $0x448] sm:$0xff] }
 0x11b   :  { %3465 = vmatprep.subr.bf16.mxu1 %v3464_v39  ;;  %v1120_v39 = vld [vmem:[#allocation6 + $0x458] sm:$0xff]  ;;  %v3352_v50 = vpack.c.bf16 %v1122_v38, %v1118_v35 }
 0x11c   :  { %v1152_v35 = vld [vmem:[#allocation6 + $0x558] sm:$0xff] }
 0x11d   :  { %3339 = vmatpush1.bf16.msra.mxu0 %v3338_v42  ;;  %v3350_v42 = vpack.c.bf16 %v1113_v31, %v1109_v27  ;;  %v1147_v31 = vld [vmem:[#allocation6 + $0x530] sm:$0xff] }
 0x11e   :  { %3467 = vmatpush1.bf16.msra.mxu1 %v3466_v43  ;;  %3341 = vmatprep.subr.bf16.mxu0 %v3340_v47  ;;  %v3478_v43 = vpack.c.bf16 %v1115_v33, %v1111_v32  ;;  %v1119_v47 = vld [vmem:[#allocation6 + $0x450] sm:$0xff]  ;;  %v1150_v32 = vld [vmem:[#allocation6 + $0x548] sm:$0xff] }
 0x11f   :  { %3469 = vmatprep.subr.bf16.mxu1 %v3468_v51  ;;  %v3480_v51 = vpack.c.bf16 %v1124_v40, %v1120_v39  ;;  %v3482_v57 = vpack.c.bf16 %v1123_v48, %v1119_v47  ;;  %v1154_v33 = vld [vmem:[#allocation6 + $0x568] sm:$0xff]  ;;  %v1149_v40 = vld [vmem:[#allocation6 + $0x540] sm:$0xff]  ;;  %v1160_v48 = vld [vmem:[#allocation6 + $0x598] sm:$0xff] }
 0x120   :  { %v1162_v47 = vld [vmem:[#allocation6 + $0x5a8] sm:$0xff] }
 0x121   :  { %3343 = vmatpush1.bf16.msra.mxu0 %v3342_v52  ;;  %v1130_v52 = vld [vmem:[#allocation6 + $0x4a8] sm:$0xff] }
 0x122   :  { %3471 = vmatpush1.bf16.msra.mxu1 %v3470_v55  ;;  %3345 = vmatprep.subr.bf16.mxu0 %v3344_v59  ;;  %v1129_v59 = vld [vmem:[#allocation6 + $0x4a0] sm:$0xff]  ;;  %v3356_v60 = vpack.c.bf16 %v1130_v52, %v1126_v49  ;;  %v1164_v49 = vld [vmem:[#allocation6 + $0x5b8] sm:$0xff] }
 0x123   :  { %3473 = vmatprep.subr.bf16.mxu1 %v3472_v62  ;;  %v1127_v62 = vld [vmem:[#allocation6 + $0x490] sm:$0xff]  ;;  %v3358_v4 = vpack.c.bf16 %v1129_v59, %v1125_v58  ;;  %v1157_v52 = vld [vmem:[#allocation6 + $0x580] sm:$0xff]  ;;  %v1166_v58 = vld [vmem:[#allocation6 + $0x5c8] sm:$0xff] }
 0x124   :  { %v3486_v5 = vpack.c.bf16 %v1131_v63, %v1127_v62  ;;  %v1170_v59 = vld [vmem:[#allocation6 + $0x5e8] sm:$0xff]  ;;  %v3374_v62 = vpack.c.bf16 %v1161_v53, %v1157_v52 }
 0x125   :  { %3347 = vmatpush1.bf16.msra.mxu0 %v3346_v2  ;;  %v1136_v2 = vld [vmem:[#allocation6 + $0x4d8] sm:$0xff]  ;;  %v1198_v52 = vld [vmem:[#allocation6 + $0x6c8] sm:$0xff] }
 0x126   :  { %3475 = vmatpush1.bf16.msra.mxu1 %v3474_v3  ;;  %3349 = vmatprep.subr.bf16.mxu0 %v3348_v7  ;;  %v1140_v3 = vld [vmem:[#allocation6 + $0x4f8] sm:$0xff]  ;;  %v1137_v7 = vld [vmem:[#allocation6 + $0x4e0] sm:$0xff]  ;;  %v1202_v53 = vld [vmem:[#allocation6 + $0x6e8] sm:$0xff] }
 0x127   :  { %3477 = vmatprep.subr.bf16.mxu1 %v3476_v9  ;;  %v3488_v9 = vpack.c.bf16 %v1140_v3, %v1136_v2  ;;  %v3376_v2 = vpack.c.bf16 %v1170_v59, %v1166_v58  ;;  %v1197_v58 = vld [vmem:[#allocation6 + $0x6c0] sm:$0xff] }
 0x128   :  { %v1201_v59 = vld [vmem:[#allocation6 + $0x6e0] sm:$0xff] }
 0x1bb   :  { %v543_v20 = vpop.f32.mrb[0].mxu0 }
 0x1bc   :  { %v4180_v21 = vadd.f32 %v543_v20, %v389_v16  ;;  %v4558_v22 = vpop.f32.mrb[0].mxu1  ;;  %v545_v23 = vpop.f32.mrb[1].mxu0  ;;  %v1139_v16 = vld [vmem:[#allocation6 + $0x4f0] sm:$0xff]  ;;  %v1144_v20 = vld [vmem:[#allocation6 + $0x518] sm:$0xff] }
 0x1bd   :  { %v4181_v24 = vadd.f32 %v545_v23, %v393_v17  ;;  %v687_v25 = vpop.f32.mrb[1].mxu1  ;;  %v1142_v17 = vld [vmem:[#allocation6 + $0x508] sm:$0xff]  ;;  %v3362_v23 = vpack.c.bf16 %v1137_v7, %v1133_v6 }
 0x1be   :  { %v4562_v28 = vmax.f32 %v4180_v21, 0.0  ;;  %v4183_v30 = vadd.f32 %v687_v25, %v401_v19  ;;  %v1146_v19 = vld [vmem:[#allocation6 + $0x528] sm:$0xff]  ;;  %v1148_v21 = vld [vmem:[#allocation6 + $0x538] sm:$0xff]  ;;  %v1141_v25 = vld [vmem:[#allocation6 + $0x500] sm:$0xff] }
 0x1bf   :  { %v4566_v34 = vmax.f32 %v4181_v24, 0.0  ;;  %v3490_v24 = vpack.c.bf16 %v1139_v16, %v1135_v10  ;;  %v3364_v27 = vpack.c.bf16 %v1146_v19, %v1142_v17  ;;  %v1174_v6 = vld [vmem:[#allocation6 + $0x608] sm:$0xff]  ;;  %v3378_v10 = vpack.c.bf16 %v1169_v1, %v1165_v0  ;;  %v1173_v17 = vld [vmem:[#allocation6 + $0x600] sm:$0xff] }
 0x1c0   :  { %v4568_v36 = vmax.f32 %v4183_v30, 0.0  ;;  %v977_v46 = vmul.f32 %v960_v29, %v4562_v28  ;;  %v3492_v29 = vpack.c.bf16 %v1148_v21, %v1144_v20  ;;  %v1143_v30 = vld [vmem:[#allocation6 + $0x510] sm:$0xff]  ;;  %v1178_v7 = vld [vmem:[#allocation6 + $0x628] sm:$0xff]  ;;  %v1177_v19 = vld [vmem:[#allocation6 + $0x620] sm:$0xff] }
 0x1c1   :  { %v978_v41 = vmul.f32 %v964_v26, %v4566_v34  ;;  %v1145_v26 = vld [vmem:[#allocation6 + $0x520] sm:$0xff]  ;;  %v3494_v39 = vpack.c.bf16 %v1147_v31, %v1143_v30  ;;  %v3380_v20 = vpack.c.bf16 %v1178_v7, %v1174_v6  ;;  %v3382_v30 = vpack.c.bf16 %v1177_v19, %v1173_v17  ;;  %v1206_v0 = vld [vmem:[#allocation6 + $0x708] sm:$0xff] }
 0x1c2   :  { %v980_v55 = vmul.f32 %v972_v37, %v4568_v36  ;;  %v1156_v37 = vld [vmem:[#allocation6 + $0x578] sm:$0xff]  ;;  %v3366_v38 = vpack.c.bf16 %v1145_v26, %v1141_v25  ;;  %v1182_v25 = vld [vmem:[#allocation6 + $0x648] sm:$0xff]  ;;  %v1205_v6 = vld [vmem:[#allocation6 + $0x700] sm:$0xff] }
 0x1c3   :  { %1301 = vmatprep.mubr.f32.mxu0 %v978_v41  ;;  %1443 = vmatprep.mubr.f32.mxu1 %v978_v41  ;;  %v1153_v41 = vld [vmem:[#allocation6 + $0x560] sm:$0xff]  ;;  %v1186_v26 = vld [vmem:[#allocation6 + $0x668] sm:$0xff] }
 0x1c4   :  { %1302 = vmatmul.mubr.f32.vlgmr.msra.gmra.mrb[2].mxu0 %v977_v46  ;;  %1444 = vmatmul.mubr.f32.vlgmr.msra.gmra.mrb[2].mxu1 %v977_v46  ;;  %v1158_v46 = vld [vmem:[#allocation6 + $0x588] sm:$0xff]  ;;  %v1209_v7 = vld [vmem:[#allocation6 + $0x720] sm:$0xff] }
 0x1c5   :  { %3351 = vmatpush1.bf16.msra.mxu0 %v3350_v42  ;;  %3479 = vmatpush1.bf16.msra.mxu1 %v3478_v43  ;;  %v3368_v42 = vpack.c.bf16 %v1154_v33, %v1150_v32  ;;  %v3496_v43 = vpack.c.bf16 %v1156_v37, %v1152_v35  ;;  %v3372_v54 = vpack.c.bf16 %v1162_v47, %v1158_v46  ;;  %v1181_v32 = vld [vmem:[#allocation6 + $0x640] sm:$0xff]  ;;  %v1210_v1 = vld [vmem:[#allocation6 + $0x728] sm:$0xff] }
 0x1c6   :  { %1372 = vmatprep.mubr.f32.mxu0 %v980_v55  ;;  %1514 = vmatprep.mubr.f32.mxu1 %v980_v55  ;;  %v3500_v55 = vpack.c.bf16 %v1164_v49, %v1160_v48  ;;  %v1185_v33 = vld [vmem:[#allocation6 + $0x660] sm:$0xff]  ;;  %v3384_v35 = vpack.c.bf16 %v1186_v26, %v1182_v25  ;;  %v1214_v17 = vld [vmem:[#allocation6 + $0x748] sm:$0xff] }
 0x1c7   :  { %3353 = vmatprep.subr.bf16.mxu0 %v3352_v50  ;;  %3481 = vmatprep.subr.bf16.mxu1 %v3480_v51  ;;  %v3370_v50 = vpack.c.bf16 %v1153_v41, %v1149_v40  ;;  %v3498_v51 = vpack.c.bf16 %v1155_v45, %v1151_v44  ;;  %v1190_v40 = vld [vmem:[#allocation6 + $0x688] sm:$0xff]  ;;  %v3386_v44 = vpack.c.bf16 %v1185_v33, %v1181_v32  ;;  %v1189_v46 = vld [vmem:[#allocation6 + $0x680] sm:$0xff]  ;;  %v1219_v32 = vld [vmem:[#allocation6 + $0x770] sm:$0xff] }
 0x1c8   :  { %v1194_v41 = vld [vmem:[#allocation6 + $0x6a8] sm:$0xff]  ;;  %v1193_v47 = vld [vmem:[#allocation6 + $0x6a0] sm:$0xff] }
 0x1c9   :  { %3355 = vmatpush1.bf16.msra.mxu0 %v3354_v56  ;;  %3483 = vmatpush1.bf16.msra.mxu1 %v3482_v57  ;;  %v1159_v56 = vld [vmem:[#allocation6 + $0x590] sm:$0xff]  ;;  %v3388_v48 = vpack.c.bf16 %v1194_v41, %v1190_v40  ;;  %v1218_v19 = vld [vmem:[#allocation6 + $0x768] sm:$0xff]  ;;  %v1213_v25 = vld [vmem:[#allocation6 + $0x740] sm:$0xff] }
 0x1ca   :  { %3357 = vmatprep.subr.bf16.mxu0 %v3356_v60  ;;  %3485 = vmatprep.subr.bf16.mxu1 %v3484_v61  ;;  %v1163_v57 = vld [vmem:[#allocation6 + $0x5b0] sm:$0xff]  ;;  %v1168_v60 = vld [vmem:[#allocation6 + $0x5d8] sm:$0xff]  ;;  %v1217_v26 = vld [vmem:[#allocation6 + $0x760] sm:$0xff] }
 0x1cb   :  { %v1172_v61 = vld [vmem:[#allocation6 + $0x5f8] sm:$0xff]  ;;  %v3502_v63 = vpack.c.bf16 %v1163_v57, %v1159_v56  ;;  %v3390_v56 = vpack.c.bf16 %v1193_v47, %v1189_v46  ;;  %v1222_v33 = vld [vmem:[#allocation6 + $0x788] sm:$0xff]  ;;  %v1221_v41 = vld [vmem:[#allocation6 + $0x780] sm:$0xff] }
 0x1cc   :  { %v3504_v3 = vpack.c.bf16 %v1172_v61, %v1168_v60  ;;  %v3392_v60 = vpack.c.bf16 %v1202_v53, %v1198_v52  ;;  %v1227_v46 = vld [vmem:[#allocation6 + $0x7b0] sm:$0xff]  ;;  %v1230_v47 = vld [vmem:[#allocation6 + $0x7c8] sm:$0xff]  ;;  %v1229_v53 = vld [vmem:[#allocation6 + $0x7c0] sm:$0xff] }
 0x1cd   :  { %3359 = vmatpush1.bf16.msra.mxu0 %v3358_v4  ;;  %3487 = vmatpush1.bf16.msra.mxu1 %v3486_v5  ;;  %v1167_v4 = vld [vmem:[#allocation6 + $0x5d0] sm:$0xff] }
 0x1ce   :  { %3361 = vmatprep.subr.bf16.mxu0 %v3360_v8  ;;  %3489 = vmatprep.subr.bf16.mxu1 %v3488_v9  ;;  %v1171_v5 = vld [vmem:[#allocation6 + $0x5f0] sm:$0xff]  ;;  %v1176_v8 = vld [vmem:[#allocation6 + $0x618] sm:$0xff] }
 0x1cf   :  { %v1180_v9 = vld [vmem:[#allocation6 + $0x638] sm:$0xff]  ;;  %v3506_v16 = vpack.c.bf16 %v1171_v5, %v1167_v4  ;;  %v3394_v4 = vpack.c.bf16 %v1201_v59, %v1197_v58  ;;  %v1235_v58 = vld [vmem:[#allocation6 + $0x7f0] sm:$0xff]  ;;  %v700_v59 = vld [vmem:[#allocation4 + $0x8] sm:$0xff] }
 0x1d0   :  { %v3508_v21 = vpack.c.bf16 %v1180_v9, %v1176_v8  ;;  %v3396_v8 = vpack.c.bf16 %v1210_v1, %v1206_v0 }
 0x1d1   :  { %3363 = vmatpush1.bf16.msra.mxu0 %v3362_v23  ;;  %3491 = vmatpush1.bf16.msra.mxu1 %v3490_v24  ;;  %v1175_v23 = vld [vmem:[#allocation6 + $0x610] sm:$0xff] }
 0x1d2   :  { %3365 = vmatprep.subr.bf16.mxu0 %v3364_v27  ;;  %3493 = vmatprep.subr.bf16.mxu1 %v3492_v29  ;;  %v1179_v24 = vld [vmem:[#allocation6 + $0x630] sm:$0xff]  ;;  %v1184_v27 = vld [vmem:[#allocation6 + $0x658] sm:$0xff] }
 0x1d3   :  { %v1188_v29 = vld [vmem:[#allocation6 + $0x678] sm:$0xff]  ;;  %v3510_v31 = vpack.c.bf16 %v1179_v24, %v1175_v23  ;;  %v3398_v23 = vpack.c.bf16 %v1209_v7, %v1205_v6  ;;  %v701_v6 = vld [vmem:[#allocation4 + $0x10] sm:$0xff] }
 0x1d4   :  { %v3512_v37 = vpack.c.bf16 %v1188_v29, %v1184_v27  ;;  %v4576_v27 = vsub.s32 2, %v4531_v11  ;;  %v3400_v29 = vpack.c.bf16 %v1218_v19, %v1214_v17  ;;  %v705_v7 = vld [vmem:[#allocation4 + $0x30] sm:$0xff] }
 0x1d5   :  { %3367 = vmatpush1.bf16.msra.mxu0 %v3366_v38  ;;  %3495 = vmatpush1.bf16.msra.mxu1 %v3494_v39  ;;  %v1183_v38 = vld [vmem:[#allocation6 + $0x650] sm:$0xff] }
 0x1d6   :  { %3369 = vmatprep.subr.bf16.mxu0 %v3368_v42  ;;  %3497 = vmatprep.subr.bf16.mxu1 %v3496_v43  ;;  %v1187_v39 = vld [vmem:[#allocation6 + $0x670] sm:$0xff]  ;;  %v1192_v42 = vld [vmem:[#allocation6 + $0x698] sm:$0xff]  ;;  %v397_v11 = vrot.slane %v4539_v13, %v4576_v27 }
 0x1d7   :  { %v1196_v43 = vld [vmem:[#allocation6 + $0x6b8] sm:$0xff]  ;;  %v3514_v45 = vpack.c.bf16 %v1187_v39, %v1183_v38  ;;  %v3402_v39 = vpack.c.bf16 %v1217_v26, %v1213_v25  ;;  %v713_v26 = vld [vmem:[#allocation4 + $0x70] sm:$0xff] }
 0x1d8   :  { %v3516_v49 = vpack.c.bf16 %v1196_v43, %v1192_v42  ;;  %v1228_v38 = vld [vmem:[#allocation6 + $0x7b8] sm:$0xff]  ;;  %v1225_v42 = vld [vmem:[#allocation6 + $0x7a0] sm:$0xff] }
 0x1d9   :  { %3371 = vmatpush1.bf16.msra.mxu0 %v3370_v50  ;;  %3499 = vmatpush1.bf16.msra.mxu1 %v3498_v51  ;;  %v1191_v50 = vld [vmem:[#allocation6 + $0x690] sm:$0xff] }
 0x1da   :  { %3373 = vmatprep.subr.bf16.mxu0 %v3372_v54  ;;  %3501 = vmatprep.subr.bf16.mxu1 %v3500_v55  ;;  %v1195_v51 = vld [vmem:[#allocation6 + $0x6b0] sm:$0xff]  ;;  %v1200_v54 = vld [vmem:[#allocation6 + $0x6d8] sm:$0xff] }
 0x1db   :  { %v1204_v55 = vld [vmem:[#allocation6 + $0x6f8] sm:$0xff]  ;;  %v3518_v57 = vpack.c.bf16 %v1195_v51, %v1191_v50  ;;  %v3406_v51 = vpack.c.bf16 %v1225_v42, %v1221_v41  ;;  %v721_v42 = vld [vmem:[#allocation4 + $0xb0] sm:$0xff] }
 0x1dc   :  { %v3520_v61 = vpack.c.bf16 %v1204_v55, %v1200_v54  ;;  %v1236_v50 = vld [vmem:[#allocation6 + $0x7f8] sm:$0xff]  ;;  %v1233_v54 = vld [vmem:[#allocation6 + $0x7e0] sm:$0xff]  ;;  %v4182_v55 = vadd.f32 %v4558_v22, %v397_v11  ;;  %v724_v11 = vld [vmem:[#allocation4 + $0xc8] sm:$0xff] }
 0x1dd   :  { %3375 = vmatpush1.bf16.msra.mxu0 %v3374_v62  ;;  %3503 = vmatpush1.bf16.msra.mxu1 %v3502_v63  ;;  %v1199_v62 = vld [vmem:[#allocation6 + $0x6d0] sm:$0xff] }
 0x1de   :  { %3377 = vmatprep.subr.bf16.mxu0 %v3376_v2  ;;  %3505 = vmatprep.subr.bf16.mxu1 %v3504_v3  ;;  %v1203_v63 = vld [vmem:[#allocation6 + $0x6f0] sm:$0xff]  ;;  %v1208_v2 = vld [vmem:[#allocation6 + $0x718] sm:$0xff]  ;;  %v4581_v1 = vmax.f32 %v4182_v55, 0.0 }
 0x1df   :  { %v1212_v3 = vld [vmem:[#allocation6 + $0x738] sm:$0xff]  ;;  %v3522_v5 = vpack.c.bf16 %v1203_v63, %v1199_v62  ;;  %v3410_v63 = vpack.c.bf16 %v1233_v54, %v1229_v53  ;;  %v732_v53 = vld [vmem:[#allocation4 + $0x108] sm:$0xff] }
 0x1e0   :  { %v3524_v9 = vpack.c.bf16 %v1212_v3, %v1208_v2  ;;  %v706_v62 = vld [vmem:[#allocation4 + $0x38] sm:$0xff]  ;;  %v968_v2 = vrot.slane %v4554_v18, %v4576_v27  ;;  %v3670_v18 = vpack.c.bf16 %v705_v7, %v701_v6  ;;  %v736_v54 = vld [vmem:[#allocation4 + $0x128] sm:$0xff]  ;;  %v739_v7 = vld [vmem:[#allocation4 + $0x140] sm:$0xff] }
 0x1e1   :  { %3379 = vmatpush1.bf16.msra.mxu0 %v3378_v10  ;;  %3507 = vmatpush1.bf16.msra.mxu1 %v3506_v16  ;;  %v1207_v10 = vld [vmem:[#allocation6 + $0x710] sm:$0xff]  ;;  %v734_v55 = vld [vmem:[#allocation4 + $0x118] sm:$0xff] }
 0x1e2   :  { %3381 = vmatprep.subr.bf16.mxu0 %v3380_v20  ;;  %3509 = vmatprep.subr.bf16.mxu1 %v3508_v21  ;;  %v1211_v16 = vld [vmem:[#allocation6 + $0x730] sm:$0xff]  ;;  %v1216_v20 = vld [vmem:[#allocation6 + $0x758] sm:$0xff]  ;;  %v979_v19 = vmul.f32 %v968_v2, %v4581_v1  ;;  %v744_v2 = vld [vmem:[#allocation4 + $0x168] sm:$0xff] }
 0x1e3   :  { %v1220_v21 = vld [vmem:[#allocation6 + $0x778] sm:$0xff]  ;;  %v3526_v24 = vpack.c.bf16 %v1211_v16, %v1207_v10 }
 0x1e4   :  { %v710_v10 = vld [vmem:[#allocation4 + $0x58] sm:$0xff] }
 0x1e5   :  { %3383 = vmatpush1.bf16.msra.mxu0 %v3382_v30  ;;  %3511 = vmatpush1.bf16.msra.mxu1 %v3510_v31  ;;  %v3528_v30 = vpack.c.bf16 %v1220_v21, %v1216_v20  ;;  %v1215_v31 = vld [vmem:[#allocation6 + $0x750] sm:$0xff]  ;;  %v714_v16 = vld [vmem:[#allocation4 + $0x78] sm:$0xff]  ;;  %v707_v20 = vld [vmem:[#allocation4 + $0x40] sm:$0xff] }
 0x1e6   :  { %3385 = vmatprep.subr.bf16.mxu0 %v3384_v35  ;;  %3513 = vmatprep.subr.bf16.mxu1 %v3512_v37  ;;  %v1226_v35 = vld [vmem:[#allocation6 + $0x7a8] sm:$0xff]  ;;  %v1224_v37 = vld [vmem:[#allocation6 + $0x798] sm:$0xff]  ;;  %v3530_v40 = vpack.c.bf16 %v1219_v32, %v1215_v31  ;;  %v711_v21 = vld [vmem:[#allocation4 + $0x60] sm:$0xff]  ;;  %v3672_v25 = vpack.c.bf16 %v714_v16, %v710_v10 }
 0x1e7   :  { %v3404_v43 = vpack.c.bf16 %v1226_v35, %v1222_v33  ;;  %v718_v31 = vld [vmem:[#allocation4 + $0x98] sm:$0xff]  ;;  %v3546_v33 = vpack.c.bf16 %v711_v21, %v707_v20  ;;  %v745_v16 = vld [vmem:[#allocation4 + $0x170] sm:$0xff] }
 0x1e8   :  { %v722_v32 = vld [vmem:[#allocation4 + $0xb8] sm:$0xff] }
 0x1e9   :  { %3387 = vmatpush1.bf16.msra.mxu0 %v3386_v44  ;;  %3515 = vmatpush1.bf16.msra.mxu1 %v3514_v45  ;;  %v3532_v44 = vpack.c.bf16 %v1228_v38, %v1224_v37  ;;  %v1223_v45 = vld [vmem:[#allocation6 + $0x790] sm:$0xff]  ;;  %v715_v38 = vld [vmem:[#allocation4 + $0x80] sm:$0xff]  ;;  %v3676_v41 = vpack.c.bf16 %v722_v32, %v718_v31  ;;  %v754_v20 = vld [vmem:[#allocation4 + $0x1b8] sm:$0xff] }
 0x1ea   :  { %3389 = vmatprep.subr.bf16.mxu0 %v3388_v48  ;;  %3517 = vmatprep.subr.bf16.mxu1 %v3516_v49  ;;  %v1234_v48 = vld [vmem:[#allocation6 + $0x7e8] sm:$0xff]  ;;  %v1232_v49 = vld [vmem:[#allocation6 + $0x7d8] sm:$0xff]  ;;  %v3534_v52 = vpack.c.bf16 %v1227_v46, %v1223_v45  ;;  %v753_v31 = vld [vmem:[#allocation4 + $0x1b0] sm:$0xff] }
 0x1eb   :  { %v3408_v13 = vpack.c.bf16 %v1234_v48, %v1230_v47  ;;  %v730_v45 = vld [vmem:[#allocation4 + $0xf8] sm:$0xff]  ;;  %v756_v32 = vld [vmem:[#allocation4 + $0x1c8] sm:$0xff] }
 0x1ed   :  { %3391 = vmatpush1.bf16.msra.mxu0 %v3390_v56  ;;  %3519 = vmatpush1.bf16.msra.mxu1 %v3518_v57  ;;  %v3536_v56 = vpack.c.bf16 %v1236_v50, %v1232_v49  ;;  %v1231_v57 = vld [vmem:[#allocation6 + $0x7d0] sm:$0xff]  ;;  %v727_v49 = vld [vmem:[#allocation4 + $0xe0] sm:$0xff] }
 0x1ee   :  { %3393 = vmatprep.subr.bf16.mxu0 %v3392_v60  ;;  %3521 = vmatprep.subr.bf16.mxu1 %v3520_v61  ;;  %v704_v60 = vld [vmem:[#allocation4 + $0x28] sm:$0xff]  ;;  %v702_v61 = vld [vmem:[#allocation4 + $0x18] sm:$0xff]  ;;  %v3538_v0 = vpack.c.bf16 %v1235_v58, %v1231_v57  ;;  %v725_v50 = vld [vmem:[#allocation4 + $0xd0] sm:$0xff]  ;;  %v3556_v58 = vpack.c.bf16 %v736_v54, %v732_v53 }
 0x1ef   :  { %v3540_v22 = vpack.c.bf16 %v704_v60, %v700_v59  ;;  %v3668_v3 = vpack.c.bf16 %v706_v62, %v702_v61  ;;  %v731_v59 = vld [vmem:[#allocation4 + $0x100] sm:$0xff]  ;;  %v733_v61 = vld [vmem:[#allocation4 + $0x110] sm:$0xff] }
 0x1f0   :  { %v735_v60 = vld [vmem:[#allocation4 + $0x120] sm:$0xff]  ;;  %v765_v53 = vld [vmem:[#allocation4 + $0x210] sm:$0xff] }
 0x1f1   :  { %3395 = vmatpush1.bf16.msra.mxu0 %v3394_v4  ;;  %3523 = vmatpush1.bf16.msra.mxu1 %v3522_v5  ;;  %v699_v4 = vld [vmem:[#allocation4] sm:$0xff] }
 0x1f2   :  { %3397 = vmatprep.subr.bf16.mxu0 %v3396_v8  ;;  %3525 = vmatprep.subr.bf16.mxu1 %v3524_v9  ;;  %v703_v5 = vld [vmem:[#allocation4 + $0x20] sm:$0xff]  ;;  %v708_v8 = vld [vmem:[#allocation4 + $0x48] sm:$0xff] }
 0x1f3   :  { %v712_v9 = vld [vmem:[#allocation4 + $0x68] sm:$0xff]  ;;  %v3542_v17 = vpack.c.bf16 %v703_v5, %v699_v4  ;;  %v3558_v4 = vpack.c.bf16 %v735_v60, %v731_v59 }
 0x1f5   :  { %3399 = vmatpush1.bf16.msra.mxu0 %v3398_v23  ;;  %3527 = vmatpush1.bf16.msra.mxu1 %v3526_v24  ;;  %v709_v23 = vld [vmem:[#allocation4 + $0x50] sm:$0xff]  ;;  %v3544_v24 = vpack.c.bf16 %v712_v9, %v708_v8  ;;  %v743_v8 = vld [vmem:[#allocation4 + $0x160] sm:$0xff] }
 0x1f6   :  { %3401 = vmatprep.subr.bf16.mxu0 %v3400_v29  ;;  %3529 = vmatprep.subr.bf16.mxu1 %v3528_v30  ;;  %v716_v29 = vld [vmem:[#allocation4 + $0x88] sm:$0xff]  ;;  %v3674_v35 = vpack.c.bf16 %v713_v26, %v709_v23  ;;  %v741_v9 = vld [vmem:[#allocation4 + $0x150] sm:$0xff]  ;;  %v3562_v21 = vpack.c.bf16 %v743_v8, %v739_v7  ;;  %v751_v26 = vld [vmem:[#allocation4 + $0x1a0] sm:$0xff] }
 0x1f7   :  { %v720_v30 = vld [vmem:[#allocation4 + $0xa8] sm:$0xff]  ;;  %v3690_v23 = vpack.c.bf16 %v745_v16, %v741_v9  ;;  %v783_v16 = vld [vmem:[#allocation4 + $0x2a0] sm:$0xff] }
 0x1f8   :  { %v3548_v37 = vpack.c.bf16 %v720_v30, %v716_v29  ;;  %v749_v29 = vld [vmem:[#allocation4 + $0x190] sm:$0xff] }
 0x1f9   :  { %3403 = vmatpush1.bf16.msra.mxu0 %v3402_v39  ;;  %3531 = vmatpush1.bf16.msra.mxu1 %v3530_v40  ;;  %v719_v39 = vld [vmem:[#allocation4 + $0xa0] sm:$0xff]  ;;  %v717_v40 = vld [vmem:[#allocation4 + $0x90] sm:$0xff] }
 0x1fa   :  { %3405 = vmatprep.subr.bf16.mxu0 %v3404_v43  ;;  %3533 = vmatprep.subr.bf16.mxu1 %v3532_v44  ;;  %v728_v43 = vld [vmem:[#allocation4 + $0xe8] sm:$0xff]  ;;  %v726_v44 = vld [vmem:[#allocation4 + $0xd8] sm:$0xff]  ;;  %v3550_v46 = vpack.c.bf16 %v719_v39, %v715_v38  ;;  %v3678_v47 = vpack.c.bf16 %v721_v42, %v717_v40  ;;  %v3694_v39 = vpack.c.bf16 %v753_v31, %v749_v29  ;;  %v759_v42 = vld [vmem:[#allocation4 + $0x1e0] sm:$0xff] }
 0x1fb   :  { %v3552_v48 = vpack.c.bf16 %v728_v43, %v724_v11  ;;  %v757_v11 = vld [vmem:[#allocation4 + $0x1d0] sm:$0xff]  ;;  %v791_v31 = vld [vmem:[#allocation4 + $0x2e0] sm:$0xff] }
 0x1fd   :  { %3407 = vmatpush1.bf16.msra.mxu0 %v3406_v51  ;;  %3535 = vmatpush1.bf16.msra.mxu1 %v3534_v52  ;;  %v3680_v51 = vpack.c.bf16 %v730_v45, %v726_v44  ;;  %v729_v52 = vld [vmem:[#allocation4 + $0xf0] sm:$0xff]  ;;  %v764_v45 = vld [vmem:[#allocation4 + $0x208] sm:$0xff] }
 0x1fe   :  { %3409 = vmatprep.subr.bf16.mxu0 %v3408_v13  ;;  %3537 = vmatprep.subr.bf16.mxu1 %v3536_v56  ;;  %v738_v13 = vld [vmem:[#allocation4 + $0x138] sm:$0xff]  ;;  %v3682_v57 = vpack.c.bf16 %v729_v52, %v725_v50  ;;  %v761_v44 = vld [vmem:[#allocation4 + $0x1f0] sm:$0xff]  ;;  %v767_v52 = vld [vmem:[#allocation4 + $0x220] sm:$0xff] }
 0x1ff   :  { %v3684_v62 = vpack.c.bf16 %v738_v13, %v734_v55  ;;  %v769_v55 = vld [vmem:[#allocation4 + $0x230] sm:$0xff]  ;;  %v772_v13 = vld [vmem:[#allocation4 + $0x248] sm:$0xff] }
 0x200   :  { %v3702_v60 = vpack.c.bf16 %v769_v55, %v765_v53  ;;  %v807_v55 = vld [vmem:[#allocation4 + $0x360] sm:$0xff] }
 0x201   :  { %3411 = vmatpush1.bf16.msra.mxu0 %v3410_v63  ;;  %3539 = vmatpush1.bf16.msra.mxu1 %v3538_v0  ;;  %v737_v63 = vld [vmem:[#allocation4 + $0x130] sm:$0xff]  ;;  %v740_v0 = vld [vmem:[#allocation4 + $0x148] sm:$0xff] }
 0x202   :  { %3541 = vmatprep.subr.bf16.mxu0 %v3540_v22  ;;  %3669 = vmatprep.subr.bf16.mxu1 %v3668_v3  ;;  %v742_v22 = vld [vmem:[#allocation4 + $0x158] sm:$0xff]  ;;  %v3686_v5 = vpack.c.bf16 %v737_v63, %v733_v61  ;;  %v3560_v6 = vpack.c.bf16 %v744_v2, %v740_v0  ;;  %v775_v63 = vld [vmem:[#allocation4 + $0x260] sm:$0xff]  ;;  %v773_v0 = vld [vmem:[#allocation4 + $0x250] sm:$0xff] }
 0x203   :  { %v746_v3 = vld [vmem:[#allocation4 + $0x178] sm:$0xff] }
 0x204   :  { %1373 = vmatmul.mubr.f32.vlgmr.msra.gmra.mrb[2].mxu0 %v979_v19  ;;  %1515 = vmatmul.mubr.f32.vlgmr.msra.gmra.mrb[2].mxu1 %v979_v19  ;;  %v3688_v10 = vpack.c.bf16 %v746_v3, %v742_v22  ;;  %v752_v19 = vld [vmem:[#allocation4 + $0x1a8] sm:$0xff]  ;;  %v777_v22 = vld [vmem:[#allocation4 + $0x270] sm:$0xff] }
 0x205   :  { %3543 = vmatpush1.bf16.msra.mxu0 %v3542_v17  ;;  %1611 = vmatprep.mubr.f32.mxu0 %v4566_v34  ;;  %v748_v17 = vld [vmem:[#allocation4 + $0x188] sm:$0xff]  ;;  %v3706_v8 = vpack.c.bf16 %v777_v22, %v773_v0  ;;  %v815_v22 = vld [vmem:[#allocation4 + $0x3a0] sm:$0xff] }
 0x206   :  { %3671 = vmatpush1.bf16.msra.mxu1 %v3670_v18  ;;  %1753 = vmatprep.mubr.f32.mxu1 %v4566_v34  ;;  %v723_v34 = vld [vmem:[#allocation4 + $0xc0] sm:$0xff]  ;;  %v750_v18 = vld [vmem:[#allocation4 + $0x198] sm:$0xff]  ;;  %v780_v3 = vld [vmem:[#allocation4 + $0x288] sm:$0xff] }
 0x207   :  { %3545 = vmatprep.subr.bf16.mxu0 %v3544_v24  ;;  %3673 = vmatprep.subr.bf16.mxu1 %v3672_v25  ;;  %v3554_v56 = vpack.c.bf16 %v727_v49, %v723_v34  ;;  %v3564_v24 = vpack.c.bf16 %v752_v19, %v748_v17  ;;  %v747_v25 = vld [vmem:[#allocation4 + $0x180] sm:$0xff]  ;;  %v3692_v30 = vpack.c.bf16 %v754_v20, %v750_v18  ;;  %v781_v17 = vld [vmem:[#allocation4 + $0x290] sm:$0xff]  ;;  %v788_v20 = vld [vmem:[#allocation4 + $0x2c8] sm:$0xff] }
 0x208   :  { %v3566_v38 = vpack.c.bf16 %v751_v26, %v747_v25  ;;  %v3698_v49 = vpack.c.bf16 %v761_v44, %v757_v11  ;;  %v785_v18 = vld [vmem:[#allocation4 + $0x2b0] sm:$0xff]  ;;  %v799_v44 = vld [vmem:[#allocation4 + $0x320] sm:$0xff] }
 0x209   :  { %3547 = vmatpush1.bf16.msra.mxu0 %v3546_v33  ;;  %v760_v33 = vld [vmem:[#allocation4 + $0x1e8] sm:$0xff]  ;;  %v3710_v26 = vpack.c.bf16 %v785_v18, %v781_v17  ;;  %v823_v18 = vld [vmem:[#allocation4 + $0x3e0] sm:$0xff] }
 0x20a   :  { %3675 = vmatpush1.bf16.msra.mxu1 %v3674_v35  ;;  %3549 = vmatprep.subr.bf16.mxu0 %v3548_v37  ;;  %v758_v35 = vld [vmem:[#allocation4 + $0x1d8] sm:$0xff]  ;;  %v3568_v40 = vpack.c.bf16 %v760_v33, %v756_v32  ;;  %v789_v32 = vld [vmem:[#allocation4 + $0x2d0] sm:$0xff] }
 0x20b   :  { %3677 = vmatprep.subr.bf16.mxu1 %v3676_v41  ;;  %v762_v37 = vld [vmem:[#allocation4 + $0x1f8] sm:$0xff]  ;;  %v755_v41 = vld [vmem:[#allocation4 + $0x1c0] sm:$0xff] }
 0x20c   :  { %v3696_v43 = vpack.c.bf16 %v762_v37, %v758_v35  ;;  %v3570_v34 = vpack.c.bf16 %v759_v42, %v755_v41  ;;  %v793_v35 = vld [vmem:[#allocation4 + $0x2f0] sm:$0xff]  ;;  %v796_v37 = vld [vmem:[#allocation4 + $0x308] sm:$0xff] }
 0x20d   :  { %3551 = vmatpush1.bf16.msra.mxu0 %v3550_v46  ;;  %v768_v46 = vld [vmem:[#allocation4 + $0x228] sm:$0xff]  ;;  %v3714_v42 = vpack.c.bf16 %v793_v35, %v789_v32  ;;  %v831_v35 = vld [vmem:[#allocation4 + $0x420] sm:$0xff] }
 0x20e   :  { %3679 = vmatpush1.bf16.msra.mxu1 %v3678_v47  ;;  %3553 = vmatprep.subr.bf16.mxu0 %v3552_v48  ;;  %v766_v47 = vld [vmem:[#allocation4 + $0x218] sm:$0xff]  ;;  %v3572_v50 = vpack.c.bf16 %v768_v46, %v764_v45  ;;  %v797_v45 = vld [vmem:[#allocation4 + $0x310] sm:$0xff] }
 0x20f   :  { %3681 = vmatprep.subr.bf16.mxu1 %v3680_v51  ;;  %v770_v48 = vld [vmem:[#allocation4 + $0x238] sm:$0xff]  ;;  %v763_v51 = vld [vmem:[#allocation4 + $0x200] sm:$0xff] }
 0x210   :  { %v3700_v54 = vpack.c.bf16 %v770_v48, %v766_v47  ;;  %v3574_v59 = vpack.c.bf16 %v767_v52, %v763_v51  ;;  %v801_v47 = vld [vmem:[#allocation4 + $0x330] sm:$0xff]  ;;  %v804_v48 = vld [vmem:[#allocation4 + $0x348] sm:$0xff] }
 0x211   :  { %3555 = vmatpush1.bf16.msra.mxu0 %v3554_v56  ;;  %v776_v56 = vld [vmem:[#allocation4 + $0x268] sm:$0xff]  ;;  %v3718_v52 = vpack.c.bf16 %v801_v47, %v797_v45  ;;  %v835_v45 = vld [vmem:[#allocation4 + $0x440] sm:$0xff]  ;;  %v837_v47 = vld [vmem:[#allocation4 + $0x450] sm:$0xff] }
 0x212   :  { %3683 = vmatpush1.bf16.msra.mxu1 %v3682_v57  ;;  %3557 = vmatprep.subr.bf16.mxu0 %v3556_v58  ;;  %v774_v57 = vld [vmem:[#allocation4 + $0x258] sm:$0xff]  ;;  %v3576_v61 = vpack.c.bf16 %v776_v56, %v772_v13  ;;  %v805_v13 = vld [vmem:[#allocation4 + $0x350] sm:$0xff] }
 0x213   :  { %3685 = vmatprep.subr.bf16.mxu1 %v3684_v62  ;;  %v778_v58 = vld [vmem:[#allocation4 + $0x278] sm:$0xff]  ;;  %v771_v62 = vld [vmem:[#allocation4 + $0x240] sm:$0xff] }
 0x214   :  { %v3704_v2 = vpack.c.bf16 %v778_v58, %v774_v57  ;;  %v3578_v7 = vpack.c.bf16 %v775_v63, %v771_v62  ;;  %v809_v57 = vld [vmem:[#allocation4 + $0x370] sm:$0xff]  ;;  %v812_v58 = vld [vmem:[#allocation4 + $0x388] sm:$0xff] }
 0x215   :  { %3559 = vmatpush1.bf16.msra.mxu0 %v3558_v4  ;;  %v784_v4 = vld [vmem:[#allocation4 + $0x2a8] sm:$0xff]  ;;  %v3722_v63 = vpack.c.bf16 %v809_v57, %v805_v13  ;;  %v847_v57 = vld [vmem:[#allocation4 + $0x4a0] sm:$0xff] }
 0x216   :  { %3687 = vmatpush1.bf16.msra.mxu1 %v3686_v5  ;;  %3561 = vmatprep.subr.bf16.mxu0 %v3560_v6  ;;  %v782_v5 = vld [vmem:[#allocation4 + $0x298] sm:$0xff]  ;;  %v3580_v9 = vpack.c.bf16 %v784_v4, %v780_v3  ;;  %v813_v3 = vld [vmem:[#allocation4 + $0x390] sm:$0xff] }
 0x217   :  { %3689 = vmatprep.subr.bf16.mxu1 %v3688_v10  ;;  %v786_v6 = vld [vmem:[#allocation4 + $0x2b8] sm:$0xff]  ;;  %v779_v10 = vld [vmem:[#allocation4 + $0x280] sm:$0xff] }
 0x218   :  { %v3708_v19 = vpack.c.bf16 %v786_v6, %v782_v5  ;;  %v3582_v25 = vpack.c.bf16 %v783_v16, %v779_v10  ;;  %v817_v5 = vld [vmem:[#allocation4 + $0x3b0] sm:$0xff]  ;;  %v820_v6 = vld [vmem:[#allocation4 + $0x3c8] sm:$0xff] }
 0x219   :  { %3563 = vmatpush1.bf16.msra.mxu0 %v3562_v21  ;;  %v792_v21 = vld [vmem:[#allocation4 + $0x2e8] sm:$0xff]  ;;  %v3726_v16 = vpack.c.bf16 %v817_v5, %v813_v3  ;;  %v851_v3 = vld [vmem:[#allocation4 + $0x4c0] sm:$0xff]  ;;  %v853_v5 = vld [vmem:[#allocation4 + $0x4d0] sm:$0xff] }
 0x21a   :  { %3691 = vmatpush1.bf16.msra.mxu1 %v3690_v23  ;;  %3565 = vmatprep.subr.bf16.mxu0 %v3564_v24  ;;  %v790_v23 = vld [vmem:[#allocation4 + $0x2d8] sm:$0xff]  ;;  %v3584_v29 = vpack.c.bf16 %v792_v21, %v788_v20  ;;  %v821_v20 = vld [vmem:[#allocation4 + $0x3d0] sm:$0xff] }
 0x21b   :  { %3693 = vmatprep.subr.bf16.mxu1 %v3692_v30  ;;  %v794_v24 = vld [vmem:[#allocation4 + $0x2f8] sm:$0xff]  ;;  %v787_v30 = vld [vmem:[#allocation4 + $0x2c0] sm:$0xff] }
 0x21c   :  { %v3712_v33 = vpack.c.bf16 %v794_v24, %v790_v23  ;;  %v3586_v41 = vpack.c.bf16 %v791_v31, %v787_v30  ;;  %v825_v23 = vld [vmem:[#allocation4 + $0x3f0] sm:$0xff]  ;;  %v828_v24 = vld [vmem:[#allocation4 + $0x408] sm:$0xff] }
 0x21d   :  { %3567 = vmatpush1.bf16.msra.mxu0 %v3566_v38  ;;  %v800_v38 = vld [vmem:[#allocation4 + $0x328] sm:$0xff]  ;;  %v3730_v31 = vpack.c.bf16 %v825_v23, %v821_v20  ;;  %v863_v20 = vld [vmem:[#allocation4 + $0x520] sm:$0xff] }
 0x21e   :  { %3695 = vmatpush1.bf16.msra.mxu1 %v3694_v39  ;;  %3569 = vmatprep.subr.bf16.mxu0 %v3568_v40  ;;  %v798_v39 = vld [vmem:[#allocation4 + $0x318] sm:$0xff]  ;;  %v3588_v11 = vpack.c.bf16 %v800_v38, %v796_v37  ;;  %v829_v38 = vld [vmem:[#allocation4 + $0x410] sm:$0xff] }
 0x21f   :  { %3697 = vmatprep.subr.bf16.mxu1 %v3696_v43  ;;  %v802_v40 = vld [vmem:[#allocation4 + $0x338] sm:$0xff]  ;;  %v795_v43 = vld [vmem:[#allocation4 + $0x300] sm:$0xff] }
 0x220   :  { %v3716_v46 = vpack.c.bf16 %v802_v40, %v798_v39  ;;  %v3590_v51 = vpack.c.bf16 %v799_v44, %v795_v43  ;;  %v833_v39 = vld [vmem:[#allocation4 + $0x430] sm:$0xff]  ;;  %v836_v40 = vld [vmem:[#allocation4 + $0x448] sm:$0xff]  ;;  %v842_v43 = vld [vmem:[#allocation4 + $0x478] sm:$0xff] }
 0x221   :  { %3571 = vmatpush1.bf16.msra.mxu0 %v3570_v34  ;;  %v808_v34 = vld [vmem:[#allocation4 + $0x368] sm:$0xff]  ;;  %v3734_v44 = vpack.c.bf16 %v833_v39, %v829_v38  ;;  %v869_v38 = vld [vmem:[#allocation4 + $0x550] sm:$0xff] }
 0x222   :  { %3699 = vmatpush1.bf16.msra.mxu1 %v3698_v49  ;;  %3573 = vmatprep.subr.bf16.mxu0 %v3572_v50  ;;  %v806_v49 = vld [vmem:[#allocation4 + $0x358] sm:$0xff]  ;;  %v3592_v53 = vpack.c.bf16 %v808_v34, %v804_v48  ;;  %v841_v34 = vld [vmem:[#allocation4 + $0x470] sm:$0xff] }
 0x223   :  { %3701 = vmatprep.subr.bf16.mxu1 %v3700_v54  ;;  %v810_v50 = vld [vmem:[#allocation4 + $0x378] sm:$0xff]  ;;  %v803_v54 = vld [vmem:[#allocation4 + $0x340] sm:$0xff] }
 0x224   :  { %v3720_v56 = vpack.c.bf16 %v810_v50, %v806_v49  ;;  %v3594_v62 = vpack.c.bf16 %v807_v55, %v803_v54  ;;  %v844_v49 = vld [vmem:[#allocation4 + $0x488] sm:$0xff]  ;;  %v3738_v55 = vpack.c.bf16 %v841_v34, %v837_v47  ;;  %v875_v47 = vld [vmem:[#allocation4 + $0x580] sm:$0xff]  ;;  %v877_v34 = vld [vmem:[#allocation4 + $0x590] sm:$0xff] }
 0x225   :  { %3575 = vmatpush1.bf16.msra.mxu0 %v3574_v59  ;;  %v816_v59 = vld [vmem:[#allocation4 + $0x3a8] sm:$0xff] }
 0x226   :  { %3703 = vmatpush1.bf16.msra.mxu1 %v3702_v60  ;;  %3577 = vmatprep.subr.bf16.mxu0 %v3576_v61  ;;  %v814_v60 = vld [vmem:[#allocation4 + $0x398] sm:$0xff]  ;;  %v3596_v0 = vpack.c.bf16 %v816_v59, %v812_v58  ;;  %v848_v50 = vld [vmem:[#allocation4 + $0x4a8] sm:$0xff]  ;;  %v845_v58 = vld [vmem:[#allocation4 + $0x490] sm:$0xff] }
 0x227   :  { %3705 = vmatprep.subr.bf16.mxu1 %v3704_v2  ;;  %v818_v61 = vld [vmem:[#allocation4 + $0x3b8] sm:$0xff]  ;;  %v811_v2 = vld [vmem:[#allocation4 + $0x380] sm:$0xff]  ;;  %v3612_v13 = vpack.c.bf16 %v848_v50, %v844_v49  ;;  %v881_v50 = vld [vmem:[#allocation4 + $0x5b0] sm:$0xff] }
 0x228   :  { %v3724_v4 = vpack.c.bf16 %v818_v61, %v814_v60  ;;  %v3598_v10 = vpack.c.bf16 %v815_v22, %v811_v2  ;;  %v849_v60 = vld [vmem:[#allocation4 + $0x4b0] sm:$0xff]  ;;  %v852_v61 = vld [vmem:[#allocation4 + $0x4c8] sm:$0xff] }
 0x229   :  { %3579 = vmatpush1.bf16.msra.mxu0 %v3578_v7  ;;  %v824_v7 = vld [vmem:[#allocation4 + $0x3e8] sm:$0xff]  ;;  %v3742_v2 = vpack.c.bf16 %v849_v60, %v845_v58  ;;  %v887_v58 = vld [vmem:[#allocation4 + $0x5e0] sm:$0xff] }
 0x22a   :  { %3707 = vmatpush1.bf16.msra.mxu1 %v3706_v8  ;;  %3581 = vmatprep.subr.bf16.mxu0 %v3580_v9  ;;  %v822_v8 = vld [vmem:[#allocation4 + $0x3d8] sm:$0xff]  ;;  %v3600_v17 = vpack.c.bf16 %v824_v7, %v820_v6  ;;  %v860_v7 = vld [vmem:[#allocation4 + $0x508] sm:$0xff] }
 0x22b   :  { %3709 = vmatprep.subr.bf16.mxu1 %v3708_v19  ;;  %v826_v9 = vld [vmem:[#allocation4 + $0x3f8] sm:$0xff]  ;;  %v819_v19 = vld [vmem:[#allocation4 + $0x3c0] sm:$0xff] }
 0x22c   :  { %v3728_v21 = vpack.c.bf16 %v826_v9, %v822_v8  ;;  %v3602_v30 = vpack.c.bf16 %v823_v18, %v819_v19  ;;  %v864_v8 = vld [vmem:[#allocation4 + $0x528] sm:$0xff]  ;;  %v862_v9 = vld [vmem:[#allocation4 + $0x518] sm:$0xff]  ;;  %v859_v18 = vld [vmem:[#allocation4 + $0x500] sm:$0xff] }
 0x22d   :  { %3583 = vmatpush1.bf16.msra.mxu0 %v3582_v25  ;;  %v832_v25 = vld [vmem:[#allocation4 + $0x428] sm:$0xff]  ;;  %v3620_v19 = vpack.c.bf16 %v864_v8, %v860_v7  ;;  %v897_v7 = vld [vmem:[#allocation4 + $0x630] sm:$0xff] }
 0x22e   :  { %3711 = vmatpush1.bf16.msra.mxu1 %v3710_v26  ;;  %3585 = vmatprep.subr.bf16.mxu0 %v3584_v29  ;;  %v830_v26 = vld [vmem:[#allocation4 + $0x418] sm:$0xff]  ;;  %v3604_v32 = vpack.c.bf16 %v832_v25, %v828_v24  ;;  %v865_v24 = vld [vmem:[#allocation4 + $0x530] sm:$0xff]  ;;  %v868_v25 = vld [vmem:[#allocation4 + $0x548] sm:$0xff] }
 0x22f   :  { %3713 = vmatprep.subr.bf16.mxu1 %v3712_v33  ;;  %v834_v29 = vld [vmem:[#allocation4 + $0x438] sm:$0xff]  ;;  %v827_v33 = vld [vmem:[#allocation4 + $0x400] sm:$0xff]  ;;  %v900_v8 = vld [vmem:[#allocation4 + $0x648] sm:$0xff] }
 0x230   :  { %v3732_v37 = vpack.c.bf16 %v834_v29, %v830_v26  ;;  %v872_v26 = vld [vmem:[#allocation4 + $0x568] sm:$0xff]  ;;  %v870_v29 = vld [vmem:[#allocation4 + $0x558] sm:$0xff] }
 0x231   :  { %3587 = vmatpush1.bf16.msra.mxu0 %v3586_v41  ;;  %v840_v41 = vld [vmem:[#allocation4 + $0x468] sm:$0xff] }
 0x232   :  { %3715 = vmatpush1.bf16.msra.mxu1 %v3714_v42  ;;  %3589 = vmatprep.subr.bf16.mxu0 %v3588_v11  ;;  %v3606_v42 = vpack.c.bf16 %v831_v35, %v827_v33  ;;  %v838_v11 = vld [vmem:[#allocation4 + $0x458] sm:$0xff]  ;;  %v3608_v48 = vpack.c.bf16 %v840_v41, %v836_v40  ;;  %v3624_v33 = vpack.c.bf16 %v872_v26, %v868_v25  ;;  %v867_v35 = vld [vmem:[#allocation4 + $0x540] sm:$0xff]  ;;  %v873_v40 = vld [vmem:[#allocation4 + $0x570] sm:$0xff] }
 0x233   :  { %3717 = vmatprep.subr.bf16.mxu1 %v3716_v46  ;;  %v839_v46 = vld [vmem:[#allocation4 + $0x460] sm:$0xff]  ;;  %v876_v41 = vld [vmem:[#allocation4 + $0x588] sm:$0xff]  ;;  %v905_v25 = vld [vmem:[#allocation4 + $0x670] sm:$0xff] }
 0x234   :  { %v3610_v54 = vpack.c.bf16 %v839_v46, %v835_v45  ;;  %v3754_v45 = vpack.c.bf16 %v873_v40, %v869_v38  ;;  %v908_v26 = vld [vmem:[#allocation4 + $0x688] sm:$0xff]  ;;  %v911_v38 = vld [vmem:[#allocation4 + $0x6a0] sm:$0xff] }
 0x235   :  { %3591 = vmatpush1.bf16.msra.mxu0 %v3590_v51  ;;  %v3736_v51 = vpack.c.bf16 %v842_v43, %v838_v11  ;;  %v878_v11 = vld [vmem:[#allocation4 + $0x598] sm:$0xff] }
 0x236   :  { %3719 = vmatpush1.bf16.msra.mxu1 %v3718_v52  ;;  %3593 = vmatprep.subr.bf16.mxu0 %v3592_v53  ;;  %v846_v52 = vld [vmem:[#allocation4 + $0x498] sm:$0xff] }
 0x237   :  { %3721 = vmatprep.subr.bf16.mxu1 %v3720_v56  ;;  %v850_v53 = vld [vmem:[#allocation4 + $0x4b8] sm:$0xff]  ;;  %v843_v56 = vld [vmem:[#allocation4 + $0x480] sm:$0xff] }
 0x238   :  { %v3740_v59 = vpack.c.bf16 %v850_v53, %v846_v52  ;;  %v882_v43 = vld [vmem:[#allocation4 + $0x5b8] sm:$0xff]  ;;  %v888_v52 = vld [vmem:[#allocation4 + $0x5e8] sm:$0xff] }
 0x239   :  { %3595 = vmatpush1.bf16.msra.mxu0 %v3594_v62  ;;  %v856_v62 = vld [vmem:[#allocation4 + $0x4e8] sm:$0xff]  ;;  %v3756_v49 = vpack.c.bf16 %v882_v43, %v878_v11  ;;  %v886_v53 = vld [vmem:[#allocation4 + $0x5d8] sm:$0xff] }
 0x23a   :  { %3723 = vmatpush1.bf16.msra.mxu1 %v3722_v63  ;;  %3597 = vmatprep.subr.bf16.mxu0 %v3596_v0  ;;  %v854_v63 = vld [vmem:[#allocation4 + $0x4d8] sm:$0xff]  ;;  %v3614_v0 = vpack.c.bf16 %v847_v57, %v843_v56  ;;  %v3616_v22 = vpack.c.bf16 %v856_v62, %v852_v61  ;;  %v883_v57 = vld [vmem:[#allocation4 + $0x5c0] sm:$0xff]  ;;  %v889_v61 = vld [vmem:[#allocation4 + $0x5f0] sm:$0xff] }
 0x23b   :  { %3725 = vmatprep.subr.bf16.mxu1 %v3724_v4  ;;  %v855_v4 = vld [vmem:[#allocation4 + $0x4e0] sm:$0xff]  ;;  %v892_v62 = vld [vmem:[#allocation4 + $0x608] sm:$0xff]  ;;  %v918_v43 = vld [vmem:[#allocation4 + $0x6d8] sm:$0xff] }
 0x23c   :  { %v920_v11 = vld [vmem:[#allocation4 + $0x6e8] sm:$0xff] }
 0x23d   :  { %3599 = vmatpush1.bf16.msra.mxu0 %v3598_v10  ;;  %v866_v10 = vld [vmem:[#allocation4 + $0x538] sm:$0xff] }
 0x23e   :  { %3727 = vmatpush1.bf16.msra.mxu1 %v3726_v16  ;;  %3601 = vmatprep.subr.bf16.mxu0 %v3600_v17  ;;  %v3618_v16 = vpack.c.bf16 %v855_v4, %v851_v3  ;;  %v3748_v23 = vpack.c.bf16 %v866_v10, %v862_v9  ;;  %v891_v4 = vld [vmem:[#allocation4 + $0x600] sm:$0xff]  ;;  %v904_v9 = vld [vmem:[#allocation4 + $0x668] sm:$0xff]  ;;  %v902_v10 = vld [vmem:[#allocation4 + $0x658] sm:$0xff] }
 0x23f   :  { %3729 = vmatprep.subr.bf16.mxu1 %v3728_v21  ;;  %v861_v21 = vld [vmem:[#allocation4 + $0x510] sm:$0xff] }
 0x241   :  { %3603 = vmatpush1.bf16.msra.mxu0 %v3602_v30  ;;  %v874_v30 = vld [vmem:[#allocation4 + $0x578] sm:$0xff] }
 0x242   :  { %3731 = vmatpush1.bf16.msra.mxu1 %v3730_v31  ;;  %3605 = vmatprep.subr.bf16.mxu0 %v3604_v32  ;;  %v3622_v31 = vpack.c.bf16 %v863_v20, %v859_v18  ;;  %v3750_v32 = vpack.c.bf16 %v865_v24, %v861_v21  ;;  %v3752_v39 = vpack.c.bf16 %v874_v30, %v870_v29  ;;  %v899_v20 = vld [vmem:[#allocation4 + $0x640] sm:$0xff]  ;;  %v912_v29 = vld [vmem:[#allocation4 + $0x6a8] sm:$0xff]  ;;  %v910_v30 = vld [vmem:[#allocation4 + $0x698] sm:$0xff] }
 0x243   :  { %3733 = vmatprep.subr.bf16.mxu1 %v3732_v37  ;;  %v871_v37 = vld [vmem:[#allocation4 + $0x560] sm:$0xff]  ;;  %v3640_v18 = vpack.c.bf16 %v904_v9, %v900_v8  ;;  %v937_v8 = vld [vmem:[#allocation4 + $0x770] sm:$0xff]  ;;  %v940_v9 = vld [vmem:[#allocation4 + $0x788] sm:$0xff] }
 0x244   :  { %1612 = vmatmul.mubr.f32.vlgmr.msra.gmra.mrb[4].mxu0 %v4562_v28  ;;  %v903_v21 = vld [vmem:[#allocation4 + $0x660] sm:$0xff] }
 0x245   :  { %1754 = vmatmul.mubr.f32.vlgmr.msra.gmra.mrb[4].mxu1 %v4562_v28  ;;  %3607 = vmatpush1.bf16.msra.mxu0 %v3606_v42  ;;  %v858_v28 = vld [vmem:[#allocation4 + $0x4f8] sm:$0xff]  ;;  %v880_v42 = vld [vmem:[#allocation4 + $0x5a8] sm:$0xff] }
 0x246   :  { %1682 = vmatprep.mubr.f32.mxu0 %v4568_v36  ;;  %3735 = vmatpush1.bf16.msra.mxu1 %v3734_v44  ;;  %v3744_v6 = vpack.c.bf16 %v858_v28, %v854_v63  ;;  %v3626_v44 = vpack.c.bf16 %v871_v37, %v867_v35  ;;  %v3628_v46 = vpack.c.bf16 %v880_v42, %v876_v41  ;;  %v896_v63 = vld [vmem:[#allocation4 + $0x628] sm:$0xff]  ;;  %v894_v28 = vld [vmem:[#allocation4 + $0x618] sm:$0xff]  ;;  %v907_v37 = vld [vmem:[#allocation4 + $0x680] sm:$0xff] }
 0x247   :  { %1824 = vmatprep.mubr.f32.mxu1 %v4568_v36  ;;  %3609 = vmatprep.subr.bf16.mxu0 %v3608_v48  ;;  %v857_v36 = vld [vmem:[#allocation4 + $0x4f0] sm:$0xff]  ;;  %v879_v48 = vld [vmem:[#allocation4 + $0x5a0] sm:$0xff]  ;;  %v3636_v3 = vpack.c.bf16 %v896_v63, %v892_v62  ;;  %v3644_v35 = vpack.c.bf16 %v912_v29, %v908_v26  ;;  %v916_v42 = vld [vmem:[#allocation4 + $0x6c8] sm:$0xff] }
 0x248   :  { %3737 = vmatprep.subr.bf16.mxu1 %v3736_v51  ;;  %v3746_v17 = vpack.c.bf16 %v857_v36, %v853_v5  ;;  %v884_v51 = vld [vmem:[#allocation4 + $0x5c8] sm:$0xff]  ;;  %v895_v5 = vld [vmem:[#allocation4 + $0x620] sm:$0xff]  ;;  %v913_v41 = vld [vmem:[#allocation4 + $0x6b0] sm:$0xff] }
 0x249   :  { %3611 = vmatpush1.bf16.msra.mxu0 %v3610_v54  ;;  %v890_v54 = vld [vmem:[#allocation4 + $0x5f8] sm:$0xff]  ;;  %v3632_v56 = vpack.c.bf16 %v888_v52, %v884_v51  ;;  %v921_v51 = vld [vmem:[#allocation4 + $0x6f0] sm:$0xff]  ;;  %v924_v52 = vld [vmem:[#allocation4 + $0x708] sm:$0xff] }
 0x24a   :  { %3739 = vmatpush1.bf16.msra.mxu1 %v3738_v55  ;;  %3613 = vmatprep.subr.bf16.mxu0 %v3612_v13  ;;  %v3630_v55 = vpack.c.bf16 %v879_v48, %v875_v47  ;;  %v3758_v13 = vpack.c.bf16 %v881_v50, %v877_v34  ;;  %v3760_v60 = vpack.c.bf16 %v890_v54, %v886_v53  ;;  %v915_v48 = vld [vmem:[#allocation4 + $0x6c0] sm:$0xff]  ;;  %v928_v53 = vld [vmem:[#allocation4 + $0x728] sm:$0xff]  ;;  %v926_v54 = vld [vmem:[#allocation4 + $0x718] sm:$0xff] }
 0x24b   :  { %3741 = vmatprep.subr.bf16.mxu1 %v3740_v59  ;;  %v885_v59 = vld [vmem:[#allocation4 + $0x5d0] sm:$0xff]  ;;  %v3648_v47 = vpack.c.bf16 %v920_v11, %v916_v42  ;;  %v919_v34 = vld [vmem:[#allocation4 + $0x6e0] sm:$0xff]  ;;  %v932_v63 = vld [vmem:[#allocation4 + $0x748] sm:$0xff] }
 0x24c   :  { %v929_v62 = vld [vmem:[#allocation4 + $0x730] sm:$0xff]  ;;  %v948_v29 = vld [vmem:[#allocation4 + $0x7c8] sm:$0xff] }
 0x24d   :  { %3615 = vmatpush1.bf16.msra.mxu0 %v3614_v0  ;;  %v898_v0 = vld [vmem:[#allocation4 + $0x638] sm:$0xff]  ;;  %v945_v26 = vld [vmem:[#allocation4 + $0x7b0] sm:$0xff]  ;;  %v2084_v11 = vld [vmem:[#allocation9 + $0x8] sm:$0xff] }
 0x24e   :  { %3743 = vmatpush1.bf16.msra.mxu1 %v3742_v2  ;;  %3617 = vmatprep.subr.bf16.mxu0 %v3616_v22  ;;  %v3634_v2 = vpack.c.bf16 %v887_v58, %v883_v57  ;;  %v3762_v22 = vpack.c.bf16 %v889_v61, %v885_v59  ;;  %v3764_v36 = vpack.c.bf16 %v898_v0, %v894_v28  ;;  %v923_v58 = vld [vmem:[#allocation4 + $0x700] sm:$0xff]  ;;  %v936_v28 = vld [vmem:[#allocation4 + $0x768] sm:$0xff]  ;;  %v934_v0 = vld [vmem:[#allocation4 + $0x758] sm:$0xff] }
 0x24f   :  { %3745 = vmatprep.subr.bf16.mxu1 %v3744_v6  ;;  %v893_v6 = vld [vmem:[#allocation4 + $0x610] sm:$0xff]  ;;  %v3652_v57 = vpack.c.bf16 %v928_v53, %v924_v52  ;;  %v927_v59 = vld [vmem:[#allocation4 + $0x720] sm:$0xff] }
 0x250   :  { %v953_v42 = vld [vmem:[#allocation4 + $0x7f0] sm:$0xff] }
 0x251   :  { %3619 = vmatpush1.bf16.msra.mxu0 %v3618_v16  ;;  %v906_v16 = vld [vmem:[#allocation4 + $0x678] sm:$0xff]  ;;  %v2085_v53 = vld [vmem:[#allocation9 + $0x10] sm:$0xff] }
 0x252   :  { %3747 = vmatpush1.bf16.msra.mxu1 %v3746_v17  ;;  %3621 = vmatprep.subr.bf16.mxu0 %v3620_v19  ;;  %v3638_v17 = vpack.c.bf16 %v895_v5, %v891_v4  ;;  %v3766_v19 = vpack.c.bf16 %v897_v7, %v893_v6  ;;  %v3768_v24 = vpack.c.bf16 %v906_v16, %v902_v10  ;;  %v931_v5 = vld [vmem:[#allocation4 + $0x740] sm:$0xff]  ;;  %v944_v10 = vld [vmem:[#allocation4 + $0x7a8] sm:$0xff]  ;;  %v942_v16 = vld [vmem:[#allocation4 + $0x798] sm:$0xff] }
 0x253   :  { %3749 = vmatprep.subr.bf16.mxu1 %v3748_v23  ;;  %v901_v23 = vld [vmem:[#allocation4 + $0x650] sm:$0xff]  ;;  %v3656_v4 = vpack.c.bf16 %v936_v28, %v932_v63  ;;  %v935_v6 = vld [vmem:[#allocation4 + $0x760] sm:$0xff] }
 0x254   :  { %v2091_v28 = vld [vmem:[#allocation9 + $0x40] sm:$0xff] }
 0x255   :  { %3623 = vmatpush1.bf16.msra.mxu0 %v3622_v31  ;;  %v914_v31 = vld [vmem:[#allocation4 + $0x6b8] sm:$0xff] }
 0x256   :  { %3751 = vmatpush1.bf16.msra.mxu1 %v3750_v32  ;;  %3625 = vmatprep.subr.bf16.mxu0 %v3624_v33  ;;  %v3642_v32 = vpack.c.bf16 %v903_v21, %v899_v20  ;;  %v3770_v33 = vpack.c.bf16 %v905_v25, %v901_v23  ;;  %v3772_v40 = vpack.c.bf16 %v914_v31, %v910_v30  ;;  %v939_v21 = vld [vmem:[#allocation4 + $0x780] sm:$0xff]  ;;  %v952_v30 = vld [vmem:[#allocation4 + $0x7e8] sm:$0xff]  ;;  %v950_v31 = vld [vmem:[#allocation4 + $0x7d8] sm:$0xff] }
 0x257   :  { %3753 = vmatprep.subr.bf16.mxu1 %v3752_v39  ;;  %v909_v39 = vld [vmem:[#allocation4 + $0x690] sm:$0xff]  ;;  %v3660_v20 = vpack.c.bf16 %v944_v10, %v940_v9  ;;  %v943_v23 = vld [vmem:[#allocation4 + $0x7a0] sm:$0xff] }
 0x258   :  { %v2097_v10 = vld [vmem:[#allocation9 + $0x70] sm:$0xff] }
 0x259   :  { %3627 = vmatpush1.bf16.msra.mxu0 %v3626_v44  ;;  %v922_v44 = vld [vmem:[#allocation4 + $0x6f8] sm:$0xff] }
 0x25a   :  { %3755 = vmatpush1.bf16.msra.mxu1 %v3754_v45  ;;  %3629 = vmatprep.subr.bf16.mxu0 %v3628_v46  ;;  %v3646_v45 = vpack.c.bf16 %v911_v38, %v907_v37  ;;  %v3774_v46 = vpack.c.bf16 %v913_v41, %v909_v39  ;;  %v3776_v50 = vpack.c.bf16 %v922_v44, %v918_v43  ;;  %v947_v38 = vld [vmem:[#allocation4 + $0x7c0] sm:$0xff]  ;;  %v2133_v44 = vld [vmem:[#allocation9 + $0x190] sm:$0xff] }
 0x25b   :  { %3757 = vmatprep.subr.bf16.mxu1 %v3756_v49  ;;  %v917_v49 = vld [vmem:[#allocation4 + $0x6d0] sm:$0xff]  ;;  %v3664_v37 = vpack.c.bf16 %v952_v30, %v948_v29  ;;  %v951_v39 = vld [vmem:[#allocation4 + $0x7e0] sm:$0xff]  ;;  %v2106_v30 = vld [vmem:[#allocation9 + $0xb8] sm:$0xff] }
 0x25c   :  { %v2087_v43 = vld [vmem:[#allocation9 + $0x20] sm:$0xff] }
 0x25d   :  { %3631 = vmatpush1.bf16.msra.mxu0 %v3630_v55  ;;  %v930_v55 = vld [vmem:[#allocation4 + $0x738] sm:$0xff]  ;;  %v2103_v29 = vld [vmem:[#allocation9 + $0xa0] sm:$0xff] }
 0x25e   :  { %3759 = vmatpush1.bf16.msra.mxu1 %v3758_v13  ;;  %3633 = vmatprep.subr.bf16.mxu0 %v3632_v56  ;;  %v3650_v13 = vpack.c.bf16 %v919_v34, %v915_v48  ;;  %v3778_v56 = vpack.c.bf16 %v921_v51, %v917_v49  ;;  %v3780_v61 = vpack.c.bf16 %v930_v55, %v926_v54  ;;  %v2083_v34 = vld [vmem:[#allocation9] sm:$0xff]  ;;  %v2086_v49 = vld [vmem:[#allocation9 + $0x18] sm:$0xff]  ;;  %v2093_v51 = vld [vmem:[#allocation9 + $0x50] sm:$0xff] }
 0x25f   :  { %3761 = vmatprep.subr.bf16.mxu1 %v3760_v60  ;;  %v925_v60 = vld [vmem:[#allocation4 + $0x710] sm:$0xff]  ;;  %v3796_v48 = vpack.c.bf16 %v2087_v43, %v2084_v11  ;;  %v2088_v54 = vld [vmem:[#allocation9 + $0x28] sm:$0xff]  ;;  %v2139_v55 = vld [vmem:[#allocation9 + $0x1c0] sm:$0xff] }
 0x260   :  { %v2109_v11 = vld [vmem:[#allocation9 + $0xd0] sm:$0xff]  ;;  %v2112_v43 = vld [vmem:[#allocation9 + $0xe8] sm:$0xff] }
 0x261   :  { %3635 = vmatpush1.bf16.msra.mxu0 %v3634_v2  ;;  %v938_v2 = vld [vmem:[#allocation4 + $0x778] sm:$0xff] }
 0x262   :  { %3763 = vmatpush1.bf16.msra.mxu1 %v3762_v22  ;;  %3637 = vmatprep.subr.bf16.mxu0 %v3636_v3  ;;  %v3654_v22 = vpack.c.bf16 %v927_v59, %v923_v58  ;;  %v3782_v3 = vpack.c.bf16 %v929_v62, %v925_v60  ;;  %v3784_v7 = vpack.c.bf16 %v938_v2, %v934_v0  ;;  %v2089_v58 = vld [vmem:[#allocation9 + $0x30] sm:$0xff]  ;;  %v2092_v59 = vld [vmem:[#allocation9 + $0x48] sm:$0xff]  ;;  %v2099_v62 = vld [vmem:[#allocation9 + $0x80] sm:$0xff] }
 0x263   :  { %3765 = vmatprep.subr.bf16.mxu1 %v3764_v36  ;;  %v933_v36 = vld [vmem:[#allocation4 + $0x750] sm:$0xff]  ;;  %v2096_v60 = vld [vmem:[#allocation9 + $0x68] sm:$0xff]  ;;  %v2094_v0 = vld [vmem:[#allocation9 + $0x58] sm:$0xff] }
 0x264   :  { %v2145_v2 = vld [vmem:[#allocation9 + $0x1f0] sm:$0xff] }
 0x265   :  { %3639 = vmatpush1.bf16.msra.mxu0 %v3638_v17  ;;  %v946_v17 = vld [vmem:[#allocation4 + $0x7b8] sm:$0xff] }
 0x266   :  { %3767 = vmatpush1.bf16.msra.mxu1 %v3766_v19  ;;  %3641 = vmatprep.subr.bf16.mxu0 %v3640_v18  ;;  %v3658_v19 = vpack.c.bf16 %v935_v6, %v931_v5  ;;  %v3786_v18 = vpack.c.bf16 %v937_v8, %v933_v36  ;;  %v3788_v25 = vpack.c.bf16 %v946_v17, %v942_v16  ;;  %v2095_v5 = vld [vmem:[#allocation9 + $0x60] sm:$0xff]  ;;  %v2098_v6 = vld [vmem:[#allocation9 + $0x78] sm:$0xff]  ;;  %v2105_v8 = vld [vmem:[#allocation9 + $0xb0] sm:$0xff] }
 0x267   :  { %3769 = vmatprep.subr.bf16.mxu1 %v3768_v24  ;;  %v941_v24 = vld [vmem:[#allocation4 + $0x790] sm:$0xff]  ;;  %v2102_v36 = vld [vmem:[#allocation9 + $0x98] sm:$0xff]  ;;  %v2100_v16 = vld [vmem:[#allocation9 + $0x88] sm:$0xff] }
 0x268   :  { %v2151_v17 = vld [vmem:[#allocation9 + $0x220] sm:$0xff] }
 0x269   :  { %3643 = vmatpush1.bf16.msra.mxu0 %v3642_v32  ;;  %v954_v32 = vld [vmem:[#allocation4 + $0x7f8] sm:$0xff] }
 0x26a   :  { %3771 = vmatpush1.bf16.msra.mxu1 %v3770_v33  ;;  %3645 = vmatprep.subr.bf16.mxu0 %v3644_v35  ;;  %v3662_v33 = vpack.c.bf16 %v943_v23, %v939_v21  ;;  %v3790_v35 = vpack.c.bf16 %v945_v26, %v941_v24  ;;  %v3792_v41 = vpack.c.bf16 %v954_v32, %v950_v31  ;;  %v2104_v21 = vld [vmem:[#allocation9 + $0xa8] sm:$0xff]  ;;  %v2157_v31 = vld [vmem:[#allocation9 + $0x250] sm:$0xff] }
 0x26b   :  { %3773 = vmatprep.subr.bf16.mxu1 %v3772_v40  ;;  %v949_v40 = vld [vmem:[#allocation4 + $0x7d0] sm:$0xff]  ;;  %v2108_v23 = vld [vmem:[#allocation9 + $0xc8] sm:$0xff]  ;;  %v3934_v24 = vpack.c.bf16 %v2100_v16, %v2097_v10 }
 0x26c   :  { %v2160_v32 = vld [vmem:[#allocation9 + $0x268] sm:$0xff] }
 0x26d   :  { %3647 = vmatpush1.bf16.msra.mxu0 %v3646_v45  ;;  %v2136_v45 = vld [vmem:[#allocation9 + $0x1a8] sm:$0xff] }
 0x26e   :  { %3775 = vmatpush1.bf16.msra.mxu1 %v3774_v46  ;;  %3649 = vmatprep.subr.bf16.mxu0 %v3648_v47  ;;  %v3666_v46 = vpack.c.bf16 %v951_v39, %v947_v38  ;;  %v3794_v47 = vpack.c.bf16 %v953_v42, %v949_v40  ;;  %v3924_v52 = vpack.c.bf16 %v2136_v45, %v2133_v44  ;;  %v2110_v38 = vld [vmem:[#allocation9 + $0xd8] sm:$0xff]  ;;  %v2163_v44 = vld [vmem:[#allocation9 + $0x280] sm:$0xff]  ;;  %v2140_v10 = vld [vmem:[#allocation9 + $0x1c8] sm:$0xff] }
 0x26f   :  { %3777 = vmatprep.subr.bf16.mxu1 %v3776_v50  ;;  %v2090_v50 = vld [vmem:[#allocation9 + $0x38] sm:$0xff]  ;;  %v3938_v40 = vpack.c.bf16 %v2106_v30, %v2103_v29  ;;  %v3940_v42 = vpack.c.bf16 %v2160_v32, %v2157_v31  ;;  %v2144_v16 = vld [vmem:[#allocation9 + $0x1e8] sm:$0xff]  ;;  %v2159_v31 = vld [vmem:[#allocation9 + $0x260] sm:$0xff] }
 0x270   :  { %v2114_v39 = vld [vmem:[#allocation9 + $0xf8] sm:$0xff]  ;;  %v2152_v29 = vld [vmem:[#allocation9 + $0x228] sm:$0xff] }
 0x271   :  { %3651 = vmatpush1.bf16.msra.mxu0 %v3650_v13  ;;  %v2142_v13 = vld [vmem:[#allocation9 + $0x1d8] sm:$0xff]  ;;  %v2156_v30 = vld [vmem:[#allocation9 + $0x248] sm:$0xff] }
 0x272   :  { %3779 = vmatpush1.bf16.msra.mxu1 %v3778_v56  ;;  %3653 = vmatprep.subr.bf16.mxu0 %v3652_v57  ;;  %v3798_v56 = vpack.c.bf16 %v2086_v49, %v2083_v34  ;;  %v3800_v57 = vpack.c.bf16 %v2093_v51, %v2090_v50  ;;  %v3928_v63 = vpack.c.bf16 %v2142_v13, %v2139_v55  ;;  %v2166_v45 = vld [vmem:[#allocation9 + $0x298] sm:$0xff]  ;;  %v2116_v34 = vld [vmem:[#allocation9 + $0x108] sm:$0xff]  ;;  %v2123_v51 = vld [vmem:[#allocation9 + $0x140] sm:$0xff] }
 0x273   :  { %3781 = vmatprep.subr.bf16.mxu1 %v3780_v61  ;;  %v3926_v61 = vpack.c.bf16 %v2088_v54, %v2085_v53  ;;  %v2120_v49 = vld [vmem:[#allocation9 + $0x128] sm:$0xff]  ;;  %v3942_v50 = vpack.c.bf16 %v2112_v43, %v2109_v11  ;;  %v2115_v53 = vld [vmem:[#allocation9 + $0x100] sm:$0xff]  ;;  %v2118_v54 = vld [vmem:[#allocation9 + $0x118] sm:$0xff] }
 0x274   :  { %v3820_v13 = vpack.c.bf16 %v2123_v51, %v2120_v49  ;;  %v2164_v11 = vld [vmem:[#allocation9 + $0x288] sm:$0xff]  ;;  %v2169_v49 = vld [vmem:[#allocation9 + $0x2b0] sm:$0xff] }
 0x275   :  { %3655 = vmatpush1.bf16.msra.mxu0 %v3654_v22  ;;  %v2148_v22 = vld [vmem:[#allocation9 + $0x208] sm:$0xff] }
 0x276   :  { %3783 = vmatpush1.bf16.msra.mxu1 %v3782_v3  ;;  %3657 = vmatprep.subr.bf16.mxu0 %v3656_v4  ;;  %v3802_v3 = vpack.c.bf16 %v2092_v59, %v2089_v58  ;;  %v3804_v4 = vpack.c.bf16 %v2099_v62, %v2096_v60  ;;  %v3932_v9 = vpack.c.bf16 %v2148_v22, %v2145_v2  ;;  %v2126_v59 = vld [vmem:[#allocation9 + $0x158] sm:$0xff]  ;;  %v2129_v60 = vld [vmem:[#allocation9 + $0x170] sm:$0xff]  ;;  %v2135_v2 = vld [vmem:[#allocation9 + $0x1a0] sm:$0xff] }
 0x277   :  { %3785 = vmatprep.subr.bf16.mxu1 %v3784_v7  ;;  %v3930_v7 = vpack.c.bf16 %v2094_v0, %v2091_v28  ;;  %v3946_v58 = vpack.c.bf16 %v2118_v54, %v2115_v53  ;;  %v3824_v62 = vpack.c.bf16 %v2129_v60, %v2126_v59  ;;  %v2128_v28 = vld [vmem:[#allocation9 + $0x168] sm:$0xff]  ;;  %v2170_v53 = vld [vmem:[#allocation9 + $0x2b8] sm:$0xff]  ;;  %v2177_v59 = vld [vmem:[#allocation9 + $0x2f0] sm:$0xff] }
 0x278   :  { %v2132_v0 = vld [vmem:[#allocation9 + $0x188] sm:$0xff]  ;;  %v2175_v60 = vld [vmem:[#allocation9 + $0x2e0] sm:$0xff] }
 0x279   :  { %3659 = vmatpush1.bf16.msra.mxu0 %v3658_v19  ;;  %v2154_v19 = vld [vmem:[#allocation9 + $0x238] sm:$0xff]  ;;  %v2172_v51 = vld [vmem:[#allocation9 + $0x2c8] sm:$0xff] }
 0x27a   :  { %3787 = vmatpush1.bf16.msra.mxu1 %v3786_v18  ;;  %3661 = vmatprep.subr.bf16.mxu0 %v3660_v20  ;;  %v3806_v18 = vpack.c.bf16 %v2098_v6, %v2095_v5  ;;  %v2101_v20 = vld [vmem:[#allocation9 + $0x90] sm:$0xff]  ;;  %v3936_v26 = vpack.c.bf16 %v2154_v19, %v2151_v17  ;;  %v2134_v5 = vld [vmem:[#allocation9 + $0x198] sm:$0xff]  ;;  %v2147_v17 = vld [vmem:[#allocation9 + $0x200] sm:$0xff]  ;;  %v3948_v54 = vpack.c.bf16 %v2172_v51, %v2169_v49 }
 0x27b   :  { %3789 = vmatprep.subr.bf16.mxu1 %v3788_v25  ;;  %v2111_v25 = vld [vmem:[#allocation9 + $0xe0] sm:$0xff]  ;;  %v2138_v6 = vld [vmem:[#allocation9 + $0x1b8] sm:$0xff]  ;;  %v2181_v51 = vld [vmem:[#allocation9 + $0x310] sm:$0xff] }
 0x27d   :  { %3663 = vmatpush1.bf16.msra.mxu0 %v3662_v33  ;;  %v3810_v33 = vpack.c.bf16 %v2104_v21, %v2101_v20  ;;  %v2146_v20 = vld [vmem:[#allocation9 + $0x1f8] sm:$0xff] }
 0x27e   :  { %3791 = vmatpush1.bf16.msra.mxu1 %v3790_v35  ;;  %3665 = vmatprep.subr.bf16.mxu0 %v3664_v37  ;;  %v3812_v35 = vpack.c.bf16 %v2111_v25, %v2108_v23  ;;  %v2107_v37 = vld [vmem:[#allocation9 + $0xc0] sm:$0xff]  ;;  %v2150_v21 = vld [vmem:[#allocation9 + $0x218] sm:$0xff]  ;;  %v2153_v23 = vld [vmem:[#allocation9 + $0x230] sm:$0xff] }
 0x27f   :  { %3793 = vmatprep.subr.bf16.mxu1 %v3792_v41  ;;  %v2117_v41 = vld [vmem:[#allocation9 + $0x110] sm:$0xff]  ;;  %v3840_v25 = vpack.c.bf16 %v2153_v23, %v2150_v21 }
 0x281   :  { %3667 = vmatpush1.bf16.msra.mxu0 %v3666_v46  ;;  %v3814_v46 = vpack.c.bf16 %v2110_v38, %v2107_v37  ;;  %v2158_v37 = vld [vmem:[#allocation9 + $0x258] sm:$0xff] }
 0x282   :  { %3795 = vmatpush1.bf16.msra.mxu1 %v3794_v47  ;;  %3797 = vmatprep.subr.bf16.mxu0 %v3796_v48  ;;  %v3816_v47 = vpack.c.bf16 %v2117_v41, %v2114_v39  ;;  %v2113_v48 = vld [vmem:[#allocation9 + $0xf0] sm:$0xff]  ;;  %v2162_v38 = vld [vmem:[#allocation9 + $0x278] sm:$0xff] }
 0x283   :  { %3925 = vmatprep.subr.bf16.mxu1 %v3924_v52  ;;  %v3944_v52 = vpack.c.bf16 %v2166_v45, %v2163_v44  ;;  %v3818_v55 = vpack.c.bf16 %v2116_v34, %v2113_v48  ;;  %v2165_v39 = vld [vmem:[#allocation9 + $0x290] sm:$0xff]  ;;  %v2168_v48 = vld [vmem:[#allocation9 + $0x2a8] sm:$0xff]  ;;  %v2171_v34 = vld [vmem:[#allocation9 + $0x2c0] sm:$0xff] }
 0x284   :  { %1683 = vmatmul.mubr.f32.vlgmr.msra.gmra.mrb[4].mxu0 %v4581_v1  ;;  %v3848_v41 = vpack.c.bf16 %v2165_v39, %v2162_v38 }
 0x285   :  { %1825 = vmatmul.mubr.f32.vlgmr.msra.gmra.mrb[4].mxu1 %v4581_v1  ;;  %3799 = vmatpush1.bf16.msra.mxu0 %v3798_v56  ;;  %v3808_v1 = vpack.c.bf16 %v2105_v8, %v2102_v36  ;;  %v2119_v56 = vld [vmem:[#allocation9 + $0x120] sm:$0xff]  ;;  %v2141_v36 = vld [vmem:[#allocation9 + $0x1d0] sm:$0xff] }
 0x286   :  { %3801 = vmatprep.subr.bf16.mxu0 %v3800_v57  ;;  %3927 = vmatpush3.bf16.msra.mxu1 %v3926_v61  ;;  %v2122_v57 = vld [vmem:[#allocation9 + $0x138] sm:$0xff]  ;;  %v3832_v8 = vpack.c.bf16 %v2141_v36, %v2138_v6  ;;  %v2183_v6 = vld [vmem:[#allocation9 + $0x320] sm:$0xff]  ;;  %v2229_v36 = vld [vmem:[#allocation9 + $0x490] sm:$0xff] }
 0x287   :  { %3929 = vmatprep.subr.bf16.mxu1 %v3928_v63  ;;  %v3822_v61 = vpack.c.bf16 %v2122_v57, %v2119_v56  ;;  %v2125_v63 = vld [vmem:[#allocation9 + $0x150] sm:$0xff]  ;;  %v2124_v56 = vld [vmem:[#allocation9 + $0x148] sm:$0xff] }
 0x288   :  { %v3826_v22 = vpack.c.bf16 %v2128_v28, %v2125_v63  ;;  %v2173_v63 = vld [vmem:[#allocation9 + $0x2d0] sm:$0xff]  ;;  %v2176_v28 = vld [vmem:[#allocation9 + $0x2e8] sm:$0xff] }
 0x289   :  { %3803 = vmatpush1.bf16.msra.mxu0 %v3802_v3  ;;  %v3828_v3 = vpack.c.bf16 %v2135_v2, %v2132_v0  ;;  %v3858_v2 = vpack.c.bf16 %v2176_v28, %v2173_v63  ;;  %v2188_v63 = vld [vmem:[#allocation9 + $0x348] sm:$0xff] }
 0x28a   :  { %3805 = vmatprep.subr.bf16.mxu0 %v3804_v4  ;;  %3931 = vmatpush3.bf16.msra.mxu1 %v3930_v7  ;;  %v2131_v4 = vld [vmem:[#allocation9 + $0x180] sm:$0xff] }
 0x28b   :  { %3933 = vmatprep.subr.bf16.mxu1 %v3932_v9  ;;  %v3830_v7 = vpack.c.bf16 %v2134_v5, %v2131_v4  ;;  %v2137_v9 = vld [vmem:[#allocation9 + $0x1b0] sm:$0xff]  ;;  %v2180_v5 = vld [vmem:[#allocation9 + $0x308] sm:$0xff] }
 0x28c   :  { %v3834_v19 = vpack.c.bf16 %v2140_v10, %v2137_v9  ;;  %v695_v10 = vld [vmem:[%s4695_s8] sm:$0xf] }
 0x28d   :  { %3807 = vmatpush1.bf16.msra.mxu0 %v3806_v18  ;;  %v3836_v18 = vpack.c.bf16 %v2147_v17, %v2144_v16  ;;  %v696_v16 = vld [vmem:[%s4696_s9] sm:$0xf] }
 0x28e   :  { %3809 = vmatprep.subr.bf16.mxu0 %v3808_v1  ;;  %3935 = vmatpush3.bf16.msra.mxu1 %v3934_v24  ;;  %v2143_v1 = vld [vmem:[#allocation9 + $0x1e0] sm:$0xff]  ;;  %v697_v17 = vmul.f32 %v696_v16, %v695_v10  ;;  %v2194_v10 = vld [vmem:[#allocation9 + $0x378] sm:$0xff] }
 0x28f   :  { %3937 = vmatprep.subr.bf16.mxu1 %v3936_v26  ;;  %v3838_v24 = vpack.c.bf16 %v2146_v20, %v2143_v1  ;;  %v2149_v26 = vld [vmem:[#allocation9 + $0x210] sm:$0xff] }
 0x290   :  { %v3842_v32 = vpack.c.bf16 %v2152_v29, %v2149_v26 }
 0x291   :  { %3811 = vmatpush1.bf16.msra.mxu0 %v3810_v33  ;;  %v3844_v33 = vpack.c.bf16 %v2159_v31, %v2156_v30 }
 0x292   :  { %3813 = vmatprep.subr.bf16.mxu0 %v3812_v35  ;;  %3939 = vmatpush3.bf16.msra.mxu1 %v3938_v40  ;;  %v2155_v35 = vld [vmem:[#allocation9 + $0x240] sm:$0xff] }
 0x293   :  { %3941 = vmatprep.subr.bf16.mxu1 %v3940_v42  ;;  %v3846_v40 = vpack.c.bf16 %v2158_v37, %v2155_v35  ;;  %v2161_v42 = vld [vmem:[#allocation9 + $0x270] sm:$0xff] }
 0x294   :  { %v3850_v43 = vpack.c.bf16 %v2164_v11, %v2161_v42 }
 0x295   :  { %3815 = vmatpush1.bf16.msra.mxu0 %v3814_v46 }
 0x296   :  { %3817 = vmatprep.subr.bf16.mxu0 %v3816_v47  ;;  %3943 = vmatpush3.bf16.msra.mxu1 %v3942_v50  ;;  %v3852_v50 = vpack.c.bf16 %v2171_v34, %v2168_v48 }
 0x297   :  { %3945 = vmatprep.subr.bf16.mxu1 %v3944_v52  ;;  %v2167_v52 = vld [vmem:[#allocation9 + $0x2a0] sm:$0xff] }
 0x299   :  { %3819 = vmatpush1.bf16.msra.mxu0 %v3818_v55  ;;  %v3854_v55 = vpack.c.bf16 %v2170_v53, %v2167_v52  ;;  %v2184_v52 = vld [vmem:[#allocation9 + $0x328] sm:$0xff] }
 0x29a   :  { %3821 = vmatprep.subr.bf16.mxu0 %v3820_v13  ;;  %3947 = vmatpush3.bf16.msra.mxu1 %v3946_v58  ;;  %v2121_v13 = vld [vmem:[#allocation9 + $0x130] sm:$0xff]  ;;  %v2174_v58 = vld [vmem:[#allocation9 + $0x2d8] sm:$0xff] }
 0x29b   :  { %v3950_v57 = vpack.c.bf16 %v2124_v56, %v2121_v13  ;;  %3949 = vmatprep.subr.bf16.mxu1 %v3948_v54  ;;  %v2186_v54 = vld [vmem:[#allocation9 + $0x338] sm:$0xff]  ;;  %v2189_v56 = vld [vmem:[#allocation9 + $0x350] sm:$0xff] }
 0x29d   :  { %3823 = vmatpush1.bf16.msra.mxu0 %v3822_v61  ;;  %v3856_v61 = vpack.c.bf16 %v2177_v59, %v2174_v58  ;;  %v2238_v58 = vld [vmem:[#allocation9 + $0x4d8] sm:$0xff] }
 0x29e   :  { %3825 = vmatprep.subr.bf16.mxu0 %v3824_v62  ;;  %3951 = vmatpush3.bf16.msra.mxu1 %v3950_v57  ;;  %v2178_v62 = vld [vmem:[#allocation9 + $0x2f8] sm:$0xff]  ;;  %v2235_v57 = vld [vmem:[#allocation9 + $0x4c0] sm:$0xff] }
 0x29f   :  { %v3952_v0 = vpack.c.bf16 %v2178_v62, %v2175_v60  ;;  %v2185_v62 = vld [vmem:[#allocation9 + $0x330] sm:$0xff] }
 0x2a1   :  { %3827 = vmatpush1.bf16.msra.mxu0 %v3826_v22  ;;  %v2127_v22 = vld [vmem:[#allocation9 + $0x160] sm:$0xff]  ;;  %3953 = vmatprep.subr.bf16.mxu1 %v3952_v0 }
 0x2a2   :  { %3829 = vmatprep.subr.bf16.mxu0 %v3828_v3  ;;  %v2130_v3 = vld [vmem:[#allocation9 + $0x178] sm:$0xff]  ;;  %v2187_v0 = vld [vmem:[#allocation9 + $0x340] sm:$0xff] }
 0x2a3   :  { %v3954_v4 = vpack.c.bf16 %v2130_v3, %v2127_v22  ;;  %v2192_v22 = vld [vmem:[#allocation9 + $0x368] sm:$0xff]  ;;  %v3864_v3 = vpack.c.bf16 %v2189_v56, %v2186_v54  ;;  %v2262_v54 = vld [vmem:[#allocation9 + $0x598] sm:$0xff] }
 0x2a5   :  { %3831 = vmatpush1.bf16.msra.mxu0 %v3830_v7  ;;  %3955 = vmatpush3.bf16.msra.mxu1 %v3954_v4  ;;  %v3860_v7 = vpack.c.bf16 %v2183_v6, %v2180_v5  ;;  %v3960_v4 = vpack.c.bf16 %v2238_v58, %v2235_v57  ;;  %v2195_v5 = vld [vmem:[#allocation9 + $0x380] sm:$0xff]  ;;  %v2244_v6 = vld [vmem:[#allocation9 + $0x508] sm:$0xff]  ;;  %v2209_v57 = vld [vmem:[#allocation9 + $0x3f0] sm:$0xff] }
 0x2a6   :  { %3833 = vmatprep.subr.bf16.mxu0 %v3832_v8  ;;  %v2232_v8 = vld [vmem:[#allocation9 + $0x4a8] sm:$0xff]  ;;  %v3868_v16 = vpack.c.bf16 %v2195_v5, %v2192_v22  ;;  %v2218_v5 = vld [vmem:[#allocation9 + $0x438] sm:$0xff] }
 0x2a7   :  { %v3956_v9 = vpack.c.bf16 %v2232_v8, %v2229_v36  ;;  %v2212_v58 = vld [vmem:[#allocation9 + $0x408] sm:$0xff] }
 0x2a8   :  { %v3882_v22 = vpack.c.bf16 %v2212_v58, %v2209_v57  ;;  %v2240_v57 = vld [vmem:[#allocation9 + $0x4e8] sm:$0xff] }
 0x2a9   :  { %3835 = vmatpush1.bf16.msra.mxu0 %v3834_v19  ;;  %3957 = vmatprep.subr.bf16.mxu1 %v3956_v9  ;;  %v1521_v19 = vld [vmem:[%s4693_s6] sm:$0xf] }
 0x2aa   :  { %3837 = vmatprep.subr.bf16.mxu0 %v3836_v18  ;;  %v694_v18 = vld [vmem:[%s4694_s7] sm:$0xf]  ;;  %v1526_v1 = vrot.slane %v1521_v19, %v4534_v12  ;;  %v1534_v21 = vrot.slane %v1521_v19, %v4576_v27  ;;  %v1530_v23 = vrot.slane %v1521_v19, %v4542_v14 }
 0x2ab   :  { %v4607_v20 = vadd.f32 %v697_v17, %v694_v18  ;;  %v2191_v9 = vld [vmem:[#allocation9 + $0x360] sm:$0xff]  ;;  %v2196_v18 = vld [vmem:[#allocation9 + $0x388] sm:$0xff] }
 0x2ad   :  { %3839 = vmatpush1.bf16.msra.mxu0 %v3838_v24  ;;  %v1538_v24 = vrot.slane %v1521_v19, %v4545_v15  ;;  %v1835_v26 = vrot.slane %v4607_v20, %v4534_v12  ;;  %v1847_v39 = vrot.slane %v4607_v20, %v4545_v15  ;;  %v2193_v19 = vld [vmem:[#allocation9 + $0x370] sm:$0xff] }
 0x2ae   :  { %3841 = vmatprep.subr.bf16.mxu0 %v3840_v25 }
 0x2b1   :  { %3843 = vmatpush1.bf16.msra.mxu0 %v3842_v32  ;;  %v1839_v32 = vrot.slane %v4607_v20, %v4542_v14 }
 0x2b2   :  { %3845 = vmatprep.subr.bf16.mxu0 %v3844_v33 }
 0x2b5   :  { %3847 = vmatpush1.bf16.msra.mxu0 %v3846_v40  ;;  %v4621_v40 = vld [vmem:[%s4699_s12] sm:$0xf] }
 0x2b6   :  { %3849 = vmatprep.subr.bf16.mxu0 %v3848_v41  ;;  %v2062_v49 = vrot.slane %v4621_v40, %v4534_v12  ;;  %v2074_v13 = vrot.slane %v4621_v40, %v4545_v15  ;;  %v2241_v15 = vld [vmem:[#allocation9 + $0x4f0] sm:$0xff] }
 0x2b7   :  { %v3964_v17 = vpack.c.bf16 %v2244_v6, %v2241_v15  ;;  %v1843_v15 = vrot.slane %v4607_v20, %v4576_v27 }
 0x2b9   :  { %3851 = vmatpush1.bf16.msra.mxu0 %v3850_v43 }
 0x2ba   :  { %3853 = vmatprep.subr.bf16.mxu0 %v3852_v50  ;;  %v2182_v50 = vld [vmem:[#allocation9 + $0x318] sm:$0xff] }
 0x2bd   :  { %3855 = vmatpush1.bf16.msra.mxu0 %v3854_v55 }
 0x2be   :  { %3857 = vmatprep.subr.bf16.mxu0 %v3856_v61  ;;  %v3958_v61 = vpack.c.bf16 %v2184_v52, %v2181_v51  ;;  %v2213_v51 = vld [vmem:[#allocation9 + $0x410] sm:$0xff]  ;;  %v2259_v52 = vld [vmem:[#allocation9 + $0x580] sm:$0xff] }
 0x2c1   :  { %3859 = vmatpush1.bf16.msra.mxu0 %v3858_v2  ;;  %v2190_v2 = vld [vmem:[#allocation9 + $0x358] sm:$0xff] }
 0x2c2   :  { %3861 = vmatprep.subr.bf16.mxu0 %v3860_v7  ;;  %v3866_v7 = vpack.c.bf16 %v2188_v63, %v2185_v62  ;;  %v3962_v8 = vpack.c.bf16 %v2190_v2, %v2187_v0  ;;  %v2214_v62 = vld [vmem:[#allocation9 + $0x418] sm:$0xff]  ;;  %v2216_v63 = vld [vmem:[#allocation9 + $0x428] sm:$0xff]  ;;  %v2265_v0 = vld [vmem:[#allocation9 + $0x5b0] sm:$0xff] }
 0x2c3   :  { %v2268_v2 = vld [vmem:[#allocation9 + $0x5c8] sm:$0xff] }
 0x2d7   :  { %v1374_v44 = vpop.f32.mrb[2].mxu0  ;;  %v1516_v45 = vpop.f32.mrb[2].mxu1 }
 0x2d8   :  { %v1376_v46 = vpop.f32.mrb[3].mxu0  ;;  %v1518_v47 = vpop.f32.mrb[3].mxu1  ;;  %v1543_v25 = vmul.f32 %v1526_v1, %v1374_v44  ;;  %v1545_v29 = vmul.f32 %v1534_v21, %v1516_v45  ;;  %v2198_v1 = vld [vmem:[#allocation9 + $0x398] sm:$0xff]  ;;  %v2201_v21 = vld [vmem:[#allocation9 + $0x3b0] sm:$0xff] }
 0x2d9   :  { %v1544_v30 = vmul.f32 %v1530_v23, %v1376_v46  ;;  %v1546_v33 = vmul.f32 %v1538_v24, %v1518_v47  ;;  %v2066_v46 = vrot.slane %v4621_v40, %v4542_v14  ;;  %v2179_v47 = vld [vmem:[#allocation9 + $0x300] sm:$0xff]  ;;  %v2250_v24 = vld [vmem:[#allocation9 + $0x538] sm:$0xff] }
 0x2da   :  { %v3862_v60 = vpack.c.bf16 %v2182_v50, %v2179_v47  ;;  %v2247_v23 = vld [vmem:[#allocation9 + $0x520] sm:$0xff]  ;;  %v2210_v50 = vld [vmem:[#allocation9 + $0x3f8] sm:$0xff] }
 0x357   :  { %v1684_v31 = vpop.f32.mrb[4].mxu0 }
 0x358   :  { %v4184_v35 = vadd.f32 %v1684_v31, %v1543_v25  ;;  %v1826_v37 = vpop.f32.mrb[4].mxu1  ;;  %v1686_v38 = vpop.f32.mrb[5].mxu0  ;;  %v3870_v25 = vpack.c.bf16 %v2194_v10, %v2191_v9  ;;  %v3872_v31 = vpack.c.bf16 %v2201_v21, %v2198_v1  ;;  %v2222_v9 = vld [vmem:[#allocation9 + $0x458] sm:$0xff]  ;;  %v2225_v10 = vld [vmem:[#allocation9 + $0x470] sm:$0xff]  ;;  %v2224_v21 = vld [vmem:[#allocation9 + $0x468] sm:$0xff] }
 0x359   :  { %v4623_v41 = vadd.f32 %v1826_v37, %v1545_v29  ;;  %v4185_v42 = vadd.f32 %v1686_v38, %v1544_v30  ;;  %v1828_v11 = vpop.f32.mrb[5].mxu1  ;;  %v2197_v29 = vld [vmem:[#allocation9 + $0x390] sm:$0xff]  ;;  %v2200_v30 = vld [vmem:[#allocation9 + $0x3a8] sm:$0xff]  ;;  %v2207_v38 = vld [vmem:[#allocation9 + $0x3e0] sm:$0xff]  ;;  %v3888_v20 = vpack.c.bf16 %v2225_v10, %v2222_v9 }
 0x35a   :  { %v1852_v43 = vadd.f32 %v4184_v35, %v1835_v26  ;;  %v4187_v44 = vadd.f32 %v1828_v11, %v1546_v33  ;;  %v3966_v26 = vpack.c.bf16 %v2196_v18, %v2193_v19  ;;  %v2199_v33 = vld [vmem:[#allocation9 + $0x3a0] sm:$0xff]  ;;  %v2202_v35 = vld [vmem:[#allocation9 + $0x3b8] sm:$0xff]  ;;  %v2204_v37 = vld [vmem:[#allocation9 + $0x3c8] sm:$0xff]  ;;  %v3874_v11 = vpack.c.bf16 %v2200_v30, %v2197_v29 }
 0x35b   :  { %v1853_v45 = vadd.f32 %v4185_v42, %v1839_v32  ;;  %v3968_v32 = vpack.c.bf16 %v2250_v24, %v2247_v23  ;;  %v2256_v42 = vld [vmem:[#allocation9 + $0x568] sm:$0xff]  ;;  %v2221_v1 = vld [vmem:[#allocation9 + $0x450] sm:$0xff]  ;;  %v1854_v23 = vadd.f32 %v4623_v41, %v1843_v15  ;;  %v2231_v30 = vld [vmem:[#allocation9 + $0x4a0] sm:$0xff] }
 0x35c   :  { %v4627_v48 = vmax.f32 %v1852_v43, 0.0  ;;  %v1855_v34 = vadd.f32 %v4187_v44, %v1847_v39  ;;  %v2253_v39 = vld [vmem:[#allocation9 + $0x550] sm:$0xff]  ;;  %v3970_v43 = vpack.c.bf16 %v2202_v35, %v2199_v33  ;;  %v2203_v44 = vld [vmem:[#allocation9 + $0x3c0] sm:$0xff]  ;;  %v2228_v29 = vld [vmem:[#allocation9 + $0x488] sm:$0xff]  ;;  %v3890_v33 = vpack.c.bf16 %v2224_v21, %v2221_v1 }
 0x35d   :  { %v4631_v53 = vmax.f32 %v1853_v45, 0.0  ;;  %v2206_v45 = vld [vmem:[#allocation9 + $0x3d8] sm:$0xff]  ;;  %v3972_v47 = vpack.c.bf16 %v2256_v42, %v2253_v39  ;;  %v3892_v41 = vpack.c.bf16 %v2231_v30, %v2228_v29  ;;  %v2070_v39 = vrot.slane %v4621_v40, %v4576_v27  ;;  %v2249_v15 = vld [vmem:[#allocation9 + $0x530] sm:$0xff]  ;;  %v2248_v10 = vld [vmem:[#allocation9 + $0x528] sm:$0xff] }
 0x35e   :  { %v4633_v55 = vmax.f32 %v1855_v34, 0.0  ;;  %v2079_v28 = vmul.f32 %v2062_v49, %v4627_v48  ;;  %v2205_v34 = vld [vmem:[#allocation9 + $0x3d0] sm:$0xff]  ;;  %v2208_v49 = vld [vmem:[#allocation9 + $0x3e8] sm:$0xff]  ;;  %v2255_v21 = vld [vmem:[#allocation9 + $0x560] sm:$0xff] }
 0x35f   :  { %v2080_v59 = vmul.f32 %v2066_v46, %v4631_v53  ;;  %v3876_v46 = vpack.c.bf16 %v2207_v38, %v2204_v37  ;;  %v3974_v56 = vpack.c.bf16 %v2208_v49, %v2205_v34  ;;  %v2227_v37 = vld [vmem:[#allocation9 + $0x480] sm:$0xff]  ;;  %v4643_v38 = vmax.f32 %v1854_v23, 0.0  ;;  %v1875_v34 = vld [vmem:[#allocation7 + $0x50] sm:$0xff]  ;;  %v2252_v1 = vld [vmem:[#allocation9 + $0x548] sm:$0xff] }
 0x360   :  { %v2082_v36 = vmul.f32 %v2074_v13, %v4633_v55  ;;  %v3878_v13 = vpack.c.bf16 %v2206_v45, %v2203_v44  ;;  %v1868_v44 = vld [vmem:[#allocation7 + $0x18] sm:$0xff]  ;;  %v2245_v9 = vld [vmem:[#allocation9 + $0x510] sm:$0xff]  ;;  %v1890_v23 = vld [vmem:[#allocation7 + $0xc8] sm:$0xff]  ;;  %v3908_v30 = vpack.c.bf16 %v2255_v21, %v2252_v1 }
 0x361   :  { %2339 = vmatprep.mubr.f32.mxu0 %v2080_v59  ;;  %2481 = vmatprep.mubr.f32.mxu1 %v2080_v59  ;;  %v3880_v59 = vpack.c.bf16 %v2213_v51, %v2210_v50  ;;  %v2234_v45 = vld [vmem:[#allocation9 + $0x4b8] sm:$0xff]  ;;  %v2233_v51 = vld [vmem:[#allocation9 + $0x4b0] sm:$0xff] }
 0x362   :  { %2340 = vmatmul.mubr.f32.vlgmr.msra.gmra.mrb[6].mxu0 %v2079_v28  ;;  %2482 = vmatmul.mubr.f32.vlgmr.msra.gmra.mrb[6].mxu1 %v2079_v28  ;;  %v2219_v28 = vld [vmem:[#allocation9 + $0x440] sm:$0xff]  ;;  %v2254_v29 = vld [vmem:[#allocation9 + $0x558] sm:$0xff] }
 0x363   :  { %3863 = vmatpush1.bf16.msra.mxu0 %v3862_v60  ;;  %3959 = vmatpush3.bf16.msra.mxu1 %v3958_v61  ;;  %v3976_v60 = vpack.c.bf16 %v2262_v54, %v2259_v52  ;;  %v2211_v61 = vld [vmem:[#allocation9 + $0x400] sm:$0xff]  ;;  %v3884_v6 = vpack.c.bf16 %v2219_v28, %v2216_v63  ;;  %v2236_v52 = vld [vmem:[#allocation9 + $0x4c8] sm:$0xff]  ;;  %v4648_v54 = vmul.f32 %v2070_v39, %v4643_v38  ;;  %v1899_v39 = vld [vmem:[#allocation7 + $0x110] sm:$0xff] }
 0x364   :  { %2410 = vmatprep.mubr.f32.mxu0 %v2082_v36  ;;  %2551 = vmatprep.mubr.f32.mxu1 %v2082_v36  ;;  %v3980_v36 = vpack.c.bf16 %v2268_v2, %v2265_v0  ;;  %v2239_v28 = vld [vmem:[#allocation9 + $0x4e0] sm:$0xff]  ;;  %v2242_v0 = vld [vmem:[#allocation9 + $0x4f8] sm:$0xff] }
 0x365   :  { %3865 = vmatprep.subr.bf16.mxu0 %v3864_v3  ;;  %3961 = vmatprep.subr.bf16.mxu1 %v3960_v4  ;;  %v3978_v3 = vpack.c.bf16 %v2214_v62, %v2211_v61  ;;  %v2215_v4 = vld [vmem:[#allocation9 + $0x420] sm:$0xff]  ;;  %v3898_v62 = vpack.c.bf16 %v2236_v52, %v2233_v51  ;;  %v1902_v51 = vld [vmem:[#allocation7 + $0x128] sm:$0xff]  ;;  %v1916_v21 = vld [vmem:[#allocation7 + $0x198] sm:$0xff] }
 0x366   :  { %v3886_v19 = vpack.c.bf16 %v2218_v5, %v2215_v4  ;;  %v1881_v61 = vld [vmem:[#allocation7 + $0x80] sm:$0xff]  ;;  %v1880_v4 = vld [vmem:[#allocation7 + $0x78] sm:$0xff] }
 0x367   :  { %3867 = vmatpush1.bf16.msra.mxu0 %v3866_v7  ;;  %3963 = vmatpush3.bf16.msra.mxu1 %v3962_v8  ;;  %v2217_v7 = vld [vmem:[#allocation9 + $0x430] sm:$0xff]  ;;  %v2220_v8 = vld [vmem:[#allocation9 + $0x448] sm:$0xff]  ;;  %v2246_v5 = vld [vmem:[#allocation9 + $0x518] sm:$0xff] }
 0x368   :  { %3869 = vmatprep.subr.bf16.mxu0 %v3868_v16  ;;  %3965 = vmatprep.subr.bf16.mxu1 %v3964_v17  ;;  %v2271_v16 = vld [vmem:[#allocation9 + $0x5e0] sm:$0xff]  ;;  %v2274_v17 = vld [vmem:[#allocation9 + $0x5f8] sm:$0xff]  ;;  %v3982_v18 = vpack.c.bf16 %v2220_v8, %v2217_v7  ;;  %v3902_v7 = vpack.c.bf16 %v2242_v0, %v2239_v28  ;;  %v1911_v0 = vld [vmem:[#allocation7 + $0x170] sm:$0xff] }
 0x369   :  { %v3984_v24 = vpack.c.bf16 %v2274_v17, %v2271_v16  ;;  %v3904_v16 = vpack.c.bf16 %v2249_v15, %v2246_v5  ;;  %v1905_v52 = vld [vmem:[#allocation7 + $0x140] sm:$0xff]  ;;  %v1908_v28 = vld [vmem:[#allocation7 + $0x158] sm:$0xff] }
 0x36a   :  { %v4016_v15 = vpack.c.bf16 %v1911_v0, %v1908_v28  ;;  %v1938_v28 = vld [vmem:[#allocation7 + $0x248] sm:$0xff]  ;;  %v1941_v0 = vld [vmem:[#allocation7 + $0x260] sm:$0xff] }
 0x36b   :  { %3871 = vmatpush1.bf16.msra.mxu0 %v3870_v25  ;;  %3967 = vmatpush3.bf16.msra.mxu1 %v3966_v26  ;;  %v2223_v25 = vld [vmem:[#allocation9 + $0x460] sm:$0xff]  ;;  %v2226_v26 = vld [vmem:[#allocation9 + $0x478] sm:$0xff] }
 0x36c   :  { %3873 = vmatprep.subr.bf16.mxu0 %v3872_v31  ;;  %3969 = vmatprep.subr.bf16.mxu1 %v3968_v32  ;;  %v1866_v31 = vld [vmem:[#allocation7 + $0x8] sm:$0xff]  ;;  %v1869_v32 = vld [vmem:[#allocation7 + $0x20] sm:$0xff]  ;;  %v3986_v35 = vpack.c.bf16 %v2226_v26, %v2223_v25 }
 0x36d   :  { %v3988_v42 = vpack.c.bf16 %v1869_v32, %v1866_v31  ;;  %v2251_v26 = vld [vmem:[#allocation9 + $0x540] sm:$0xff] }
 0x36e   :  { %v1889_v32 = vld [vmem:[#allocation7 + $0xc0] sm:$0xff] }
 0x36f   :  { %3875 = vmatpush1.bf16.msra.mxu0 %v3874_v11  ;;  %3971 = vmatpush3.bf16.msra.mxu1 %v3970_v43  ;;  %v2230_v11 = vld [vmem:[#allocation9 + $0x498] sm:$0xff]  ;;  %v1865_v43 = vld [vmem:[#allocation7] sm:$0xff] }
 0x370   :  { %3877 = vmatprep.subr.bf16.mxu0 %v3876_v46  ;;  %3973 = vmatprep.subr.bf16.mxu1 %v3972_v47  ;;  %v2237_v46 = vld [vmem:[#allocation9 + $0x4d0] sm:$0xff]  ;;  %v1872_v47 = vld [vmem:[#allocation7 + $0x38] sm:$0xff]  ;;  %v3894_v49 = vpack.c.bf16 %v2230_v11, %v2227_v37  ;;  %v3990_v50 = vpack.c.bf16 %v1868_v44, %v1865_v43  ;;  %v2260_v44 = vld [vmem:[#allocation9 + $0x588] sm:$0xff] }
 0x371   :  { %v3896_v40 = vpack.c.bf16 %v2237_v46, %v2234_v45  ;;  %v3992_v58 = vpack.c.bf16 %v1875_v34, %v1872_v47  ;;  %v2261_v37 = vld [vmem:[#allocation9 + $0x590] sm:$0xff]  ;;  %v1898_v34 = vld [vmem:[#allocation7 + $0x108] sm:$0xff] }
 0x372   :  { %v2257_v43 = vld [vmem:[#allocation9 + $0x570] sm:$0xff] }
 0x373   :  { %3879 = vmatpush1.bf16.msra.mxu0 %v3878_v13  ;;  %3975 = vmatpush3.bf16.msra.mxu1 %v3974_v56  ;;  %v1871_v13 = vld [vmem:[#allocation7 + $0x30] sm:$0xff]  ;;  %v1874_v56 = vld [vmem:[#allocation7 + $0x48] sm:$0xff] }
 0x374   :  { %3881 = vmatprep.subr.bf16.mxu0 %v3880_v59  ;;  %3977 = vmatprep.subr.bf16.mxu1 %v3976_v60  ;;  %v2243_v59 = vld [vmem:[#allocation9 + $0x500] sm:$0xff]  ;;  %v1878_v60 = vld [vmem:[#allocation7 + $0x68] sm:$0xff]  ;;  %v3994_v63 = vpack.c.bf16 %v1874_v56, %v1871_v13  ;;  %v1895_v47 = vld [vmem:[#allocation7 + $0xf0] sm:$0xff] }
 0x375   :  { %v3900_v2 = vpack.c.bf16 %v2243_v59, %v2240_v57  ;;  %v4010_v13 = vpack.c.bf16 %v1898_v34, %v1895_v47  ;;  %v2263_v56 = vld [vmem:[#allocation9 + $0x5a0] sm:$0xff]  ;;  %v2266_v57 = vld [vmem:[#allocation9 + $0x5b8] sm:$0xff]  ;;  %v4012_v59 = vpack.c.bf16 %v1905_v52, %v1902_v51  ;;  %v1879_v51 = vld [vmem:[#allocation7 + $0x70] sm:$0xff] }
 0x376   :  { %v1925_v47 = vld [vmem:[#allocation7 + $0x1e0] sm:$0xff]  ;;  %v1928_v34 = vld [vmem:[#allocation7 + $0x1f8] sm:$0xff]  ;;  %v1882_v52 = vld [vmem:[#allocation7 + $0x88] sm:$0xff] }
 0x377   :  { %3883 = vmatpush1.bf16.msra.mxu0 %v3882_v22  ;;  %3979 = vmatpush3.bf16.msra.mxu1 %v3978_v3  ;;  %v3996_v22 = vpack.c.bf16 %v1881_v61, %v1878_v60  ;;  %v1877_v3 = vld [vmem:[#allocation7 + $0x60] sm:$0xff]  ;;  %v1904_v61 = vld [vmem:[#allocation7 + $0x138] sm:$0xff] }
 0x378   :  { %3885 = vmatprep.subr.bf16.mxu0 %v3884_v6  ;;  %3981 = vmatprep.subr.bf16.mxu1 %v3980_v36  ;;  %v1884_v6 = vld [vmem:[#allocation7 + $0x98] sm:$0xff]  ;;  %v1887_v36 = vld [vmem:[#allocation7 + $0xb0] sm:$0xff]  ;;  %v3998_v8 = vpack.c.bf16 %v1880_v4, %v1877_v3  ;;  %v1901_v60 = vld [vmem:[#allocation7 + $0x120] sm:$0xff] }
 0x379   :  { %v4000_v17 = vpack.c.bf16 %v1887_v36, %v1884_v6  ;;  %v2269_v3 = vld [vmem:[#allocation9 + $0x5d0] sm:$0xff]  ;;  %v2272_v4 = vld [vmem:[#allocation9 + $0x5e8] sm:$0xff] }
 0x37a   :  { %v1907_v6 = vld [vmem:[#allocation7 + $0x150] sm:$0xff]  ;;  %v1910_v36 = vld [vmem:[#allocation7 + $0x168] sm:$0xff] }
 0x37b   :  { %3887 = vmatpush1.bf16.msra.mxu0 %v3886_v19  ;;  %3983 = vmatpush3.bf16.msra.mxu1 %v3982_v18  ;;  %v1883_v19 = vld [vmem:[#allocation7 + $0x90] sm:$0xff]  ;;  %v1886_v18 = vld [vmem:[#allocation7 + $0xa8] sm:$0xff] }
 0x37c   :  { %3889 = vmatprep.subr.bf16.mxu0 %v3888_v20  ;;  %3985 = vmatprep.subr.bf16.mxu1 %v3984_v24  ;;  %v1893_v20 = vld [vmem:[#allocation7 + $0xe0] sm:$0xff]  ;;  %v3906_v24 = vpack.c.bf16 %v2248_v10, %v2245_v9  ;;  %v4002_v25 = vpack.c.bf16 %v1886_v18, %v1883_v19  ;;  %v1915_v9 = vld [vmem:[#allocation7 + $0x190] sm:$0xff]  ;;  %v1918_v10 = vld [vmem:[#allocation7 + $0x1a8] sm:$0xff] }
 0x37d   :  { %v4004_v31 = vpack.c.bf16 %v1893_v20, %v1890_v23  ;;  %v1913_v19 = vld [vmem:[#allocation7 + $0x180] sm:$0xff]  ;;  %v4116_v1 = vpack.c.bf16 %v1918_v10, %v1915_v9  ;;  %v1867_v23 = vld [vmem:[#allocation7 + $0x10] sm:$0xff]  ;;  %v1870_v20 = vld [vmem:[#allocation7 + $0x28] sm:$0xff] }
 0x37e   :  { %v1944_v9 = vld [vmem:[#allocation7 + $0x278] sm:$0xff]  ;;  %v1947_v10 = vld [vmem:[#allocation7 + $0x290] sm:$0xff] }
 0x37f   :  { %3891 = vmatpush1.bf16.msra.mxu0 %v3890_v33  ;;  %3987 = vmatpush3.bf16.msra.mxu1 %v3986_v35  ;;  %v1892_v33 = vld [vmem:[#allocation7 + $0xd8] sm:$0xff] }
 0x380   :  { %3893 = vmatprep.subr.bf16.mxu0 %v3892_v41  ;;  %3989 = vmatprep.subr.bf16.mxu1 %v3988_v42  ;;  %v2258_v35 = vld [vmem:[#allocation9 + $0x578] sm:$0xff]  ;;  %v3910_v42 = vpack.c.bf16 %v2254_v29, %v2251_v26  ;;  %v4006_v11 = vpack.c.bf16 %v1892_v33, %v1889_v32  ;;  %v1921_v26 = vld [vmem:[#allocation7 + $0x1c0] sm:$0xff]  ;;  %v1919_v32 = vld [vmem:[#allocation7 + $0x1b0] sm:$0xff] }
 0x381   :  { %v1896_v41 = vld [vmem:[#allocation7 + $0xf8] sm:$0xff]  ;;  %v3912_v45 = vpack.c.bf16 %v2261_v37, %v2258_v35  ;;  %v1922_v33 = vld [vmem:[#allocation7 + $0x1c8] sm:$0xff]  ;;  %v1873_v37 = vld [vmem:[#allocation7 + $0x40] sm:$0xff] }
 0x382   :  { %2552 = vmatmul.mubr.f32.vlgmr.msra.gmra.mrb[8].mxu1 %v4648_v54  ;;  %v4008_v46 = vpack.c.bf16 %v1899_v39, %v1896_v41  ;;  %v1924_v29 = vld [vmem:[#allocation7 + $0x1d8] sm:$0xff]  ;;  %v1926_v39 = vld [vmem:[#allocation7 + $0x1e8] sm:$0xff] }
 0x383   :  { %3895 = vmatpush1.bf16.msra.mxu0 %v3894_v49  ;;  %3991 = vmatpush1.bf16.msra.mxu1 %v3990_v50  ;;  %v2264_v49 = vld [vmem:[#allocation9 + $0x5a8] sm:$0xff]  ;;  %v2267_v50 = vld [vmem:[#allocation9 + $0x5c0] sm:$0xff]  ;;  %v1876_v41 = vld [vmem:[#allocation7 + $0x58] sm:$0xff] }
 0x384   :  { %2641 = vmatprep.mubr.f32.mxu1 %v4631_v53  ;;  %3897 = vmatprep.subr.bf16.mxu0 %v3896_v40  ;;  %v3914_v40 = vpack.c.bf16 %v2260_v44, %v2257_v43  ;;  %v1927_v43 = vld [vmem:[#allocation7 + $0x1f0] sm:$0xff]  ;;  %v1930_v44 = vld [vmem:[#allocation7 + $0x208] sm:$0xff] }
 0x385   :  { %3993 = vmatprep.subr.bf16.mxu1 %v3992_v58  ;;  %v3916_v58 = vpack.c.bf16 %v2267_v50, %v2264_v49  ;;  %v4124_v50 = vpack.c.bf16 %v1930_v44, %v1927_v43  ;;  %v1956_v43 = vld [vmem:[#allocation7 + $0x2d8] sm:$0xff]  ;;  %v1959_v44 = vld [vmem:[#allocation7 + $0x2f0] sm:$0xff] }
 0x387   :  { %3899 = vmatpush1.bf16.msra.mxu0 %v3898_v62  ;;  %3995 = vmatpush1.bf16.msra.mxu1 %v3994_v63  ;;  %v2270_v62 = vld [vmem:[#allocation9 + $0x5d8] sm:$0xff]  ;;  %v2273_v63 = vld [vmem:[#allocation9 + $0x5f0] sm:$0xff] }
 0x388   :  { %3901 = vmatprep.subr.bf16.mxu0 %v3900_v2  ;;  %3997 = vmatprep.subr.bf16.mxu1 %v3996_v22  ;;  %v3918_v2 = vpack.c.bf16 %v2266_v57, %v2263_v56  ;;  %v4014_v22 = vpack.c.bf16 %v1904_v61, %v1901_v60  ;;  %v3920_v5 = vpack.c.bf16 %v2273_v63, %v2270_v62  ;;  %v1933_v56 = vld [vmem:[#allocation7 + $0x220] sm:$0xff]  ;;  %v1936_v57 = vld [vmem:[#allocation7 + $0x238] sm:$0xff]  ;;  %v1934_v60 = vld [vmem:[#allocation7 + $0x228] sm:$0xff] }
 0x389   :  { %v1885_v62 = vld [vmem:[#allocation7 + $0xa0] sm:$0xff]  ;;  %v1888_v63 = vld [vmem:[#allocation7 + $0xb8] sm:$0xff] }
 0x38b   :  { %3903 = vmatpush1.bf16.msra.mxu0 %v3902_v7  ;;  %3999 = vmatpush1.bf16.msra.mxu1 %v3998_v8  ;;  %v1914_v7 = vld [vmem:[#allocation7 + $0x188] sm:$0xff]  ;;  %v1917_v8 = vld [vmem:[#allocation7 + $0x1a0] sm:$0xff] }
 0x38c   :  { %3905 = vmatprep.subr.bf16.mxu0 %v3904_v16  ;;  %4001 = vmatprep.subr.bf16.mxu1 %v4000_v17  ;;  %v3922_v16 = vpack.c.bf16 %v2272_v4, %v2269_v3  ;;  %v4018_v17 = vpack.c.bf16 %v1910_v36, %v1907_v6  ;;  %v4020_v18 = vpack.c.bf16 %v1917_v8, %v1914_v7  ;;  %v1891_v7 = vld [vmem:[#allocation7 + $0xd0] sm:$0xff]  ;;  %v1894_v8 = vld [vmem:[#allocation7 + $0xe8] sm:$0xff] }
 0x38d   :  { %v4130_v4 = vpack.c.bf16 %v1888_v63, %v1885_v62  ;;  %v4036_v6 = vpack.c.bf16 %v1941_v0, %v1938_v28  ;;  %v1961_v62 = vld [vmem:[#allocation7 + $0x300] sm:$0xff]  ;;  %v1964_v63 = vld [vmem:[#allocation7 + $0x318] sm:$0xff]  ;;  %v1963_v28 = vld [vmem:[#allocation7 + $0x310] sm:$0xff] }
 0x38e   :  { %v1966_v0 = vld [vmem:[#allocation7 + $0x328] sm:$0xff] }
 0x38f   :  { %3907 = vmatpush1.bf16.msra.mxu0 %v3906_v24  ;;  %4003 = vmatpush1.bf16.msra.mxu1 %v4002_v25  ;;  %v1920_v24 = vld [vmem:[#allocation7 + $0x1b8] sm:$0xff]  ;;  %v1923_v25 = vld [vmem:[#allocation7 + $0x1d0] sm:$0xff] }
 0x390   :  { %3909 = vmatprep.subr.bf16.mxu0 %v3908_v30  ;;  %4005 = vmatprep.subr.bf16.mxu1 %v4004_v31  ;;  %v4022_v30 = vpack.c.bf16 %v1916_v21, %v1913_v19  ;;  %v4118_v31 = vpack.c.bf16 %v1870_v20, %v1867_v23  ;;  %v4024_v35 = vpack.c.bf16 %v1923_v25, %v1920_v24  ;;  %v1946_v21 = vld [vmem:[#allocation7 + $0x288] sm:$0xff]  ;;  %v1897_v24 = vld [vmem:[#allocation7 + $0x100] sm:$0xff]  ;;  %v1900_v25 = vld [vmem:[#allocation7 + $0x118] sm:$0xff] }
 0x391   :  { %v4040_v23 = vpack.c.bf16 %v1947_v10, %v1944_v9  ;;  %v1972_v10 = vld [vmem:[#allocation7 + $0x358] sm:$0xff] }
 0x393   :  { %3911 = vmatpush1.bf16.msra.mxu0 %v3910_v42  ;;  %4007 = vmatpush1.bf16.msra.mxu1 %v4006_v11  ;;  %v4120_v42 = vpack.c.bf16 %v1924_v29, %v1921_v26  ;;  %v1929_v11 = vld [vmem:[#allocation7 + $0x200] sm:$0xff]  ;;  %v1950_v26 = vld [vmem:[#allocation7 + $0x2a8] sm:$0xff] }
 0x394   :  { %3913 = vmatprep.subr.bf16.mxu0 %v3912_v45  ;;  %4009 = vmatprep.subr.bf16.mxu1 %v4008_v46  ;;  %v4026_v45 = vpack.c.bf16 %v1922_v33, %v1919_v32  ;;  %v4122_v46 = vpack.c.bf16 %v1876_v41, %v1873_v37  ;;  %v4028_v49 = vpack.c.bf16 %v1929_v11, %v1926_v39  ;;  %v1953_v29 = vld [vmem:[#allocation7 + $0x2c0] sm:$0xff]  ;;  %v1952_v37 = vld [vmem:[#allocation7 + $0x2b8] sm:$0xff]  ;;  %v1906_v11 = vld [vmem:[#allocation7 + $0x148] sm:$0xff] }
 0x395   :  { %v4138_v33 = vpack.c.bf16 %v1900_v25, %v1897_v24  ;;  %v4044_v41 = vpack.c.bf16 %v1953_v29, %v1950_v26  ;;  %v1976_v24 = vld [vmem:[#allocation7 + $0x378] sm:$0xff]  ;;  %v1975_v25 = vld [vmem:[#allocation7 + $0x370] sm:$0xff]  ;;  %v1978_v29 = vld [vmem:[#allocation7 + $0x388] sm:$0xff] }
 0x397   :  { %3915 = vmatpush1.bf16.msra.mxu0 %v3914_v40  ;;  %4011 = vmatpush1.bf16.msra.mxu1 %v4010_v13  ;;  %v1932_v40 = vld [vmem:[#allocation7 + $0x218] sm:$0xff]  ;;  %v1935_v13 = vld [vmem:[#allocation7 + $0x230] sm:$0xff] }
 0x398   :  { %3917 = vmatprep.subr.bf16.mxu0 %v3916_v58  ;;  %4013 = vmatprep.subr.bf16.mxu1 %v4012_v59  ;;  %v4126_v58 = vpack.c.bf16 %v1882_v52, %v1879_v51  ;;  %v1931_v59 = vld [vmem:[#allocation7 + $0x210] sm:$0xff]  ;;  %v4032_v61 = vpack.c.bf16 %v1935_v13, %v1932_v40  ;;  %v4048_v51 = vpack.c.bf16 %v1959_v44, %v1956_v43  ;;  %v1909_v40 = vld [vmem:[#allocation7 + $0x160] sm:$0xff]  ;;  %v1912_v13 = vld [vmem:[#allocation7 + $0x178] sm:$0xff] }
 0x399   :  { %v4034_v3 = vpack.c.bf16 %v1934_v60, %v1931_v59  ;;  %v4146_v60 = vpack.c.bf16 %v1912_v13, %v1909_v40  ;;  %v1986_v43 = vld [vmem:[#allocation7 + $0x3c8] sm:$0xff]  ;;  %v1989_v44 = vld [vmem:[#allocation7 + $0x3e0] sm:$0xff] }
 0x39a   :  { %v1990_v13 = vld [vmem:[#allocation7 + $0x3e8] sm:$0xff] }
 0x39b   :  { %3919 = vmatpush1.bf16.msra.mxu0 %v3918_v2  ;;  %4015 = vmatpush1.bf16.msra.mxu1 %v4014_v22  ;;  %v1939_v2 = vld [vmem:[#allocation7 + $0x250] sm:$0xff]  ;;  %v1942_v22 = vld [vmem:[#allocation7 + $0x268] sm:$0xff] }
 0x39c   :  { %3921 = vmatprep.subr.bf16.mxu0 %v3920_v5  ;;  %4017 = vmatprep.subr.bf16.mxu1 %v4016_v15  ;;  %v1937_v5 = vld [vmem:[#allocation7 + $0x240] sm:$0xff]  ;;  %v1940_v15 = vld [vmem:[#allocation7 + $0x258] sm:$0xff]  ;;  %v4132_v36 = vpack.c.bf16 %v1942_v22, %v1939_v2  ;;  %v1971_v22 = vld [vmem:[#allocation7 + $0x350] sm:$0xff] }
 0x39d   :  { %v4038_v19 = vpack.c.bf16 %v1940_v15, %v1937_v5  ;;  %v1968_v2 = vld [vmem:[#allocation7 + $0x338] sm:$0xff]  ;;  %v4054_v5 = vpack.c.bf16 %v1964_v63, %v1961_v62  ;;  %v4150_v15 = vpack.c.bf16 %v1966_v0, %v1963_v28  ;;  %v1994_v62 = vld [vmem:[#allocation7 + $0x408] sm:$0xff]  ;;  %v1993_v63 = vld [vmem:[#allocation7 + $0x400] sm:$0xff] }
 0x39e   :  { %v1996_v0 = vld [vmem:[#allocation7 + $0x418] sm:$0xff] }
 0x39f   :  { %3923 = vmatpush1.bf16.msra.mxu0 %v3922_v16  ;;  %4019 = vmatpush1.bf16.msra.mxu1 %v4018_v17  ;;  %v1945_v16 = vld [vmem:[#allocation7 + $0x280] sm:$0xff]  ;;  %v1948_v17 = vld [vmem:[#allocation7 + $0x298] sm:$0xff] }
 0x3a0   :  { %4021 = vmatprep.subr.bf16.mxu1 %v4020_v18  ;;  %4117 = vmatprep.subr.bf16.mxu0 %v4116_v1  ;;  %v4134_v18 = vpack.c.bf16 %v1894_v8, %v1891_v7  ;;  %v1943_v1 = vld [vmem:[#allocation7 + $0x270] sm:$0xff]  ;;  %v4136_v20 = vpack.c.bf16 %v1948_v17, %v1945_v16  ;;  %v1969_v7 = vld [vmem:[#allocation7 + $0x340] sm:$0xff]  ;;  %v4056_v8 = vpack.c.bf16 %v1971_v22, %v1968_v2  ;;  %v1974_v16 = vld [vmem:[#allocation7 + $0x368] sm:$0xff] }
 0x3a1   :  { %v4042_v32 = vpack.c.bf16 %v1946_v21, %v1943_v1  ;;  %v1977_v17 = vld [vmem:[#allocation7 + $0x380] sm:$0xff]  ;;  %v4154_v21 = vpack.c.bf16 %v1972_v10, %v1969_v7  ;;  %v1998_v2 = vld [vmem:[#allocation7 + $0x428] sm:$0xff]  ;;  %v2000_v7 = vld [vmem:[#allocation7 + $0x438] sm:$0xff] }
 0x3a2   :  { %2411 = vmatmul.mubr.f32.vlgmr.msra.gmra.mrb[6].mxu0 %v4648_v54  ;;  %v4030_v54 = vpack.c.bf16 %v1928_v34, %v1925_v47  ;;  %v2001_v22 = vld [vmem:[#allocation7 + $0x440] sm:$0xff]  ;;  %v2002_v10 = vld [vmem:[#allocation7 + $0x448] sm:$0xff] }
 0x3a3   :  { %4023 = vmatpush1.bf16.msra.mxu1 %v4022_v30  ;;  %4119 = vmatpush3.bf16.msra.mxu0 %v4118_v31  ;;  %v1951_v30 = vld [vmem:[#allocation7 + $0x2b0] sm:$0xff]  ;;  %v1954_v31 = vld [vmem:[#allocation7 + $0x2c8] sm:$0xff] }
 0x3a4   :  { %2783 = vmatprep.mubr.f32.mxu0 %v4631_v53  ;;  %4025 = vmatprep.subr.bf16.mxu1 %v4024_v35  ;;  %v4128_v53 = vpack.c.bf16 %v1936_v57, %v1933_v56  ;;  %v1949_v35 = vld [vmem:[#allocation7 + $0x2a0] sm:$0xff]  ;;  %v4140_v39 = vpack.c.bf16 %v1954_v31, %v1951_v30  ;;  %v1962_v56 = vld [vmem:[#allocation7 + $0x308] sm:$0xff]  ;;  %v1980_v30 = vld [vmem:[#allocation7 + $0x398] sm:$0xff] }
 0x3a5   :  { %4121 = vmatprep.subr.bf16.mxu0 %v4120_v42  ;;  %v1903_v42 = vld [vmem:[#allocation7 + $0x130] sm:$0xff]  ;;  %v4046_v47 = vpack.c.bf16 %v1952_v37, %v1949_v35  ;;  %v1965_v57 = vld [vmem:[#allocation7 + $0x320] sm:$0xff]  ;;  %v4158_v35 = vpack.c.bf16 %v1978_v29, %v1975_v25  ;;  %v2008_v29 = vld [vmem:[#allocation7 + $0x478] sm:$0xff] }
 0x3a6   :  { %v4142_v34 = vpack.c.bf16 %v1906_v11, %v1903_v42  ;;  %v2029_v31 = vld [vmem:[#allocation7 + $0x520] sm:$0xff]  ;;  %v1984_v11 = vld [vmem:[#allocation7 + $0x3b8] sm:$0xff] }
 0x3a7   :  { %4027 = vmatpush1.bf16.msra.mxu1 %v4026_v45  ;;  %4123 = vmatpush3.bf16.msra.mxu0 %v4122_v46  ;;  %v1957_v45 = vld [vmem:[#allocation7 + $0x2e0] sm:$0xff]  ;;  %v1960_v46 = vld [vmem:[#allocation7 + $0x2f8] sm:$0xff] }
 0x3a8   :  { %4029 = vmatprep.subr.bf16.mxu1 %v4028_v49  ;;  %4125 = vmatprep.subr.bf16.mxu0 %v4124_v50  ;;  %v1955_v49 = vld [vmem:[#allocation7 + $0x2d0] sm:$0xff]  ;;  %v1958_v50 = vld [vmem:[#allocation7 + $0x2e8] sm:$0xff]  ;;  %v4144_v52 = vpack.c.bf16 %v1960_v46, %v1957_v45  ;;  %v2005_v25 = vld [vmem:[#allocation7 + $0x460] sm:$0xff] }
 0x3a9   :  { %v4050_v59 = vpack.c.bf16 %v1958_v50, %v1955_v49  ;;  %v2035_v45 = vld [vmem:[#allocation7 + $0x550] sm:$0xff]  ;;  %v2038_v46 = vld [vmem:[#allocation7 + $0x568] sm:$0xff]  ;;  %v4068_v49 = vpack.c.bf16 %v1989_v44, %v1986_v43  ;;  %v1985_v50 = vld [vmem:[#allocation7 + $0x3c0] sm:$0xff] }
 0x3aa   :  { %v4164_v40 = vpack.c.bf16 %v2038_v46, %v2035_v45  ;;  %v2018_v43 = vld [vmem:[#allocation7 + $0x4c8] sm:$0xff]  ;;  %v2025_v45 = vld [vmem:[#allocation7 + $0x500] sm:$0xff] }
 0x3ab   :  { %4031 = vmatpush1.bf16.msra.mxu1 %v4030_v54  ;;  %4127 = vmatpush3.bf16.msra.mxu0 %v4126_v58  ;;  %v2011_v54 = vld [vmem:[#allocation7 + $0x490] sm:$0xff]  ;;  %v2014_v58 = vld [vmem:[#allocation7 + $0x4a8] sm:$0xff] }
 0x3ac   :  { %4033 = vmatprep.subr.bf16.mxu1 %v4032_v61  ;;  %4129 = vmatprep.subr.bf16.mxu0 %v4128_v53  ;;  %v4052_v61 = vpack.c.bf16 %v1965_v57, %v1962_v56  ;;  %v4148_v53 = vpack.c.bf16 %v2014_v58, %v2011_v54  ;;  %v1992_v56 = vld [vmem:[#allocation7 + $0x3f8] sm:$0xff]  ;;  %v1995_v57 = vld [vmem:[#allocation7 + $0x410] sm:$0xff]  ;;  %v2041_v54 = vld [vmem:[#allocation7 + $0x580] sm:$0xff] }
 0x3ad   :  { %v2044_v58 = vld [vmem:[#allocation7 + $0x598] sm:$0xff]  ;;  %v2022_v44 = vld [vmem:[#allocation7 + $0x4e8] sm:$0xff] }
 0x3ae   :  { %v4168_v28 = vpack.c.bf16 %v2044_v58, %v2041_v54  ;;  %v2037_v54 = vld [vmem:[#allocation7 + $0x560] sm:$0xff] }
 0x3af   :  { %4035 = vmatpush1.bf16.msra.mxu1 %v4034_v3  ;;  %4131 = vmatpush3.bf16.msra.mxu0 %v4130_v4  ;;  %v2017_v3 = vld [vmem:[#allocation7 + $0x4c0] sm:$0xff]  ;;  %v2020_v4 = vld [vmem:[#allocation7 + $0x4d8] sm:$0xff] }
 0x3b0   :  { %4037 = vmatprep.subr.bf16.mxu1 %v4036_v6  ;;  %4133 = vmatprep.subr.bf16.mxu0 %v4132_v36  ;;  %v1967_v6 = vld [vmem:[#allocation7 + $0x330] sm:$0xff]  ;;  %v1970_v36 = vld [vmem:[#allocation7 + $0x348] sm:$0xff]  ;;  %v4152_v9 = vpack.c.bf16 %v2020_v4, %v2017_v3 }
 0x3b1   :  { %v4058_v1 = vpack.c.bf16 %v1970_v36, %v1967_v6  ;;  %v2047_v3 = vld [vmem:[#allocation7 + $0x5b0] sm:$0xff]  ;;  %v2050_v4 = vld [vmem:[#allocation7 + $0x5c8] sm:$0xff]  ;;  %v4076_v6 = vpack.c.bf16 %v2001_v22, %v1998_v2  ;;  %v1997_v36 = vld [vmem:[#allocation7 + $0x420] sm:$0xff] }
 0x3b2   :  { %v2042_v2 = vld [vmem:[#allocation7 + $0x588] sm:$0xff] }
 0x3b3   :  { %4039 = vmatpush1.bf16.msra.mxu1 %v4038_v19  ;;  %4135 = vmatpush3.bf16.msra.mxu0 %v4134_v18  ;;  %v2023_v19 = vld [vmem:[#allocation7 + $0x4f0] sm:$0xff]  ;;  %v2026_v18 = vld [vmem:[#allocation7 + $0x508] sm:$0xff] }
 0x3b4   :  { %4041 = vmatprep.subr.bf16.mxu1 %v4040_v23  ;;  %4137 = vmatprep.subr.bf16.mxu0 %v4136_v20  ;;  %v4060_v23 = vpack.c.bf16 %v1977_v17, %v1974_v16  ;;  %v1973_v20 = vld [vmem:[#allocation7 + $0x360] sm:$0xff]  ;;  %v4156_v26 = vpack.c.bf16 %v2026_v18, %v2023_v19  ;;  %v2004_v16 = vld [vmem:[#allocation7 + $0x458] sm:$0xff]  ;;  %v2007_v17 = vld [vmem:[#allocation7 + $0x470] sm:$0xff] }
 0x3b5   :  { %v2053_v19 = vld [vmem:[#allocation7 + $0x5e0] sm:$0xff]  ;;  %v2056_v18 = vld [vmem:[#allocation7 + $0x5f8] sm:$0xff]  ;;  %v2046_v22 = vld [vmem:[#allocation7 + $0x5a8] sm:$0xff] }
 0x3b7   :  { %4043 = vmatpush1.bf16.msra.mxu1 %v4042_v32  ;;  %4139 = vmatpush3.bf16.msra.mxu0 %v4138_v33  ;;  %v2032_v32 = vld [vmem:[#allocation7 + $0x538] sm:$0xff]  ;;  %v4062_v33 = vpack.c.bf16 %v1976_v24, %v1973_v20  ;;  %v2003_v20 = vld [vmem:[#allocation7 + $0x450] sm:$0xff]  ;;  %v2006_v24 = vld [vmem:[#allocation7 + $0x468] sm:$0xff] }
 0x3b8   :  { %4045 = vmatprep.subr.bf16.mxu1 %v4044_v41  ;;  %4141 = vmatprep.subr.bf16.mxu0 %v4140_v39  ;;  %v1982_v41 = vld [vmem:[#allocation7 + $0x3a8] sm:$0xff]  ;;  %v1981_v39 = vld [vmem:[#allocation7 + $0x3a0] sm:$0xff]  ;;  %v4160_v42 = vpack.c.bf16 %v2032_v32, %v2029_v31  ;;  %v4082_v31 = vpack.c.bf16 %v2006_v24, %v2003_v20  ;;  %v4178_v32 = vpack.c.bf16 %v2008_v29, %v2005_v25 }
 0x3b9   :  { %v2557_v29 = vld [vmem:[%s4700_s13] sm:$0x7] }
 0x3bb   :  { %4047 = vmatpush1.bf16.msra.mxu1 %v4046_v47  ;;  %4143 = vmatpush3.bf16.msra.mxu0 %v4142_v34  ;;  %v4162_v34 = vpack.c.bf16 %v1984_v11, %v1981_v39  ;;  %v2015_v11 = vld [vmem:[#allocation7 + $0x4b0] sm:$0xff] }
 0x3bc   :  { %4049 = vmatprep.subr.bf16.mxu1 %v4048_v51  ;;  %4145 = vmatprep.subr.bf16.mxu0 %v4144_v52  ;;  %v1988_v51 = vld [vmem:[#allocation7 + $0x3d8] sm:$0xff]  ;;  %v1987_v52 = vld [vmem:[#allocation7 + $0x3d0] sm:$0xff]  ;;  %v4090_v46 = vpack.c.bf16 %v2018_v43, %v2015_v11 }
 0x3bf   :  { %4051 = vmatpush1.bf16.msra.mxu1 %v4050_v59  ;;  %4147 = vmatpush3.bf16.msra.mxu0 %v4146_v60  ;;  %v4070_v59 = vpack.c.bf16 %v1988_v51, %v1985_v50  ;;  %v4166_v60 = vpack.c.bf16 %v1990_v13, %v1987_v52  ;;  %v2028_v50 = vld [vmem:[#allocation7 + $0x518] sm:$0xff]  ;;  %v2031_v51 = vld [vmem:[#allocation7 + $0x530] sm:$0xff] }
 0x3c0   :  { %4053 = vmatprep.subr.bf16.mxu1 %v4052_v61  ;;  %4149 = vmatprep.subr.bf16.mxu0 %v4148_v53  ;;  %v4072_v61 = vpack.c.bf16 %v1995_v57, %v1992_v56  ;;  %v1991_v53 = vld [vmem:[#allocation7 + $0x3f0] sm:$0xff]  ;;  %v2030_v56 = vld [vmem:[#allocation7 + $0x528] sm:$0xff] }
 0x3c1   :  { %v2027_v13 = vld [vmem:[#allocation7 + $0x510] sm:$0xff]  ;;  %v2034_v57 = vld [vmem:[#allocation7 + $0x548] sm:$0xff] }
 0x3c2   :  { %2642 = vmatmul.mubr.f32.vlgmr.msra.gmra.mrb[10].mxu1 %v4627_v48  ;;  %2784 = vmatmul.mubr.f32.vlgmr.msra.gmra.mrb[8].mxu0 %v4627_v48  ;;  %v1983_v48 = vld [vmem:[#allocation7 + $0x3b0] sm:$0xff]  ;;  %v4098_v58 = vpack.c.bf16 %v2030_v56, %v2027_v13 }
 0x3c3   :  { %4055 = vmatpush1.bf16.msra.mxu1 %v4054_v5  ;;  %2712 = vmatprep.mubr.f32.mxu1 %v4633_v55  ;;  %v4064_v37 = vpack.c.bf16 %v1983_v48, %v1980_v30  ;;  %v4074_v5 = vpack.c.bf16 %v1994_v62, %v1991_v53  ;;  %v2010_v30 = vld [vmem:[#allocation7 + $0x488] sm:$0xff]  ;;  %v2013_v48 = vld [vmem:[#allocation7 + $0x4a0] sm:$0xff]  ;;  %v2040_v53 = vld [vmem:[#allocation7 + $0x578] sm:$0xff] }
 0x3c4   :  { %4151 = vmatpush3.bf16.msra.mxu0 %v4150_v15  ;;  %2853 = vmatprep.mubr.f32.mxu0 %v4633_v55  ;;  %v1979_v55 = vld [vmem:[#allocation7 + $0x390] sm:$0xff]  ;;  %v4170_v15 = vpack.c.bf16 %v1996_v0, %v1993_v63 }
 0x3c5   :  { %4057 = vmatprep.subr.bf16.mxu1 %v4056_v8  ;;  %4153 = vmatprep.subr.bf16.mxu0 %v4152_v9  ;;  %v4066_v47 = vpack.c.bf16 %v1982_v41, %v1979_v55  ;;  %v1999_v8 = vld [vmem:[#allocation7 + $0x430] sm:$0xff]  ;;  %v4172_v9 = vpack.c.bf16 %v2050_v4, %v2047_v3  ;;  %v2016_v55 = vld [vmem:[#allocation7 + $0x4b8] sm:$0xff]  ;;  %v2049_v3 = vld [vmem:[#allocation7 + $0x5c0] sm:$0xff] }
 0x3c6   :  { %v2019_v41 = vld [vmem:[#allocation7 + $0x4d0] sm:$0xff] }
 0x3c7   :  { %4059 = vmatpush1.bf16.msra.mxu1 %v4058_v1  ;;  %v4078_v1 = vpack.c.bf16 %v2000_v7, %v1997_v36  ;;  %v2043_v62 = vld [vmem:[#allocation7 + $0x590] sm:$0xff]  ;;  %v2052_v36 = vld [vmem:[#allocation7 + $0x5d8] sm:$0xff] }
 0x3c8   :  { %4155 = vmatpush3.bf16.msra.mxu0 %v4154_v21  ;;  %4061 = vmatprep.subr.bf16.mxu1 %v4060_v23  ;;  %v4174_v21 = vpack.c.bf16 %v2002_v10, %v1999_v8  ;;  %v4080_v23 = vpack.c.bf16 %v2007_v17, %v2004_v16  ;;  %v2039_v0 = vld [vmem:[#allocation7 + $0x570] sm:$0xff]  ;;  %v2054_v16 = vld [vmem:[#allocation7 + $0x5e8] sm:$0xff] }
 0x3c9   :  { %4157 = vmatprep.subr.bf16.mxu0 %v4156_v26  ;;  %v4176_v26 = vpack.c.bf16 %v2056_v18, %v2053_v19  ;;  %v4106_v4 = vpack.c.bf16 %v2042_v2, %v2039_v0  ;;  %v2055_v7 = vld [vmem:[#allocation7 + $0x5f0] sm:$0xff] }
 0x3ca   :  { %v2051_v10 = vld [vmem:[#allocation7 + $0x5d0] sm:$0xff] }
 0x3cb   :  { %4063 = vmatpush1.bf16.msra.mxu1 %v4062_v33  ;;  %v4084_v33 = vpack.c.bf16 %v2013_v48, %v2010_v30  ;;  %v4114_v17 = vpack.c.bf16 %v2054_v16, %v2051_v10  ;;  %v2570_v30 = vrot.slane %v2557_v29, %v4576_v27 }
 0x3cc   :  { %4159 = vmatpush3.bf16.msra.mxu0 %v4158_v35  ;;  %4065 = vmatprep.subr.bf16.mxu1 %v4064_v37  ;;  %v2009_v35 = vld [vmem:[#allocation7 + $0x480] sm:$0xff]  ;;  %v2012_v37 = vld [vmem:[#allocation7 + $0x498] sm:$0xff] }
 0x3cd   :  { %4161 = vmatprep.subr.bf16.mxu0 %v4160_v42  ;;  %v4086_v39 = vpack.c.bf16 %v2012_v37, %v2009_v35  ;;  %v4088_v42 = vpack.c.bf16 %v2019_v41, %v2016_v55  ;;  %v1861_v35 = vld [vmem:[%s4702_s15] sm:$0x7]  ;;  %s4719_s15 = sld [smem:[#allocation15_spill]] }
 0x3ce   :  { %v1862_v37 = vld [vmem:[%s4703_s16] sm:$0x7] }
 0x3cf   :  { %4067 = vmatpush1.bf16.msra.mxu1 %v4066_v47  ;;  %v4092_v47 = vpack.c.bf16 %v2025_v45, %v2022_v44  ;;  %v1863_v55 = vmul.f32 %v1862_v37, %v1861_v35  ;;  %v1860_v41 = vld [vmem:[%s4701_s14] sm:$0x7] }
 0x3d0   :  { %4163 = vmatpush3.bf16.msra.mxu0 %v4162_v34  ;;  %4069 = vmatprep.subr.bf16.mxu1 %v4068_v49  ;;  %v2021_v34 = vld [vmem:[#allocation7 + $0x4e0] sm:$0xff]  ;;  %v2024_v49 = vld [vmem:[#allocation7 + $0x4f8] sm:$0xff] }
 0x3d1   :  { %4165 = vmatprep.subr.bf16.mxu0 %v4164_v40  ;;  %v4094_v52 = vpack.c.bf16 %v2024_v49, %v2021_v34  ;;  %v4096_v40 = vpack.c.bf16 %v2031_v51, %v2028_v50  ;;  %v2566_v34 = vrot.slane %v2557_v29, %v4542_v14 }
 0x3d3   :  { %4071 = vmatpush1.bf16.msra.mxu1 %v4070_v59  ;;  %v4100_v59 = vpack.c.bf16 %v2037_v54, %v2034_v57 }
 0x3d4   :  { %4167 = vmatpush3.bf16.msra.mxu0 %v4166_v60  ;;  %4073 = vmatprep.subr.bf16.mxu1 %v4072_v61  ;;  %v2033_v60 = vld [vmem:[#allocation7 + $0x540] sm:$0xff]  ;;  %v2036_v61 = vld [vmem:[#allocation7 + $0x558] sm:$0xff] }
 0x3d5   :  { %4169 = vmatprep.subr.bf16.mxu0 %v4168_v28  ;;  %v4102_v63 = vpack.c.bf16 %v2036_v61, %v2033_v60  ;;  %v4104_v28 = vpack.c.bf16 %v2043_v62, %v2040_v53 }
 0x3d7   :  { %4075 = vmatpush1.bf16.msra.mxu1 %v4074_v5  ;;  %v4108_v5 = vpack.c.bf16 %v2049_v3, %v2046_v22 }
 0x3d8   :  { %4171 = vmatpush3.bf16.msra.mxu0 %v4170_v15  ;;  %4077 = vmatprep.subr.bf16.mxu1 %v4076_v6  ;;  %v2045_v15 = vld [vmem:[#allocation7 + $0x5a0] sm:$0xff]  ;;  %v2048_v6 = vld [vmem:[#allocation7 + $0x5b8] sm:$0xff] }
 0x3d9   :  { %4173 = vmatprep.subr.bf16.mxu0 %v4172_v9  ;;  %v4110_v8 = vpack.c.bf16 %v2048_v6, %v2045_v15  ;;  %v4112_v9 = vpack.c.bf16 %v2055_v7, %v2052_v36 }
 0x3db   :  { %4079 = vmatpush1.bf16.msra.mxu1 %v4078_v1 }
 0x3dc   :  { %4175 = vmatpush3.bf16.msra.mxu0 %v4174_v21  ;;  %4081 = vmatprep.subr.bf16.mxu1 %v4080_v23 }
 0x3dd   :  { %4177 = vmatprep.subr.bf16.mxu0 %v4176_v26 }
 0x3df   :  { %4083 = vmatpush1.bf16.msra.mxu1 %v4082_v31 }
 0x3e0   :  { %4179 = vmatpush3.bf16.msra.mxu0 %v4178_v32  ;;  %4085 = vmatprep.subr.bf16.mxu1 %v4084_v33 }
 0x3e3   :  { %2854 = vmatmul.mubr.f32.vlgmr.msra.gmra.mrb[10].mxu0 %v4643_v38  ;;  %4087 = vmatpush1.bf16.msra.mxu1 %v4086_v39  ;;  %v1864_v39 = vadd.f32 %v1863_v55, %v1860_v41 }
 0x3e4   :  { %4089 = vmatprep.subr.bf16.mxu1 %v4088_v42 }
 0x3e5   :  { %v2871_v44 = vrot.slane %v1864_v39, %v4576_v27  ;;  %v2863_v50 = vrot.slane %v1864_v39, %v4534_v12 }
 0x3e7   :  { %4091 = vmatpush1.bf16.msra.mxu1 %v4090_v46 }
 0x3e8   :  { %4093 = vmatprep.subr.bf16.mxu1 %v4092_v47  ;;  %v2562_v47 = vrot.slane %v2557_v29, %v4534_v12 }
 0x3eb   :  { %4095 = vmatpush1.bf16.msra.mxu1 %v4094_v52 }
 0x3ec   :  { %4097 = vmatprep.subr.bf16.mxu1 %v4096_v40  ;;  %v2867_v40 = vrot.slane %v1864_v39, %v4542_v14 }
 0x3ef   :  { %4099 = vmatpush1.bf16.msra.mxu1 %v4098_v58 }
 0x3f0   :  { %4101 = vmatprep.subr.bf16.mxu1 %v4100_v59 }
 0x3f3   :  { %4103 = vmatpush1.bf16.msra.mxu1 %v4102_v63 }
 0x3f4   :  { %4105 = vmatprep.subr.bf16.mxu1 %v4104_v28 }
 0x3f7   :  { %4107 = vmatpush1.bf16.msra.mxu1 %v4106_v4 }
 0x3f8   :  { %4109 = vmatprep.subr.bf16.mxu1 %v4108_v5 }
 0x3fb   :  { %4111 = vmatpush1.bf16.msra.mxu1 %v4110_v8 }
 0x3fc   :  { %4113 = vmatprep.subr.bf16.mxu1 %v4112_v9 }
 0x3ff   :  { %4115 = vmatpush1.bf16.msra.mxu1 %v4114_v17 }
 0x402   :  { %2713 = vmatmul.mubr.f32.vlgmr.msra.gmra.mrb[10].mxu1 %v4643_v38 }
 0x435   :  { %v2920_v19 = vpop.f32.mrb[6].mxu1 }
 0x436   :  { %v2921_v18 = vpop.f32.mrb[7].mxu1 }
 0x437   :  { %v2922_v1 = vadd.f32 %v2921_v18, %v2920_v19 }
 0x455   :  { %v2955_v21 = vpop.f32.mrb[8].mxu1 }
 0x456   :  { %v2956_v23 = vpop.f32.mrb[9].mxu1 }
 0x457   :  { %v2957_v20 = vadd.f32 %v2956_v23, %v2955_v21 }
 0x459   :  { %v2554_v24 = vadd.f32 %v2957_v20, %v2922_v1 }
 0x45b   :  { %v2576_v32 = vmul.f32 %v2570_v30, %v2554_v24 }
 0x475   :  { %v2412_v25 = vpop.f32.mrb[6].mxu0 }
 0x476   :  { %v2414_v26 = vpop.f32.mrb[7].mxu0  ;;  %v2574_v49 = vmul.f32 %v2562_v47, %v2412_v25 }
 0x477   :  { %v2575_v51 = vmul.f32 %v2566_v34, %v2414_v26 }
 0x495   :  { %v2990_v48 = vpop.f32.mrb[8].mxu0 }
 0x496   :  { %v2991_v31 = vpop.f32.mrb[9].mxu0 }
 0x497   :  { %v2992_v33 = vadd.f32 %v2991_v31, %v2990_v48 }
 0x499   :  { %v2786_v38 = vadd.f32 %v2992_v33, %v2576_v32 }
 0x4b6   :  { %v3025_v42 = vpop.f32.mrb[10].mxu0 }
 0x4b7   :  { %v3026_v11 = vpop.f32.mrb[11].mxu0 }
 0x4b8   :  { %v3027_v43 = vadd.f32 %v3026_v11, %v3025_v42 }
 0x4ba   :  { %v2856_v45 = vadd.f32 %v3027_v43, %v2786_v38 }
 0x4bc   :  { %v2877_v46 = vadd.f32 %v2871_v44, %v2856_v45 }
 0x4be   :  { %2880 = vst [vmem:[%s4719_s15 + $0x10] sm:$0xff] %v2877_v46 }
 0x4d5   :  { %v2714_v52 = vpop.f32.mrb[10].mxu1 }
 0x4d6   :  { %v4188_v13 = vadd.f32 %v2714_v52, %v2574_v49  ;;  %v2716_v56 = vpop.f32.mrb[11].mxu1 }
 0x4d7   :  { %v4189_v27 = vadd.f32 %v2716_v56, %v2575_v51 }
 0x4d8   :  { %v2875_v57 = vadd.f32 %v4188_v13, %v2863_v50 }
 0x4d9   :  { %v2876_v54 = vadd.f32 %v4189_v27, %v2867_v40 }
 0x4da   :  { %2878 = vst [vmem:[%s4719_s15] sm:$0xff] %v2875_v57 }
 0x4db   :  { %2879 = vst [vmem:[%s4719_s15 + $0x8] sm:$0xff] %v2876_v54 }
 0x4dc   :  { %2885 = vsyncpa [#allocation3], 1 }
 0x4dd   :  { %2886 = vsyncpa [#allocation5], 1 }
 0x4de   :  { %2887 = vsyncpa [#allocation8], 1 }

</bundles_post_ra>
